<compile_context>
chip_gen: v6e
topology: v6e:2x2x1
jax: 0.10.0
libtpu: 0.0.40
codegen_flags: <defaults>
</compile_context>

<pallas_src>
import functools
import math

import numpy as np
import jax
import jax.numpy as jnp
from jax.experimental import pallas as pl
from jax.experimental.pallas import tpu as pltpu

LANE = 128
SUBLANE = 8

# weight-array order expected by the fused kernel
_DGCN_KEYS = ("w1", "b1", "w2", "b2", "w3", "b3", "w4", "b4",
              "wu_top", "wu_bot", "bu", "wi_top", "wi_bot", "bi")
_LAST_KEYS = ("w1", "b1", "w2", "b2", "w3p", "b3p", "w4p", "b4p",
              "wu_top", "wu_bot", "bu", "wi_top", "wi_bot", "bi")


def _round_up(x, m):
    return ((x + m - 1) // m) * m


def _softplus_const(x):
    return max(x, 0.0) + math.log1p(math.exp(-abs(x)))


# KLD constants: sigma_2 = exp(0.1 + 0.9*softplus(1.0))
_C_LOG_S2 = 0.1 + 0.9 * _softplus_const(1.0)      # log(sigma_2)
_C_INV_2S2SQ = 0.5 * math.exp(-2.0 * _C_LOG_S2)   # 1 / (2 * sigma_2^2)


# ---------------------------------------------------------------------------
# Fused whole-forward kernel (all layers + KLD in one pallas_call)
# ---------------------------------------------------------------------------

def _forward_kernel(*refs, num_dgcn, alpha, F, Fp, Hp, n_u, n_i):
    it = iter(refs)
    ufea_ref, vfea_ref, uv_ref, vu_ref = next(it), next(it), next(it), next(it)
    dgcn_refs = [[next(it) for _ in _DGCN_KEYS] for _ in range(num_dgcn)]
    last_refs = [next(it) for _ in _LAST_KEYS]
    user_ref, item_ref, kld_ref = next(it), next(it), next(it)

    def dot(a, b):
        # MXU: bf16 operands, f32 accumulation
        return jnp.dot(a, b, preferred_element_type=jnp.float32)

    def bf(x):
        return x.astype(jnp.bfloat16)

    def leaky(x):
        return jnp.where(x > 0, x, alpha * x)

    def softplus(x):
        return jnp.maximum(x, 0.0) + jnp.log(1.0 + jnp.exp(-jnp.abs(x)))

    # bf16 operands read exactly once; reused across every layer from VMEM.
    uv = uv_ref[...]              # (nUp, nIp) bf16
    vu = vu_ref[...]              # (nIp, nUp) bf16
    u = ufea_ref[...]             # (nUp, Fp)  bf16 (padded lanes/rows are zero)
    v = vfea_ref[...]             # (nIp, Fp)  bf16

    # ---------------- SingleDGCNLayer x (GNN-1): 3 adjacency passes ----------
    for lw in dgcn_refs:
        (w1, b1, w2, b2, w3, b3, w4, b4,
         wu_t, wu_b, bu, wi_t, wi_b, bi) = [r[...] for r in lw]
        # pass 1 (vu): gc1
        u_ho1 = leaky(dot(vu, bf(dot(u, w1))) + b1)                       # (nIp, Hp) f32
        # pass 2 (uv): gc2 and gc3 share one streamed-adjacency pass
        rhs = jnp.concatenate([bf(dot(v, w2)), bf(dot(bf(u_ho1), w3))], axis=1)
        mixed = dot(uv, rhs)                                              # (nUp, Hp+Fp)
        i_ho1 = leaky(mixed[:, :Hp] + b2)                                 # (nUp, Hp)
        u_ho2 = leaky(mixed[:, Hp:] + b3)                                 # (nUp, Fp)
        # pass 3 (vu): gc4
        i_ho2 = leaky(dot(vu, bf(dot(bf(i_ho1), w4))) + b4)               # (nIp, Fp)
        # union: cat(ho, fea) @ W == ho @ W_top + fea @ W_bot; ReLU.
        # results only feed next-layer bf16 matmuls -> keep them bf16.
        u = bf(jnp.maximum(dot(bf(u_ho2), wu_t) + dot(u, wu_b) + bu, 0.0))
        v = bf(jnp.maximum(dot(bf(i_ho2), wi_t) + dot(v, wi_b) + bi, 0.0))

    # ---------------- SingleLastLayer (eval), mean||logstd lane-packed -------
    (w1, b1, w2, b2, w3p, b3p, w4p, b4p,
     wu_t, wu_b, bu, wi_t, wi_b, bi) = [r[...] for r in last_refs]
    u_ho = leaky(dot(vu, bf(dot(u, w1))) + b1)                            # (nIp, Hp)
    rhs = jnp.concatenate([bf(dot(v, w2)), bf(dot(bf(u_ho), w3p))], axis=1)
    mixed = dot(uv, rhs)                                                  # (nUp, Hp+2Fp)
    i_ho = leaky(mixed[:, :Hp] + b2)                                      # (nUp, Hp)
    u_ml = leaky(mixed[:, Hp:] + b3p)                                     # (nUp, 2Fp)
    u_ml = dot(bf(u_ml), wu_t) + dot(u, wu_b) + bu                        # (nUp, 2Fp)
    i_ml = leaky(dot(vu, bf(dot(bf(i_ho), w4p))) + b4p)                   # (nIp, 2Fp)
    i_ml = dot(bf(i_ml), wi_t) + dot(v, wi_b) + bi                        # (nIp, 2Fp)

    u_mean, u_logstd = u_ml[:, :Fp], u_ml[:, Fp:]
    i_mean, i_logstd = i_ml[:, :Fp], i_ml[:, Fp:]

    # eval mode: sampled_z = mean
    user_ref[...] = u_mean
    item_ref[...] = i_mean

    # fused KLD (closed form); masked by REAL rows/lanes, divided by real rows
    def kld(mean, logstd, n_rows_real):
        rows, cols = mean.shape
        real = jnp.logical_and(
            jax.lax.broadcasted_iota(jnp.int32, (rows, cols), 0) < n_rows_real,
            jax.lax.broadcasted_iota(jnp.int32, (rows, cols), 1) < F)
        a = 0.1 + 0.9 * softplus(logstd)        # log(sigma_1); sigma_1^2 = exp(2a)
        kl = _C_LOG_S2 - a + (jnp.exp(2.0 * a) + mean * mean) * _C_INV_2S2SQ - 0.5
        kl = jnp.where(real, kl, 0.0)
        return jnp.sum(kl) * (1.0 / n_rows_real)

    kld_ref[0, 0] = kld(u_mean, u_logstd, n_u) + kld(i_mean, i_logstd, n_i)


# ---------------------------------------------------------------------------
# pallas_call wrapper
# ---------------------------------------------------------------------------

def singlevbge_forward(packed, ufea, vfea, UV_adj, VU_adj, *, opt):
    """Eval-mode forward of singleVBGE as one fused Pallas call.

    Returns (learn_user (n_users, F) f32, learn_item (n_items, F) f32, kld_loss).
    """
    F = opt["feature_dim"]
    alpha = opt["leakey"]
    last = packed["last"]
    Hp = last["w1"].shape[1]
    Fp = last["wu_bot"].shape[0]
    n_u, n_i = ufea.shape[0], vfea.shape[0]
    nUp, nIp = _round_up(n_u, SUBLANE), _round_up(n_i, SUBLANE)
    num_dgcn = len(packed["layers"])

    def pad2(x, shape):
        out = jnp.zeros(shape, jnp.bfloat16)
        return out.at[:x.shape[0], :x.shape[1]].set(x.astype(jnp.bfloat16))

    # bf16 transport for the big operands (adjacency dominates DMA/VMEM bytes)
    inputs = [pad2(ufea, (nUp, Fp)), pad2(vfea, (nIp, Fp)),
              pad2(UV_adj, (nUp, nIp)), pad2(VU_adj, (nIp, nUp))]
    for lp in packed["layers"]:
        inputs += [lp[k] for k in _DGCN_KEYS]
    inputs += [last[k] for k in _LAST_KEYS]

    out_shape = (jax.ShapeDtypeStruct((nUp, Fp), jnp.float32),
                 jax.ShapeDtypeStruct((nIp, Fp), jnp.float32),
                 jax.ShapeDtypeStruct((1, 1), jnp.float32))

    # advisory cost estimate (matmul flops dominate; KLD transcendentals)
    def mm(m, k, n):
        return 2 * m * k * n
    flops = 0
    for _ in range(num_dgcn):
        flops += mm(nUp, Fp, Hp) + mm(nIp, nUp, Hp)           # gc1
        flops += mm(nIp, Fp, Hp) + mm(nIp, Hp, Fp)            # gc2 / gc3 supports
        flops += mm(nUp, nIp, Hp + Fp)                        # shared uv pass
        flops += mm(nUp, Hp, Fp) + mm(nIp, nUp, Fp)           # gc4
        flops += 2 * mm(nUp, Fp, Fp) + 2 * mm(nIp, Fp, Fp)    # unions
    flops += mm(nUp, Fp, Hp) + mm(nIp, nUp, Hp)               # last gc1
    flops += mm(nIp, Fp, Hp) + mm(nIp, Hp, 2 * Fp)            # last gc2 / gc3 pair
    flops += mm(nUp, nIp, Hp + 2 * Fp)                        # shared uv pass
    flops += mm(nUp, Hp, 2 * Fp) + mm(nIp, nUp, 2 * Fp)       # gc4 pair
    flops += mm(nUp, 2 * Fp, 2 * Fp) + mm(nUp, Fp, 2 * Fp)    # user union pair
    flops += mm(nIp, 2 * Fp, 2 * Fp) + mm(nIp, Fp, 2 * Fp)    # item union pair
    transcendentals = 3 * (nUp + nIp) * Fp
    bytes_accessed = int(sum(int(np.prod(x.shape)) * x.dtype.itemsize for x in inputs)
                         + sum(int(np.prod(s.shape)) * 4 for s in out_shape))

    # single fused invocation: no grid -> no pipeline, no dead double-buffering;
    # VMEM budget set explicitly (safe on v5e/v6e/v7x).
    vmem_limit = int(min(64 * 2 ** 20,
                         max(32 * 2 ** 20,
                             2 * bytes_accessed + 16 * (nUp + nIp) * (Hp + 2 * Fp))))

    kernel = functools.partial(_forward_kernel, num_dgcn=num_dgcn, alpha=alpha,
                               F=F, Fp=Fp, Hp=Hp, n_u=n_u, n_i=n_i)

    user_p, item_p, kld = pl.pallas_call(
        kernel,
        out_shape=out_shape,
        in_specs=[pl.BlockSpec(memory_space=pltpu.MemorySpace.VMEM)] * len(inputs),
        out_specs=(pl.BlockSpec(memory_space=pltpu.MemorySpace.VMEM),
                   pl.BlockSpec(memory_space=pltpu.MemorySpace.VMEM),
                   pl.BlockSpec(memory_space=pltpu.MemorySpace.SMEM)),
        compiler_params=pltpu.CompilerParams(vmem_limit_bytes=vmem_limit),
        cost_estimate=pl.CostEstimate(flops=flops,
                                      transcendentals=transcendentals,
                                      bytes_accessed=bytes_accessed),
    )(*inputs)
    return user_p[:n_u, :F], item_p[:n_i, :F], kld[0, 0]


# ---------------------------------------------------------------------------
# Parameter initialization (mirrors the module's shapes) and packing/padding
# ---------------------------------------------------------------------------

def _uniform(key, shape, stdv):
    return jax.random.uniform(key, shape, jnp.float32, -stdv, stdv)


def init_gcn(key, nfeat, nhid):
    k1, k2 = jax.random.split(key)
    stdv = 1.0 / math.sqrt(nhid)
    return {"W": _uniform(k1, (nfeat, nhid), stdv), "b": _uniform(k2, (nhid,), stdv)}


def init_linear(key, nin, nout):
    k1, k2 = jax.random.split(key)
    stdv = 1.0 / math.sqrt(nin)
    return {"W": _uniform(k1, (nin, nout), stdv), "b": _uniform(k2, (nout,), stdv)}


def init_dgcn_layer(key, F, H):
    ks = jax.random.split(key, 6)
    return {"gc1": init_gcn(ks[0], F, H), "gc2": init_gcn(ks[1], F, H),
            "gc3": init_gcn(ks[2], H, F), "gc4": init_gcn(ks[3], H, F),
            "user_union": init_linear(ks[4], 2 * F, F),
            "item_union": init_linear(ks[5], 2 * F, F)}


def init_last_layer(key, F, H):
    ks = jax.random.split(key, 10)
    return {"gc1": init_gcn(ks[0], F, H), "gc2": init_gcn(ks[1], F, H),
            "gc3_mean": init_gcn(ks[2], H, F), "gc3_logstd": init_gcn(ks[3], H, F),
            "gc4_mean": init_gcn(ks[4], H, F), "gc4_logstd": init_gcn(ks[5], H, F),
            "user_union_mean": init_linear(ks[6], 2 * F, F),
            "user_union_logstd": init_linear(ks[7], 2 * F, F),
            "item_union_mean": init_linear(ks[8], 2 * F, F),
            "item_union_logstd": init_linear(ks[9], 2 * F, F)}


def init_singlevbge(key, opt):
    F, H, L = opt["feature_dim"], opt["hidden_dim"], opt["GNN"]
    ks = jax.random.split(key, L)
    layers = [init_dgcn_layer(ks[i], F, H) for i in range(L - 1)]
    last = init_last_layer(ks[L - 1], F, H)
    return {"layers": layers, "last": last}


def _pad2(w, shape):
    return jnp.zeros(shape, w.dtype).at[:w.shape[0], :w.shape[1]].set(w)


def _pad_bias(b, n):
    return jnp.zeros((1, n), jnp.float32).at[0, :b.shape[0]].set(b)


def pack_dgcn_layer(p, F, H, Fp, Hp):
    wdt = jnp.bfloat16
    wu, wi = p["user_union"]["W"], p["item_union"]["W"]        # (2F, F)
    return {
        "w1": _pad2(p["gc1"]["W"], (Fp, Hp)).astype(wdt), "b1": _pad_bias(p["gc1"]["b"], Hp),
        "w2": _pad2(p["gc2"]["W"], (Fp, Hp)).astype(wdt), "b2": _pad_bias(p["gc2"]["b"], Hp),
        "w3": _pad2(p["gc3"]["W"], (Hp, Fp)).astype(wdt), "b3": _pad_bias(p["gc3"]["b"], Fp),
        "w4": _pad2(p["gc4"]["W"], (Hp, Fp)).astype(wdt), "b4": _pad_bias(p["gc4"]["b"], Fp),
        "wu_top": _pad2(wu[:F], (Fp, Fp)).astype(wdt),
        "wu_bot": _pad2(wu[F:], (Fp, Fp)).astype(wdt),
        "bu": _pad_bias(p["user_union"]["b"], Fp),
        "wi_top": _pad2(wi[:F], (Fp, Fp)).astype(wdt),
        "wi_bot": _pad2(wi[F:], (Fp, Fp)).astype(wdt),
        "bi": _pad_bias(p["item_union"]["b"], Fp),
    }


def pack_last_layer(p, F, H, Fp, Hp):
    wdt = jnp.bfloat16

    def pack_pair_gcn(wm, wl, bm, bl):
        # mean||logstd packed along the output (lane) axis
        w = jnp.zeros((Hp, 2 * Fp), jnp.float32)
        w = w.at[:H, :F].set(wm).at[:H, Fp:Fp + F].set(wl)
        b = jnp.zeros((1, 2 * Fp), jnp.float32)
        b = b.at[0, :F].set(bm).at[0, Fp:Fp + F].set(bl)
        return w.astype(wdt), b

    def pack_pair_union(wm, wl, bm, bl):
        # cat(ho, fea) @ W == ho @ W[:F] + fea @ W[F:]; mean/logstd along lanes
        top = jnp.zeros((2 * Fp, 2 * Fp), jnp.float32)          # block-diag, acts on ho
        top = top.at[:F, :F].set(wm[:F]).at[Fp:Fp + F, Fp:Fp + F].set(wl[:F])
        bot = jnp.zeros((Fp, 2 * Fp), jnp.float32)              # acts on fea
        bot = bot.at[:F, :F].set(wm[F:]).at[:F, Fp:Fp + F].set(wl[F:])
        b = jnp.zeros((1, 2 * Fp), jnp.float32)
        b = b.at[0, :F].set(bm).at[0, Fp:Fp + F].set(bl)
        return top.astype(wdt), bot.astype(wdt), b

    w3p, b3p = pack_pair_gcn(p["gc3_mean"]["W"], p["gc3_logstd"]["W"],
                             p["gc3_mean"]["b"], p["gc3_logstd"]["b"])
    w4p, b4p = pack_pair_gcn(p["gc4_mean"]["W"], p["gc4_logstd"]["W"],
                             p["gc4_mean"]["b"], p["gc4_logstd"]["b"])
    wu_top, wu_bot, bu = pack_pair_union(
        p["user_union_mean"]["W"], p["user_union_logstd"]["W"],
        p["user_union_mean"]["b"], p["user_union_logstd"]["b"])
    wi_top, wi_bot, bi = pack_pair_union(
        p["item_union_mean"]["W"], p["item_union_logstd"]["W"],
        p["item_union_mean"]["b"], p["item_union_logstd"]["b"])
    return {
        "w1": _pad2(p["gc1"]["W"], (Fp, Hp)).astype(wdt), "b1": _pad_bias(p["gc1"]["b"], Hp),
        "w2": _pad2(p["gc2"]["W"], (Fp, Hp)).astype(wdt), "b2": _pad_bias(p["gc2"]["b"], Hp),
        "w3p": w3p, "b3p": b3p, "w4p": w4p, "b4p": b4p,
        "wu_top": wu_top, "wu_bot": wu_bot, "bu": bu,
        "wi_top": wi_top, "wi_bot": wi_bot, "bi": bi,
    }


def pack_params(params, opt):
    F, H = opt["feature_dim"], opt["hidden_dim"]
    Fp, Hp = _round_up(F, LANE), _round_up(H, LANE)
    return {"layers": [pack_dgcn_layer(p, F, H, Fp, Hp) for p in params["layers"]],
            "last": pack_last_layer(params["last"], F, H, Fp, Hp)}


# ---------------------------------------------------------------------------
# Pure-JAX reference (same bf16-operand / f32-accumulate numerics) for checking
# ---------------------------------------------------------------------------

def _ref_dot(a, b):
    return jnp.dot(a.astype(jnp.bfloat16), b.astype(jnp.bfloat16),
                   preferred_element_type=jnp.float32)


def _ref_gcn(x, adj, W, b, alpha):
    out = _ref_dot(adj, _ref_dot(x, W)) + b
    return jnp.where(out > 0, out, alpha * out)


def reference_forward(params, ufea, vfea, UV_adj, VU_adj, opt):
    alpha = opt["leakey"]
    u, v = ufea, vfea
    for p in params["layers"]:
        u_ho = _ref_gcn(u, VU_adj, p["gc1"]["W"], p["gc1"]["b"], alpha)
        i_ho = _ref_gcn(v, UV_adj, p["gc2"]["W"], p["gc2"]["b"], alpha)
        u_ho = _ref_gcn(u_ho, UV_adj, p["gc3"]["W"], p["gc3"]["b"], alpha)
        i_ho = _ref_gcn(i_ho, VU_adj, p["gc4"]["W"], p["gc4"]["b"], alpha)
        u_new = jnp.maximum(_ref_dot(jnp.concatenate([u_ho, u], 1),
                                     p["user_union"]["W"]) + p["user_union"]["b"], 0.0)
        v_new = jnp.maximum(_ref_dot(jnp.concatenate([i_ho, v], 1),
                                     p["item_union"]["W"]) + p["item_union"]["b"], 0.0)
        u, v = u_new, v_new

    p = params["last"]
    u_ho = _ref_gcn(u, VU_adj, p["gc1"]["W"], p["gc1"]["b"], alpha)
    u_m_ho = _ref_gcn(u_ho, UV_adj, p["gc3_mean"]["W"], p["gc3_mean"]["b"], alpha)
    u_l_ho = _ref_gcn(u_ho, UV_adj, p["gc3_logstd"]["W"], p["gc3_logstd"]["b"], alpha)
    u_mean = _ref_dot(jnp.concatenate([u_m_ho, u], 1),
                      p["user_union_mean"]["W"]) + p["user_union_mean"]["b"]
    u_logstd = _ref_dot(jnp.concatenate([u_l_ho, u], 1),
                        p["user_union_logstd"]["W"]) + p["user_union_logstd"]["b"]
    i_ho = _ref_gcn(v, UV_adj, p["gc2"]["W"], p["gc2"]["b"], alpha)
    i_m_ho = _ref_gcn(i_ho, VU_adj, p["gc4_mean"]["W"], p["gc4_mean"]["b"], alpha)
    i_l_ho = _ref_gcn(i_ho, VU_adj, p["gc4_logstd"]["W"], p["gc4_logstd"]["b"], alpha)
    i_mean = _ref_dot(jnp.concatenate([i_m_ho, v], 1),
                      p["item_union_mean"]["W"]) + p["item_union_mean"]["b"]
    i_logstd = _ref_dot(jnp.concatenate([i_l_ho, v], 1),
                        p["item_union_logstd"]["W"]) + p["item_union_logstd"]["b"]

    def kld(mean, logstd):
        s1 = jnp.exp(0.1 + 0.9 * jax.nn.softplus(logstd))
        s2 = jnp.exp(0.1 + 0.9 * jax.nn.softplus(jnp.float32(1.0)))
        kl = jnp.log(s2) - jnp.log(s1) + (s1 * s1 + mean * mean) / (2 * s2 * s2) - 0.5
        return kl.mean(axis=0).sum()

    return u_mean, i_mean, kld(u_mean, u_logstd) + kld(i_mean, i_logstd)


# ---------------------------------------------------------------------------
# Main
# ---------------------------------------------------------------------------

if __name__ == "__main__":
    opt = {"GNN": 2, "feature_dim": 32, "hidden_dim": 32,
           "dropout": 0.3, "leakey": 0.1}
    n_users, n_items = 16, 24
    F_dim = opt["feature_dim"]

    key = jax.random.PRNGKey(0)
    k_u, k_v, k_uv, k_vu, k_p = jax.random.split(key, 5)

    ufea = jax.random.normal(k_u, (n_users, F_dim), jnp.float32)
    vfea = jax.random.normal(k_v, (n_items, F_dim), jnp.float32)
    # dense normalized adjacency stand-ins for the sparse spmm inputs
    UV_adj = jax.random.uniform(k_uv, (n_users, n_items), jnp.float32)
    UV_adj = UV_adj / jnp.maximum(UV_adj.sum(axis=1, keepdims=True), 1e-6)
    VU_adj = jax.random.uniform(k_vu, (n_items, n_users), jnp.float32)
    VU_adj = VU_adj / jnp.maximum(VU_adj.sum(axis=1, keepdims=True), 1e-6)

    params = init_singlevbge(k_p, opt)
    packed = pack_params(params, opt)

    fwd = jax.jit(lambda pk, u, v, a, b: singlevbge_forward(pk, u, v, a, b, opt=opt))
    learn_user, learn_item, kld_loss = fwd(packed, ufea, vfea, UV_adj, VU_adj)
    jax.block_until_ready((learn_user, learn_item, kld_loss))

    # correctness check against a pure-JAX reference with the same bf16 numerics
    ref_user, ref_item, ref_kld = reference_forward(params, ufea, vfea, UV_adj, VU_adj, opt)

    assert learn_user.shape == (n_users, F_dim)
    assert learn_item.shape == (n_items, F_dim)
    assert jnp.isfinite(learn_user).all() and jnp.isfinite(learn_item).all()
    assert jnp.isfinite(kld_loss)
    np.testing.assert_allclose(np.asarray(learn_user), np.asarray(ref_user), rtol=5e-2, atol=5e-2)
    np.testing.assert_allclose(np.asarray(learn_item), np.asarray(ref_item), rtol=5e-2, atol=5e-2)
    np.testing.assert_allclose(float(kld_loss), float(ref_kld), rtol=5e-2, atol=5e-2)

    print("KERNEL_OK")
</pallas_src>

<mosaic_0001>
module attributes {stable_mosaic.version = 11 : i64} {
  func.func @_forward_kernel(%arg0: memref<16x128xbf16, #tpu.memory_space<vmem>>, %arg1: memref<24x128xbf16, #tpu.memory_space<vmem>>, %arg2: memref<16x24xbf16, #tpu.memory_space<vmem>>, %arg3: memref<24x16xbf16, #tpu.memory_space<vmem>>, %arg4: memref<128x128xbf16, #tpu.memory_space<vmem>>, %arg5: memref<1x128xf32, #tpu.memory_space<vmem>>, %arg6: memref<128x128xbf16, #tpu.memory_space<vmem>>, %arg7: memref<1x128xf32, #tpu.memory_space<vmem>>, %arg8: memref<128x128xbf16, #tpu.memory_space<vmem>>, %arg9: memref<1x128xf32, #tpu.memory_space<vmem>>, %arg10: memref<128x128xbf16, #tpu.memory_space<vmem>>, %arg11: memref<1x128xf32, #tpu.memory_space<vmem>>, %arg12: memref<128x128xbf16, #tpu.memory_space<vmem>>, %arg13: memref<128x128xbf16, #tpu.memory_space<vmem>>, %arg14: memref<1x128xf32, #tpu.memory_space<vmem>>, %arg15: memref<128x128xbf16, #tpu.memory_space<vmem>>, %arg16: memref<128x128xbf16, #tpu.memory_space<vmem>>, %arg17: memref<1x128xf32, #tpu.memory_space<vmem>>, %arg18: memref<128x128xbf16, #tpu.memory_space<vmem>>, %arg19: memref<1x128xf32, #tpu.memory_space<vmem>>, %arg20: memref<128x128xbf16, #tpu.memory_space<vmem>>, %arg21: memref<1x128xf32, #tpu.memory_space<vmem>>, %arg22: memref<128x256xbf16, #tpu.memory_space<vmem>>, %arg23: memref<1x256xf32, #tpu.memory_space<vmem>>, %arg24: memref<128x256xbf16, #tpu.memory_space<vmem>>, %arg25: memref<1x256xf32, #tpu.memory_space<vmem>>, %arg26: memref<256x256xbf16, #tpu.memory_space<vmem>>, %arg27: memref<128x256xbf16, #tpu.memory_space<vmem>>, %arg28: memref<1x256xf32, #tpu.memory_space<vmem>>, %arg29: memref<256x256xbf16, #tpu.memory_space<vmem>>, %arg30: memref<128x256xbf16, #tpu.memory_space<vmem>>, %arg31: memref<1x256xf32, #tpu.memory_space<vmem>>, %arg32: memref<16x128xf32, #tpu.memory_space<vmem>>, %arg33: memref<24x128xf32, #tpu.memory_space<vmem>>, %arg34: memref<1x1xf32, #tpu.memory_space<smem>>) attributes {dimension_semantics = [], scalar_prefetch = 0 : i64, scratch_operands = 0 : i64, tpu.core_type = #tpu.core_type<tc>} {
    %c0 = arith.constant 0 : index
    %c0_0 = arith.constant 0 : index
    %0 = vector.load %arg2[%c0, %c0_0] : memref<16x24xbf16, #tpu.memory_space<vmem>>, vector<16x24xbf16>
    %c0_1 = arith.constant 0 : index
    %c0_2 = arith.constant 0 : index
    %1 = vector.load %arg3[%c0_1, %c0_2] : memref<24x16xbf16, #tpu.memory_space<vmem>>, vector<24x16xbf16>
    %c0_3 = arith.constant 0 : index
    %c0_4 = arith.constant 0 : index
    %2 = vector.load %arg0[%c0_3, %c0_4] : memref<16x128xbf16, #tpu.memory_space<vmem>>, vector<16x128xbf16>
    %c0_5 = arith.constant 0 : index
    %c0_6 = arith.constant 0 : index
    %3 = vector.load %arg1[%c0_5, %c0_6] : memref<24x128xbf16, #tpu.memory_space<vmem>>, vector<24x128xbf16>
    %c0_7 = arith.constant 0 : index
    %c0_8 = arith.constant 0 : index
    %4 = vector.load %arg4[%c0_7, %c0_8] : memref<128x128xbf16, #tpu.memory_space<vmem>>, vector<128x128xbf16>
    %c0_9 = arith.constant 0 : index
    %c0_10 = arith.constant 0 : index
    %5 = vector.load %arg5[%c0_9, %c0_10] : memref<1x128xf32, #tpu.memory_space<vmem>>, vector<1x128xf32>
    %c0_11 = arith.constant 0 : index
    %c0_12 = arith.constant 0 : index
    %6 = vector.load %arg6[%c0_11, %c0_12] : memref<128x128xbf16, #tpu.memory_space<vmem>>, vector<128x128xbf16>
    %c0_13 = arith.constant 0 : index
    %c0_14 = arith.constant 0 : index
    %7 = vector.load %arg7[%c0_13, %c0_14] : memref<1x128xf32, #tpu.memory_space<vmem>>, vector<1x128xf32>
    %c0_15 = arith.constant 0 : index
    %c0_16 = arith.constant 0 : index
    %8 = vector.load %arg8[%c0_15, %c0_16] : memref<128x128xbf16, #tpu.memory_space<vmem>>, vector<128x128xbf16>
    %c0_17 = arith.constant 0 : index
    %c0_18 = arith.constant 0 : index
    %9 = vector.load %arg9[%c0_17, %c0_18] : memref<1x128xf32, #tpu.memory_space<vmem>>, vector<1x128xf32>
    %c0_19 = arith.constant 0 : index
    %c0_20 = arith.constant 0 : index
    %10 = vector.load %arg10[%c0_19, %c0_20] : memref<128x128xbf16, #tpu.memory_space<vmem>>, vector<128x128xbf16>
    %c0_21 = arith.constant 0 : index
    %c0_22 = arith.constant 0 : index
    %11 = vector.load %arg11[%c0_21, %c0_22] : memref<1x128xf32, #tpu.memory_space<vmem>>, vector<1x128xf32>
    %c0_23 = arith.constant 0 : index
    %c0_24 = arith.constant 0 : index
    %12 = vector.load %arg12[%c0_23, %c0_24] : memref<128x128xbf16, #tpu.memory_space<vmem>>, vector<128x128xbf16>
    %c0_25 = arith.constant 0 : index
    %c0_26 = arith.constant 0 : index
    %13 = vector.load %arg13[%c0_25, %c0_26] : memref<128x128xbf16, #tpu.memory_space<vmem>>, vector<128x128xbf16>
    %c0_27 = arith.constant 0 : index
    %c0_28 = arith.constant 0 : index
    %14 = vector.load %arg14[%c0_27, %c0_28] : memref<1x128xf32, #tpu.memory_space<vmem>>, vector<1x128xf32>
    %c0_29 = arith.constant 0 : index
    %c0_30 = arith.constant 0 : index
    %15 = vector.load %arg15[%c0_29, %c0_30] : memref<128x128xbf16, #tpu.memory_space<vmem>>, vector<128x128xbf16>
    %c0_31 = arith.constant 0 : index
    %c0_32 = arith.constant 0 : index
    %16 = vector.load %arg16[%c0_31, %c0_32] : memref<128x128xbf16, #tpu.memory_space<vmem>>, vector<128x128xbf16>
    %c0_33 = arith.constant 0 : index
    %c0_34 = arith.constant 0 : index
    %17 = vector.load %arg17[%c0_33, %c0_34] : memref<1x128xf32, #tpu.memory_space<vmem>>, vector<1x128xf32>
    %cst = arith.constant dense<0.000000e+00> : vector<16x128xf32>
    %18 = tpu.matmul %2, %4, %cst {dimension_numbers = #tpu.dot_dimension_numbers<[1], [0], [0], [1], [0, 0, 1, 1], [], []>} : vector<16x128xbf16>, vector<128x128xbf16>, vector<16x128xf32> -> vector<16x128xf32>
    %19 = arith.truncf %18 : vector<16x128xf32> to vector<16x128xbf16>
    %cst_35 = arith.constant dense<0.000000e+00> : vector<24x128xf32>
    %20 = tpu.matmul %1, %19, %cst_35 {dimension_numbers = #tpu.dot_dimension_numbers<[1], [0], [0], [1], [0, 0, 1, 1], [], []>} : vector<24x16xbf16>, vector<16x128xbf16>, vector<24x128xf32> -> vector<24x128xf32>
    %21 = vector.broadcast %5 : vector<1x128xf32> to vector<24x128xf32>
    %22 = arith.addf %20, %21 : vector<24x128xf32>
    %cst_36 = arith.constant 0.000000e+00 : f32
    %23 = vector.broadcast %cst_36 : f32 to vector<24x128xf32>
    %24 = arith.cmpf ogt, %22, %23 : vector<24x128xf32>
    %cst_37 = arith.constant 1.000000e-01 : f32
    %25 = vector.broadcast %cst_37 : f32 to vector<24x128xf32>
    %26 = arith.mulf %25, %22 : vector<24x128xf32>
    %27 = arith.select %24, %22, %26 : vector<24x128xi1>, vector<24x128xf32>
    %cst_38 = arith.constant dense<0.000000e+00> : vector<24x128xf32>
    %28 = tpu.matmul %3, %6, %cst_38 {dimension_numbers = #tpu.dot_dimension_numbers<[1], [0], [0], [1], [0, 0, 1, 1], [], []>} : vector<24x128xbf16>, vector<128x128xbf16>, vector<24x128xf32> -> vector<24x128xf32>
    %29 = arith.truncf %28 : vector<24x128xf32> to vector<24x128xbf16>
    %30 = arith.truncf %27 : vector<24x128xf32> to vector<24x128xbf16>
    %cst_39 = arith.constant dense<0.000000e+00> : vector<24x128xf32>
    %31 = tpu.matmul %30, %8, %cst_39 {dimension_numbers = #tpu.dot_dimension_numbers<[1], [0], [0], [1], [0, 0, 1, 1], [], []>} : vector<24x128xbf16>, vector<128x128xbf16>, vector<24x128xf32> -> vector<24x128xf32>
    %32 = arith.truncf %31 : vector<24x128xf32> to vector<24x128xbf16>
    %33 = tpu.concatenate %29, %32 in 1 : vector<24x128xbf16>, vector<24x128xbf16> -> vector<24x256xbf16>
    %cst_40 = arith.constant dense<0.000000e+00> : vector<16x256xf32>
    %34 = tpu.matmul %0, %33, %cst_40 {dimension_numbers = #tpu.dot_dimension_numbers<[1], [0], [0], [1], [0, 0, 1, 1], [], []>} : vector<16x24xbf16>, vector<24x256xbf16>, vector<16x256xf32> -> vector<16x256xf32>
    %35 = vector.extract_strided_slice %34 {offsets = [0, 0], sizes = [16, 128], strides = [1, 1]} : vector<16x256xf32> to vector<16x128xf32>
    %36 = vector.broadcast %7 : vector<1x128xf32> to vector<16x128xf32>
    %37 = arith.addf %35, %36 : vector<16x128xf32>
    %cst_41 = arith.constant 0.000000e+00 : f32
    %38 = vector.broadcast %cst_41 : f32 to vector<16x128xf32>
    %39 = arith.cmpf ogt, %37, %38 : vector<16x128xf32>
    %cst_42 = arith.constant 1.000000e-01 : f32
    %40 = vector.broadcast %cst_42 : f32 to vector<16x128xf32>
    %41 = arith.mulf %40, %37 : vector<16x128xf32>
    %42 = arith.select %39, %37, %41 : vector<16x128xi1>, vector<16x128xf32>
    %43 = vector.extract_strided_slice %34 {offsets = [0, 128], sizes = [16, 128], strides = [1, 1]} : vector<16x256xf32> to vector<16x128xf32>
    %44 = vector.broadcast %9 : vector<1x128xf32> to vector<16x128xf32>
    %45 = arith.addf %43, %44 : vector<16x128xf32>
    %cst_43 = arith.constant 0.000000e+00 : f32
    %46 = vector.broadcast %cst_43 : f32 to vector<16x128xf32>
    %47 = arith.cmpf ogt, %45, %46 : vector<16x128xf32>
    %cst_44 = arith.constant 1.000000e-01 : f32
    %48 = vector.broadcast %cst_44 : f32 to vector<16x128xf32>
    %49 = arith.mulf %48, %45 : vector<16x128xf32>
    %50 = arith.select %47, %45, %49 : vector<16x128xi1>, vector<16x128xf32>
    %51 = arith.truncf %42 : vector<16x128xf32> to vector<16x128xbf16>
    %cst_45 = arith.constant dense<0.000000e+00> : vector<16x128xf32>
    %52 = tpu.matmul %51, %10, %cst_45 {dimension_numbers = #tpu.dot_dimension_numbers<[1], [0], [0], [1], [0, 0, 1, 1], [], []>} : vector<16x128xbf16>, vector<128x128xbf16>, vector<16x128xf32> -> vector<16x128xf32>
    %53 = arith.truncf %52 : vector<16x128xf32> to vector<16x128xbf16>
    %cst_46 = arith.constant dense<0.000000e+00> : vector<24x128xf32>
    %54 = tpu.matmul %1, %53, %cst_46 {dimension_numbers = #tpu.dot_dimension_numbers<[1], [0], [0], [1], [0, 0, 1, 1], [], []>} : vector<24x16xbf16>, vector<16x128xbf16>, vector<24x128xf32> -> vector<24x128xf32>
    %55 = vector.broadcast %11 : vector<1x128xf32> to vector<24x128xf32>
    %56 = arith.addf %54, %55 : vector<24x128xf32>
    %cst_47 = arith.constant 0.000000e+00 : f32
    %57 = vector.broadcast %cst_47 : f32 to vector<24x128xf32>
    %58 = arith.cmpf ogt, %56, %57 : vector<24x128xf32>
    %cst_48 = arith.constant 1.000000e-01 : f32
    %59 = vector.broadcast %cst_48 : f32 to vector<24x128xf32>
    %60 = arith.mulf %59, %56 : vector<24x128xf32>
    %61 = arith.select %58, %56, %60 : vector<24x128xi1>, vector<24x128xf32>
    %62 = arith.truncf %50 : vector<16x128xf32> to vector<16x128xbf16>
    %cst_49 = arith.constant dense<0.000000e+00> : vector<16x128xf32>
    %63 = tpu.matmul %62, %12, %cst_49 {dimension_numbers = #tpu.dot_dimension_numbers<[1], [0], [0], [1], [0, 0, 1, 1], [], []>} : vector<16x128xbf16>, vector<128x128xbf16>, vector<16x128xf32> -> vector<16x128xf32>
    %cst_50 = arith.constant dense<0.000000e+00> : vector<16x128xf32>
    %64 = tpu.matmul %2, %13, %cst_50 {dimension_numbers = #tpu.dot_dimension_numbers<[1], [0], [0], [1], [0, 0, 1, 1], [], []>} : vector<16x128xbf16>, vector<128x128xbf16>, vector<16x128xf32> -> vector<16x128xf32>
    %65 = arith.addf %63, %64 : vector<16x128xf32>
    %66 = vector.broadcast %14 : vector<1x128xf32> to vector<16x128xf32>
    %67 = arith.addf %65, %66 : vector<16x128xf32>
    %cst_51 = arith.constant 0.000000e+00 : f32
    %68 = vector.broadcast %cst_51 : f32 to vector<16x128xf32>
    %69 = arith.maximumf %67, %68 : vector<16x128xf32>
    %70 = arith.truncf %69 : vector<16x128xf32> to vector<16x128xbf16>
    %71 = arith.truncf %61 : vector<24x128xf32> to vector<24x128xbf16>
    %cst_52 = arith.constant dense<0.000000e+00> : vector<24x128xf32>
    %72 = tpu.matmul %71, %15, %cst_52 {dimension_numbers = #tpu.dot_dimension_numbers<[1], [0], [0], [1], [0, 0, 1, 1], [], []>} : vector<24x128xbf16>, vector<128x128xbf16>, vector<24x128xf32> -> vector<24x128xf32>
    %cst_53 = arith.constant dense<0.000000e+00> : vector<24x128xf32>
    %73 = tpu.matmul %3, %16, %cst_53 {dimension_numbers = #tpu.dot_dimension_numbers<[1], [0], [0], [1], [0, 0, 1, 1], [], []>} : vector<24x128xbf16>, vector<128x128xbf16>, vector<24x128xf32> -> vector<24x128xf32>
    %74 = arith.addf %72, %73 : vector<24x128xf32>
    %75 = vector.broadcast %17 : vector<1x128xf32> to vector<24x128xf32>
    %76 = arith.addf %74, %75 : vector<24x128xf32>
    %cst_54 = arith.constant 0.000000e+00 : f32
    %77 = vector.broadcast %cst_54 : f32 to vector<24x128xf32>
    %78 = arith.maximumf %76, %77 : vector<24x128xf32>
    %79 = arith.truncf %78 : vector<24x128xf32> to vector<24x128xbf16>
    %c0_55 = arith.constant 0 : index
    %c0_56 = arith.constant 0 : index
    %80 = vector.load %arg18[%c0_55, %c0_56] : memref<128x128xbf16, #tpu.memory_space<vmem>>, vector<128x128xbf16>
    %c0_57 = arith.constant 0 : index
    %c0_58 = arith.constant 0 : index
    %81 = vector.load %arg19[%c0_57, %c0_58] : memref<1x128xf32, #tpu.memory_space<vmem>>, vector<1x128xf32>
    %c0_59 = arith.constant 0 : index
    %c0_60 = arith.constant 0 : index
    %82 = vector.load %arg20[%c0_59, %c0_60] : memref<128x128xbf16, #tpu.memory_space<vmem>>, vector<128x128xbf16>
    %c0_61 = arith.constant 0 : index
    %c0_62 = arith.constant 0 : index
    %83 = vector.load %arg21[%c0_61, %c0_62] : memref<1x128xf32, #tpu.memory_space<vmem>>, vector<1x128xf32>
    %c0_63 = arith.constant 0 : index
    %c0_64 = arith.constant 0 : index
    %84 = vector.load %arg22[%c0_63, %c0_64] : memref<128x256xbf16, #tpu.memory_space<vmem>>, vector<128x256xbf16>
    %c0_65 = arith.constant 0 : index
    %c0_66 = arith.constant 0 : index
    %85 = vector.load %arg23[%c0_65, %c0_66] : memref<1x256xf32, #tpu.memory_space<vmem>>, vector<1x256xf32>
    %c0_67 = arith.constant 0 : index
    %c0_68 = arith.constant 0 : index
    %86 = vector.load %arg24[%c0_67, %c0_68] : memref<128x256xbf16, #tpu.memory_space<vmem>>, vector<128x256xbf16>
    %c0_69 = arith.constant 0 : index
    %c0_70 = arith.constant 0 : index
    %87 = vector.load %arg25[%c0_69, %c0_70] : memref<1x256xf32, #tpu.memory_space<vmem>>, vector<1x256xf32>
    %c0_71 = arith.constant 0 : index
    %c0_72 = arith.constant 0 : index
    %88 = vector.load %arg26[%c0_71, %c0_72] : memref<256x256xbf16, #tpu.memory_space<vmem>>, vector<256x256xbf16>
    %c0_73 = arith.constant 0 : index
    %c0_74 = arith.constant 0 : index
    %89 = vector.load %arg27[%c0_73, %c0_74] : memref<128x256xbf16, #tpu.memory_space<vmem>>, vector<128x256xbf16>
    %c0_75 = arith.constant 0 : index
    %c0_76 = arith.constant 0 : index
    %90 = vector.load %arg28[%c0_75, %c0_76] : memref<1x256xf32, #tpu.memory_space<vmem>>, vector<1x256xf32>
    %c0_77 = arith.constant 0 : index
    %c0_78 = arith.constant 0 : index
    %91 = vector.load %arg29[%c0_77, %c0_78] : memref<256x256xbf16, #tpu.memory_space<vmem>>, vector<256x256xbf16>
    %c0_79 = arith.constant 0 : index
    %c0_80 = arith.constant 0 : index
    %92 = vector.load %arg30[%c0_79, %c0_80] : memref<128x256xbf16, #tpu.memory_space<vmem>>, vector<128x256xbf16>
    %c0_81 = arith.constant 0 : index
    %c0_82 = arith.constant 0 : index
    %93 = vector.load %arg31[%c0_81, %c0_82] : memref<1x256xf32, #tpu.memory_space<vmem>>, vector<1x256xf32>
    %cst_83 = arith.constant dense<0.000000e+00> : vector<16x128xf32>
    %94 = tpu.matmul %70, %80, %cst_83 {dimension_numbers = #tpu.dot_dimension_numbers<[1], [0], [0], [1], [0, 0, 1, 1], [], []>} : vector<16x128xbf16>, vector<128x128xbf16>, vector<16x128xf32> -> vector<16x128xf32>
    %95 = arith.truncf %94 : vector<16x128xf32> to vector<16x128xbf16>
    %cst_84 = arith.constant dense<0.000000e+00> : vector<24x128xf32>
    %96 = tpu.matmul %1, %95, %cst_84 {dimension_numbers = #tpu.dot_dimension_numbers<[1], [0], [0], [1], [0, 0, 1, 1], [], []>} : vector<24x16xbf16>, vector<16x128xbf16>, vector<24x128xf32> -> vector<24x128xf32>
    %97 = vector.broadcast %81 : vector<1x128xf32> to vector<24x128xf32>
    %98 = arith.addf %96, %97 : vector<24x128xf32>
    %cst_85 = arith.constant 0.000000e+00 : f32
    %99 = vector.broadcast %cst_85 : f32 to vector<24x128xf32>
    %100 = arith.cmpf ogt, %98, %99 : vector<24x128xf32>
    %cst_86 = arith.constant 1.000000e-01 : f32
    %101 = vector.broadcast %cst_86 : f32 to vector<24x128xf32>
    %102 = arith.mulf %101, %98 : vector<24x128xf32>
    %103 = arith.select %100, %98, %102 : vector<24x128xi1>, vector<24x128xf32>
    %cst_87 = arith.constant dense<0.000000e+00> : vector<24x128xf32>
    %104 = tpu.matmul %79, %82, %cst_87 {dimension_numbers = #tpu.dot_dimension_numbers<[1], [0], [0], [1], [0, 0, 1, 1], [], []>} : vector<24x128xbf16>, vector<128x128xbf16>, vector<24x128xf32> -> vector<24x128xf32>
    %105 = arith.truncf %104 : vector<24x128xf32> to vector<24x128xbf16>
    %106 = arith.truncf %103 : vector<24x128xf32> to vector<24x128xbf16>
    %cst_88 = arith.constant dense<0.000000e+00> : vector<24x256xf32>
    %107 = tpu.matmul %106, %84, %cst_88 {dimension_numbers = #tpu.dot_dimension_numbers<[1], [0], [0], [1], [0, 0, 1, 1], [], []>} : vector<24x128xbf16>, vector<128x256xbf16>, vector<24x256xf32> -> vector<24x256xf32>
    %108 = arith.truncf %107 : vector<24x256xf32> to vector<24x256xbf16>
    %109 = tpu.concatenate %105, %108 in 1 : vector<24x128xbf16>, vector<24x256xbf16> -> vector<24x384xbf16>
    %cst_89 = arith.constant dense<0.000000e+00> : vector<16x384xf32>
    %110 = tpu.matmul %0, %109, %cst_89 {dimension_numbers = #tpu.dot_dimension_numbers<[1], [0], [0], [1], [0, 0, 1, 1], [], []>} : vector<16x24xbf16>, vector<24x384xbf16>, vector<16x384xf32> -> vector<16x384xf32>
    %111 = vector.extract_strided_slice %110 {offsets = [0, 0], sizes = [16, 128], strides = [1, 1]} : vector<16x384xf32> to vector<16x128xf32>
    %112 = vector.broadcast %83 : vector<1x128xf32> to vector<16x128xf32>
    %113 = arith.addf %111, %112 : vector<16x128xf32>
    %cst_90 = arith.constant 0.000000e+00 : f32
    %114 = vector.broadcast %cst_90 : f32 to vector<16x128xf32>
    %115 = arith.cmpf ogt, %113, %114 : vector<16x128xf32>
    %cst_91 = arith.constant 1.000000e-01 : f32
    %116 = vector.broadcast %cst_91 : f32 to vector<16x128xf32>
    %117 = arith.mulf %116, %113 : vector<16x128xf32>
    %118 = arith.select %115, %113, %117 : vector<16x128xi1>, vector<16x128xf32>
    %119 = vector.extract_strided_slice %110 {offsets = [0, 128], sizes = [16, 256], strides = [1, 1]} : vector<16x384xf32> to vector<16x256xf32>
    %120 = vector.broadcast %85 : vector<1x256xf32> to vector<16x256xf32>
    %121 = arith.addf %119, %120 : vector<16x256xf32>
    %cst_92 = arith.constant 0.000000e+00 : f32
    %122 = vector.broadcast %cst_92 : f32 to vector<16x256xf32>
    %123 = arith.cmpf ogt, %121, %122 : vector<16x256xf32>
    %cst_93 = arith.constant 1.000000e-01 : f32
    %124 = vector.broadcast %cst_93 : f32 to vector<16x256xf32>
    %125 = arith.mulf %124, %121 : vector<16x256xf32>
    %126 = arith.select %123, %121, %125 : vector<16x256xi1>, vector<16x256xf32>
    %127 = arith.truncf %126 : vector<16x256xf32> to vector<16x256xbf16>
    %cst_94 = arith.constant dense<0.000000e+00> : vector<16x256xf32>
    %128 = tpu.matmul %127, %88, %cst_94 {dimension_numbers = #tpu.dot_dimension_numbers<[1], [0], [0], [1], [0, 0, 1, 1], [], []>} : vector<16x256xbf16>, vector<256x256xbf16>, vector<16x256xf32> -> vector<16x256xf32>
    %cst_95 = arith.constant dense<0.000000e+00> : vector<16x256xf32>
    %129 = tpu.matmul %70, %89, %cst_95 {dimension_numbers = #tpu.dot_dimension_numbers<[1], [0], [0], [1], [0, 0, 1, 1], [], []>} : vector<16x128xbf16>, vector<128x256xbf16>, vector<16x256xf32> -> vector<16x256xf32>
    %130 = arith.addf %128, %129 : vector<16x256xf32>
    %131 = vector.broadcast %90 : vector<1x256xf32> to vector<16x256xf32>
    %132 = arith.addf %130, %131 : vector<16x256xf32>
    %133 = arith.truncf %118 : vector<16x128xf32> to vector<16x128xbf16>
    %cst_96 = arith.constant dense<0.000000e+00> : vector<16x256xf32>
    %134 = tpu.matmul %133, %86, %cst_96 {dimension_numbers = #tpu.dot_dimension_numbers<[1], [0], [0], [1], [0, 0, 1, 1], [], []>} : vector<16x128xbf16>, vector<128x256xbf16>, vector<16x256xf32> -> vector<16x256xf32>
    %135 = arith.truncf %134 : vector<16x256xf32> to vector<16x256xbf16>
    %cst_97 = arith.constant dense<0.000000e+00> : vector<24x256xf32>
    %136 = tpu.matmul %1, %135, %cst_97 {dimension_numbers = #tpu.dot_dimension_numbers<[1], [0], [0], [1], [0, 0, 1, 1], [], []>} : vector<24x16xbf16>, vector<16x256xbf16>, vector<24x256xf32> -> vector<24x256xf32>
    %137 = vector.broadcast %87 : vector<1x256xf32> to vector<24x256xf32>
    %138 = arith.addf %136, %137 : vector<24x256xf32>
    %cst_98 = arith.constant 0.000000e+00 : f32
    %139 = vector.broadcast %cst_98 : f32 to vector<24x256xf32>
    %140 = arith.cmpf ogt, %138, %139 : vector<24x256xf32>
    %cst_99 = arith.constant 1.000000e-01 : f32
    %141 = vector.broadcast %cst_99 : f32 to vector<24x256xf32>
    %142 = arith.mulf %141, %138 : vector<24x256xf32>
    %143 = arith.select %140, %138, %142 : vector<24x256xi1>, vector<24x256xf32>
    %144 = arith.truncf %143 : vector<24x256xf32> to vector<24x256xbf16>
    %cst_100 = arith.constant dense<0.000000e+00> : vector<24x256xf32>
    %145 = tpu.matmul %144, %91, %cst_100 {dimension_numbers = #tpu.dot_dimension_numbers<[1], [0], [0], [1], [0, 0, 1, 1], [], []>} : vector<24x256xbf16>, vector<256x256xbf16>, vector<24x256xf32> -> vector<24x256xf32>
    %cst_101 = arith.constant dense<0.000000e+00> : vector<24x256xf32>
    %146 = tpu.matmul %79, %92, %cst_101 {dimension_numbers = #tpu.dot_dimension_numbers<[1], [0], [0], [1], [0, 0, 1, 1], [], []>} : vector<24x128xbf16>, vector<128x256xbf16>, vector<24x256xf32> -> vector<24x256xf32>
    %147 = arith.addf %145, %146 : vector<24x256xf32>
    %148 = vector.broadcast %93 : vector<1x256xf32> to vector<24x256xf32>
    %149 = arith.addf %147, %148 : vector<24x256xf32>
    %150 = vector.extract_strided_slice %132 {offsets = [0, 0], sizes = [16, 128], strides = [1, 1]} : vector<16x256xf32> to vector<16x128xf32>
    %151 = vector.extract_strided_slice %132 {offsets = [0, 128], sizes = [16, 128], strides = [1, 1]} : vector<16x256xf32> to vector<16x128xf32>
    %152 = vector.extract_strided_slice %149 {offsets = [0, 0], sizes = [24, 128], strides = [1, 1]} : vector<24x256xf32> to vector<24x128xf32>
    %153 = vector.extract_strided_slice %149 {offsets = [0, 128], sizes = [24, 128], strides = [1, 1]} : vector<24x256xf32> to vector<24x128xf32>
    %c0_102 = arith.constant 0 : index
    %c0_103 = arith.constant 0 : index
    %154 = vector.load %arg32[%c0_102, %c0_103] : memref<16x128xf32, #tpu.memory_space<vmem>>, vector<16x128xf32>
    tpu.vector_store %arg32[%c0_102, %c0_103], %150 {strides = array<i32>} : memref<16x128xf32, #tpu.memory_space<vmem>>, vector<16x128xf32>,
    %c0_104 = arith.constant 0 : index
    %c0_105 = arith.constant 0 : index
    %155 = vector.load %arg33[%c0_104, %c0_105] : memref<24x128xf32, #tpu.memory_space<vmem>>, vector<24x128xf32>
    tpu.vector_store %arg33[%c0_104, %c0_105], %152 {strides = array<i32>} : memref<24x128xf32, #tpu.memory_space<vmem>>, vector<24x128xf32>,
    %156 = tpu.iota {dimensions = array<i32: 0>} : vector<16x128xi32>
    %c16_i32 = arith.constant 16 : i32
    %157 = vector.broadcast %c16_i32 : i32 to vector<16x128xi32>
    %158 = arith.cmpi slt, %156, %157 : vector<16x128xi32>
    %159 = tpu.iota {dimensions = array<i32: 1>} : vector<16x128xi32>
    %c32_i32 = arith.constant 32 : i32
    %160 = vector.broadcast %c32_i32 : i32 to vector<16x128xi32>
    %161 = arith.cmpi slt, %159, %160 : vector<16x128xi32>
    %162 = arith.andi %158, %161 : vector<16x128xi1>
    %cst_106 = arith.constant 0.000000e+00 : f32
    %163 = vector.broadcast %cst_106 : f32 to vector<16x128xf32>
    %164 = arith.maximumf %151, %163 : vector<16x128xf32>
    %165 = math.absf %151 : vector<16x128xf32>
    %cst_107 = arith.constant 0.000000e+00 : f32
    %166 = vector.broadcast %cst_107 : f32 to vector<16x128xf32>
    %167 = arith.subf %166, %165 : vector<16x128xf32>
    %168 = math.exp %167 : vector<16x128xf32>
    %cst_108 = arith.constant 1.000000e+00 : f32
    %169 = vector.broadcast %cst_108 : f32 to vector<16x128xf32>
    %170 = arith.addf %169, %168 : vector<16x128xf32>
    %171 = math.log %170 : vector<16x128xf32>
    %172 = arith.addf %164, %171 : vector<16x128xf32>
    %cst_109 = arith.constant 0.899999976 : f32
    %173 = vector.broadcast %cst_109 : f32 to vector<16x128xf32>
    %174 = arith.mulf %173, %172 : vector<16x128xf32>
    %cst_110 = arith.constant 1.000000e-01 : f32
    %175 = vector.broadcast %cst_110 : f32 to vector<16x128xf32>
    %176 = arith.addf %175, %174 : vector<16x128xf32>
    %cst_111 = arith.constant 1.28193557 : f32
    %177 = vector.broadcast %cst_111 : f32 to vector<16x128xf32>
    %178 = arith.subf %177, %176 : vector<16x128xf32>
    %cst_112 = arith.constant 2.000000e+00 : f32
    %179 = vector.broadcast %cst_112 : f32 to vector<16x128xf32>
    %180 = arith.mulf %179, %176 : vector<16x128xf32>
    %181 = math.exp %180 : vector<16x128xf32>
    %182 = arith.mulf %150, %150 : vector<16x128xf32>
    %183 = arith.addf %181, %182 : vector<16x128xf32>
    %cst_113 = arith.constant 0.0385030359 : f32
    %184 = vector.broadcast %cst_113 : f32 to vector<16x128xf32>
    %185 = arith.mulf %183, %184 : vector<16x128xf32>
    %186 = arith.addf %178, %185 : vector<16x128xf32>
    %cst_114 = arith.constant 5.000000e-01 : f32
    %187 = vector.broadcast %cst_114 : f32 to vector<16x128xf32>
    %188 = arith.subf %186, %187 : vector<16x128xf32>
    %cst_115 = arith.constant 0.000000e+00 : f32
    %189 = vector.broadcast %cst_115 : f32 to vector<16x128xf32>
    %190 = arith.select %162, %188, %189 : vector<16x128xi1>, vector<16x128xf32>
    %191 = vector.shape_cast %190 : vector<16x128xf32> to vector<1x16x128xf32>
    %cst_116 = arith.constant dense<0.000000e+00> : vector<1xf32>
    %192 = vector.multi_reduction <add>, %191, %cst_116 [1, 2] : vector<1x16x128xf32> to vector<1xf32>
    %193 = vector.shape_cast %192 : vector<1xf32> to vector<1x1x1xf32>
    %194 = vector.extract %193[0, 0, 0] : f32 from vector<1x1x1xf32>
    %cst_117 = arith.constant 6.250000e-02 : f32
    %195 = arith.mulf %194, %cst_117 : f32
    %196 = tpu.iota {dimensions = array<i32: 0>} : vector<24x128xi32>
    %c24_i32 = arith.constant 24 : i32
    %197 = vector.broadcast %c24_i32 : i32 to vector<24x128xi32>
    %198 = arith.cmpi slt, %196, %197 : vector<24x128xi32>
    %199 = tpu.iota {dimensions = array<i32: 1>} : vector<24x128xi32>
    %c32_i32_118 = arith.constant 32 : i32
    %200 = vector.broadcast %c32_i32_118 : i32 to vector<24x128xi32>
    %201 = arith.cmpi slt, %199, %200 : vector<24x128xi32>
    %202 = arith.andi %198, %201 : vector<24x128xi1>
    %cst_119 = arith.constant 0.000000e+00 : f32
    %203 = vector.broadcast %cst_119 : f32 to vector<24x128xf32>
    %204 = arith.maximumf %153, %203 : vector<24x128xf32>
    %205 = math.absf %153 : vector<24x128xf32>
    %cst_120 = arith.constant 0.000000e+00 : f32
    %206 = vector.broadcast %cst_120 : f32 to vector<24x128xf32>
    %207 = arith.subf %206, %205 : vector<24x128xf32>
    %208 = math.exp %207 : vector<24x128xf32>
    %cst_121 = arith.constant 1.000000e+00 : f32
    %209 = vector.broadcast %cst_121 : f32 to vector<24x128xf32>
    %210 = arith.addf %209, %208 : vector<24x128xf32>
    %211 = math.log %210 : vector<24x128xf32>
    %212 = arith.addf %204, %211 : vector<24x128xf32>
    %cst_122 = arith.constant 0.899999976 : f32
    %213 = vector.broadcast %cst_122 : f32 to vector<24x128xf32>
    %214 = arith.mulf %213, %212 : vector<24x128xf32>
    %cst_123 = arith.constant 1.000000e-01 : f32
    %215 = vector.broadcast %cst_123 : f32 to vector<24x128xf32>
    %216 = arith.addf %215, %214 : vector<24x128xf32>
    %cst_124 = arith.constant 1.28193557 : f32
    %217 = vector.broadcast %cst_124 : f32 to vector<24x128xf32>
    %218 = arith.subf %217, %216 : vector<24x128xf32>
    %cst_125 = arith.constant 2.000000e+00 : f32
    %219 = vector.broadcast %cst_125 : f32 to vector<24x128xf32>
    %220 = arith.mulf %219, %216 : vector<24x128xf32>
    %221 = math.exp %220 : vector<24x128xf32>
    %222 = arith.mulf %152, %152 : vector<24x128xf32>
    %223 = arith.addf %221, %222 : vector<24x128xf32>
    %cst_126 = arith.constant 0.0385030359 : f32
    %224 = vector.broadcast %cst_126 : f32 to vector<24x128xf32>
    %225 = arith.mulf %223, %224 : vector<24x128xf32>
    %226 = arith.addf %218, %225 : vector<24x128xf32>
    %cst_127 = arith.constant 5.000000e-01 : f32
    %227 = vector.broadcast %cst_127 : f32 to vector<24x128xf32>
    %228 = arith.subf %226, %227 : vector<24x128xf32>
    %cst_128 = arith.constant 0.000000e+00 : f32
    %229 = vector.broadcast %cst_128 : f32 to vector<24x128xf32>
    %230 = arith.select %202, %228, %229 : vector<24x128xi1>, vector<24x128xf32>
    %231 = vector.shape_cast %230 : vector<24x128xf32> to vector<1x24x128xf32>
    %cst_129 = arith.constant dense<0.000000e+00> : vector<1xf32>
    %232 = vector.multi_reduction <add>, %231, %cst_129 [1, 2] : vector<1x24x128xf32> to vector<1xf32>
    %233 = vector.shape_cast %232 : vector<1xf32> to vector<1x1x1xf32>
    %234 = vector.extract %233[0, 0, 0] : f32 from vector<1x1x1xf32>
    %cst_130 = arith.constant 0.0416666679 : f32
    %235 = arith.mulf %234, %cst_130 : f32
    %236 = arith.addf %195, %235 : f32
    %c0_131 = arith.constant 0 : index
    %c0_132 = arith.constant 0 : index
    %237 = memref.load %arg34[%c0_131, %c0_132] : memref<1x1xf32, #tpu.memory_space<smem>>
    memref.store %236, %arg34[%c0_131, %c0_132] : memref<1x1xf32, #tpu.memory_space<smem>>
    return
  }
}

</mosaic_0001>

<bundles_post_ra>
// kernel: _lambda_.1
= control target key start
LH: loop header
LB: loop body
LE: loop exit
PB: predicated region body
PF: predicated region fallthrough
CT: control target
= control target key end

     0   :  { %s5005_s6 = smov 1   ;;  %s5006_s10 = smov 2   ;;  %s5568_s0 = inlined_call_operand.smem [shape: u32[35], index: -1, kind: input, shape index: {}] }
   0x1   :  { %s5082_s5 = sld [smem:[%s5568_s0]]   ;;  %s5007_s14 = smov 3  }
   0x2   :  { %s5087_s9 = sld [smem:[%s5568_s0 + %s5005_s6]]   ;;  %s5008_s18 = smov 4  }
   0x3   :  { %s5092_s13 = sld [smem:[%s5568_s0 + %s5006_s10]]   ;;  %s5009_s22 = smov 5  }
   0x4   :  { %s5097_s17 = sld [smem:[%s5568_s0 + %s5007_s14]]   ;;  %s5010_s26 = smov 6  }
   0x5   :  { %s5102_s21 = sld [smem:[%s5568_s0 + %s5008_s18]]   ;;  %s5011_s30 = smov 7  }
   0x6   :  { %s5107_s25 = sld [smem:[%s5568_s0 + %s5009_s22]]   ;;  %s5012_s4 = smov 8  }
   0x7   :  { %5573 = sst [smem:[#allocation62_spill]] %s5082_s5  ;;  %s5013_s10 = smov 9  }
   0x8   :  { %5574 = sst [smem:[#allocation63_spill]] %s5087_s9  ;;  %s5014_s15 = smov 10  }
   0x9   :  { %5575 = sst [smem:[#allocation64_spill]] %s5092_s13  ;;  %s5015_s20 = smov 11  }
   0xa   :  { %5576 = sst [smem:[#allocation65_spill]] %s5097_s17  ;;  %s5017_s1 = smov 13  }
   0xb   :  { %5577 = sst [smem:[#allocation66_spill]] %s5102_s21  ;;  %s5018_s7 = smov 14  }
   0xc   :  { %5578 = sst [smem:[#allocation67_spill]] %s5107_s25  ;;  %s5020_s22 = smov 16  }
   0xd   :  { %s5112_s29 = sld [smem:[%s5568_s0 + %s5010_s26]]   ;;  %s5016_s26 = smov 12  }
   0xe   :  { %s5117_s3 = sld [smem:[%s5568_s0 + %s5011_s30]]   ;;  %s5021_s28 = smov 17  }
   0xf   :  { %s5122_s8 = sld [smem:[%s5568_s0 + %s5012_s4]]  }
  0x10   :  { %s5127_s14 = sld [smem:[%s5568_s0 + %s5013_s10]]  }
  0x11   :  { %s5132_s19 = sld [smem:[%s5568_s0 + %s5014_s15]]   ;;  %s5019_s15 = smov 15  }
  0x12   :  { %s5137_s24 = sld [smem:[%s5568_s0 + %s5015_s20]]  }
  0x13   :  { %s5142_s30 = sld [smem:[%s5568_s0 + %s5016_s26]]  }
  0x14   :  { %s5147_s6 = sld [smem:[%s5568_s0 + %s5017_s1]]  }
  0x15   :  { %s5152_s12 = sld [smem:[%s5568_s0 + %s5018_s7]]   ;;  %s5022_s7 = smov 18  }
  0x16   :  { %s5157_s20 = sld [smem:[%s5568_s0 + %s5019_s15]]   ;;  %s5023_s15 = smov 19  }
  0x17   :  { %5579 = sst [smem:[#allocation68_spill]] %s5132_s19 }
  0x18   :  { %s5162_s27 = sld [smem:[%s5568_s0 + %s5020_s22]]   ;;  %s5024_s22 = smov 20  }
  0x19   :  { %5580 = sst [smem:[#allocation69_spill]] %s5142_s30 }
  0x1a   :  { %s5167_s4 = sld [smem:[%s5568_s0 + %s5021_s28]]   ;;  %s5025_s28 = smov 21  }
  0x1b   :  { %5581 = sst [smem:[#allocation70_spill]] %s5152_s12 }
  0x1c   :  { %s5172_s13 = sld [smem:[%s5568_s0 + %s5022_s7]]   ;;  %s5026_s7 = smov 22  }
  0x1d   :  { %s5177_s25 = sld [smem:[%s5568_s0 + %s5023_s15]]   ;;  %s5027_s15 = smov 23  }
  0x1e   :  { %5582 = sst [smem:[#allocation71_spill]] %s5162_s27 }
  0x1f   :  { %s5182_s9 = sld [smem:[%s5568_s0 + %s5024_s22]]   ;;  %s5028_s22 = smov 24  }
  0x20   :  { %s5187_s17 = sld [smem:[%s5568_s0 + %s5025_s28]]   ;;  %s5029_s28 = smov 25  }
  0x21   :  { %s5192_s5 = sld [smem:[%s5568_s0 + %s5026_s7]]   ;;  %s5030_s7 = smov 26  }
  0x22   :  { %5583 = sst [smem:[#allocation72_spill]] %s5172_s13 }
  0x23   :  { %s5197_s21 = sld [smem:[%s5568_s0 + %s5027_s15]]   ;;  %s5031_s15 = smov 27  }
  0x24   :  { %s5207_s13 = sld [smem:[%s5568_s0 + %s5029_s28]]   ;;  %s5033_s28 = smov 29  }
  0x25   :  { %5584 = sst [smem:[#allocation73_spill]] %s5182_s9 }
  0x26   :  { %s5202_s9 = sld [smem:[%s5568_s0 + %s5028_s22]]   ;;  %s5032_s22 = smov 28  }
  0x27   :  { %5585 = sst [smem:[#allocation74_spill]] %s5192_s5 }
  0x28   :  { %s5212_s5 = sld [smem:[%s5568_s0 + %s5030_s7]]   ;;  %s5034_s7 = smov 30  }
  0x29   :  { %5586 = sst [smem:[#allocation75_spill]] %s5197_s21 }
  0x2a   :  { %5587 = sst [smem:[#allocation76_spill]] %s5207_s13 }
  0x2b   :  { %s5217_s21 = sld [smem:[%s5568_s0 + %s5031_s15]]   ;;  %s5035_s15 = smov 31  }
  0x2c   :  { %s5222_s27 = sld [smem:[%s5568_s0 + %s5032_s22]]   ;;  %s5036_s22 = smov 32  }
  0x2d   :  { %s5227_s13 = sld [smem:[%s5568_s0 + %s5033_s28]]   ;;  %s5037_s28 = smov 33  }
  0x2e   :  { %s5232_s12 = sld [smem:[%s5568_s0 + %s5034_s7]]   ;;  %s5038_s7 = smov 34  }
  0x2f   :  { %s5242_s30 = sld [smem:[%s5568_s0 + %s5036_s22]]  }
  0x30   :  { %s5252_s19 = sld [smem:[%s5568_s0 + %s5038_s7]]  }
  0x31   :  { %5588 = sst [smem:[#allocation77_spill]] %s5217_s21 }
  0x32   :  { %s5237_s21 = sld [smem:[%s5568_s0 + %s5035_s15]]  }
  0x33   :  { %5589 = sst [smem:[#allocation78_spill]] %s5227_s13 }
  0x34   :  { %s5247_s13 = sld [smem:[%s5568_s0 + %s5037_s28]]  }
  0x35   :  { %75 = vsyncpa [#allocation3], 0 }
  0x36   :  { %76 = vsyncpa [#allocation7], 0 }
  0x37   :  { %77 = vsyncpa [#allocation10], 0 }
  0x38   :  { %78 = vsyncpa [#allocation13], 0 }
  0x39   :  { %79 = vsyncpa [#allocation16], 0 }
  0x3a   :  { %80 = vsyncpa [#allocation19], 0 }
  0x3b   :  { %81 = vsyncpa [#allocation22], 0 }
  0x3c   :  { %82 = vsyncpa [#allocation25], 0 }
  0x3d   :  { %83 = vsyncpa [#allocation28], 0 }
  0x3e   :  { %84 = vsyncpa [#allocation31], 0 }
  0x3f   :  { %85 = vsyncpa [#allocation34], 0 }
  0x40   :  { %86 = vsyncpa [#allocation37], 0 }
  0x41   :  { %87 = vsyncpa [#allocation40], 0 }
  0x42   :  { %88 = vsyncpa [#allocation4], 0 }
  0x43   :  { %89 = vsyncpa [#allocation44], 0 }
  0x44   :  { %90 = vsyncpa [#allocation5], 0  ;;  %s5039_s15 = smov [#allocation6]   ;;  %s5040_s0 = smov [#allocation9]  }
  0x45   :  { %s121_s16 = sshll.u32 %s5039_s15, 4  ;;  %s143_s18 = sshll.u32 %s5040_s0, 4  ;;  %s122_s16 = int_to_ptr.vmem [resolvable:$true] %s121_s16  ;;  %s144_s18 = int_to_ptr.vmem [resolvable:$true] %s143_s18 }
  0x46   :  { %s4433_s22 = scalar_lea.vmem %s122_s16, 16  ;;  %s4437_s23 = scalar_lea.vmem %s122_s16, 32 }
  0x47   :  { %p4434_p0 = scmp.ne.s32.totalorder %s122_s16, %s4433_s22  ;;  %p4438_p1 = scmp.lt.s32.totalorder %s122_s16, %s122_s16 }
  0x48   :  { %p4439_p2 = scmp.lt.s32.totalorder %s4437_s23, %s4433_s22 }
  0x4a   :  { %p4440_p3 = por %p4439_p2, %p4438_p1 }
  0x4c   :  { %p4441_p4 = pnand %p4440_p3, %p4434_p0 }
  0x4e   :  { %4444 = shalt.err (!%p4441_p4)
}
  0x4f   :  { %124 = dma.hbm_to_vmem [thread:$0]  %s5117_s3, 16, %s122_s16, [#allocation7]  }
  0x50   :  { %s4453_s26 = scalar_lea.vmem %s144_s18, 16  ;;  %s4457_s28 = scalar_lea.vmem %s144_s18, 32 }
  0x51   :  { %p4454_p5 = scmp.ne.s32.totalorder %s144_s18, %s4453_s26  ;;  %p4458_p6 = scmp.lt.s32.totalorder %s144_s18, %s144_s18 }
  0x52   :  { %p4459_p7 = scmp.lt.s32.totalorder %s4457_s28, %s4453_s26 }
  0x54   :  { %p4460_p8 = por %p4459_p7, %p4458_p6 }
  0x56   :  { %p4461_p9 = pnand %p4460_p8, %p4454_p5 }
  0x58   :  { %4464 = shalt.err (!%p4461_p9)
}
  0x59   :  { %146 = dma.hbm_to_vmem [thread:$0]  %s5127_s14, 16, %s144_s18, [#allocation10]  }
  0x5a   :  { %s5041_s1 = smov [#allocation12]  }
  0x5b   :  { %s165_s2 = sshll.u32 %s5041_s1, 4  ;;  %s166_s2 = int_to_ptr.vmem [resolvable:$true] %s165_s2 }
  0x5c   :  { %s4473_s7 = scalar_lea.vmem %s166_s2, 16  ;;  %s4477_s10 = scalar_lea.vmem %s166_s2, 32 }
  0x5d   :  { %p4474_p10 = scmp.ne.s32.totalorder %s166_s2, %s4473_s7  ;;  %p4478_p11 = scmp.lt.s32.totalorder %s166_s2, %s166_s2 }
  0x5e   :  { %p4479_p12 = scmp.lt.s32.totalorder %s4477_s10, %s4473_s7 }
  0x60   :  { %p4480_p13 = por %p4479_p12, %p4478_p11 }
  0x62   :  { %p4481_p0 = pnand %p4480_p13, %p4474_p10 }
  0x64   :  { %4484 = shalt.err (!%p4481_p0)
}
  0x65   :  { %168 = dma.hbm_to_vmem [thread:$0]  %s5137_s24, 16, %s166_s2, [#allocation13]  }
  0x66   :  { %s5042_s3 = smov [#allocation15]   ;;  %s5043_s15 = smov [#allocation18]  }
  0x67   :  { %s186_s11 = sshll.u32 %s5042_s3, 4  ;;  %s208_s16 = sshll.u32 %s5043_s15, 4  ;;  %s187_s11 = int_to_ptr.vmem [resolvable:$true] %s186_s11  ;;  %s209_s16 = int_to_ptr.vmem [resolvable:$true] %s208_s16 }
  0x68   :  { %s4493_s0 = scalar_lea.vmem %s187_s11, 1024  ;;  %p4498_p2 = scmp.lt.s32.totalorder %s187_s11, %s187_s11 }
  0x69   :  { %p4494_p1 = scmp.ne.s32.totalorder %s187_s11, %s4493_s0  ;;  %p4499_p3 = scmp.lt.s32.totalorder %s4493_s0, %s4493_s0 }
  0x6b   :  { %p4500_p4 = por %p4499_p3, %p4498_p2 }
  0x6d   :  { %p4501_p5 = pnand %p4500_p4, %p4494_p1 }
  0x6f   :  { %4504 = shalt.err (!%p4501_p5)
}
  0x70   :  { %s5044_s14 = smov 64   ;;  %s5045_s18 = smov 4  }
  0x71   :  { %192 = dma.hbm_to_vmem [thread:$0]  %s5147_s6, 1024, %s187_s11, [#allocation16], %s5044_s14, %s5044_s14, %s5045_s18  }
  0x72   :  { %s4513_s24 = scalar_lea.vmem %s209_s16, 1024  ;;  %p4518_p7 = scmp.lt.s32.totalorder %s209_s16, %s209_s16 }
  0x73   :  { %p4514_p6 = scmp.ne.s32.totalorder %s209_s16, %s4513_s24  ;;  %p4519_p8 = scmp.lt.s32.totalorder %s4513_s24, %s4513_s24 }
  0x75   :  { %p4520_p9 = por %p4519_p8, %p4518_p7 }
  0x77   :  { %p4521_p10 = pnand %p4520_p9, %p4514_p6 }
  0x79   :  { %4524 = shalt.err (!%p4521_p10)
}
  0x7a   :  { %214 = dma.hbm_to_vmem [thread:$0]  %s5157_s20, 1024, %s209_s16, [#allocation19], %s5044_s14, %s5044_s14, %s5045_s18  }
  0x7b   :  { %s5046_s22 = smov [#allocation21]   ;;  %s5047_s26 = smov [#allocation24]  }
  0x7c   :  { %s233_s23 = sshll.u32 %s5046_s22, 4  ;;  %s255_s28 = sshll.u32 %s5047_s26, 4  ;;  %s234_s23 = int_to_ptr.vmem [resolvable:$true] %s233_s23  ;;  %s256_s28 = int_to_ptr.vmem [resolvable:$true] %s255_s28 }
  0x7d   :  { %s4533_s1 = scalar_lea.vmem %s234_s23, 16  ;;  %s4537_s6 = scalar_lea.vmem %s234_s23, 32 }
  0x7e   :  { %p4534_p11 = scmp.ne.s32.totalorder %s234_s23, %s4533_s1  ;;  %p4538_p12 = scmp.lt.s32.totalorder %s234_s23, %s234_s23 }
  0x7f   :  { %p4539_p13 = scmp.lt.s32.totalorder %s4537_s6, %s4533_s1 }
  0x81   :  { %p4540_p0 = por %p4539_p13, %p4538_p12 }
  0x83   :  { %p4541_p1 = pnand %p4540_p0, %p4534_p11 }
  0x85   :  { %4544 = shalt.err (!%p4541_p1)
}
  0x86   :  { %236 = dma.hbm_to_vmem [thread:$0]  %s5167_s4, 16, %s234_s23, [#allocation22]  }
  0x87   :  { %s4553_s2 = scalar_lea.vmem %s256_s28, 16  ;;  %s4557_s7 = scalar_lea.vmem %s256_s28, 32 }
  0x88   :  { %p4554_p2 = scmp.ne.s32.totalorder %s256_s28, %s4553_s2  ;;  %p4558_p3 = scmp.lt.s32.totalorder %s256_s28, %s256_s28 }
  0x89   :  { %p4559_p4 = scmp.lt.s32.totalorder %s4557_s7, %s4553_s2 }
  0x8b   :  { %p4560_p5 = por %p4559_p4, %p4558_p3 }
  0x8d   :  { %p4561_p6 = pnand %p4560_p5, %p4554_p2 }
  0x8f   :  { %4564 = shalt.err (!%p4561_p6)
}
  0x90   :  { %258 = dma.hbm_to_vmem [thread:$0]  %s5177_s25, 16, %s256_s28, [#allocation25]  }
  0x91   :  { %s5048_s20 = smov [#allocation27]   ;;  %s5049_s3 = smov [#allocation30]  }
  0x92   :  { %s277_s10 = sshll.u32 %s5048_s20, 4  ;;  %s298_s11 = sshll.u32 %s5049_s3, 4  ;;  %s278_s10 = int_to_ptr.vmem [resolvable:$true] %s277_s10  ;;  %s299_s11 = int_to_ptr.vmem [resolvable:$true] %s298_s11 }
  0x93   :  { %s4573_s15 = scalar_lea.vmem %s278_s10, 16  ;;  %s4577_s16 = scalar_lea.vmem %s278_s10, 32 }
  0x94   :  { %p4574_p7 = scmp.ne.s32.totalorder %s278_s10, %s4573_s15  ;;  %p4578_p8 = scmp.lt.s32.totalorder %s278_s10, %s278_s10 }
  0x95   :  { %p4579_p9 = scmp.lt.s32.totalorder %s4577_s16, %s4573_s15 }
  0x97   :  { %p4580_p10 = por %p4579_p9, %p4578_p8 }
  0x99   :  { %p4581_p11 = pnand %p4580_p10, %p4574_p7 }
  0x9b   :  { %4584 = shalt.err (!%p4581_p11)
}
  0x9c   :  { %280 = dma.hbm_to_vmem [thread:$0]  %s5187_s17, 16, %s278_s10, [#allocation28]  }
  0x9d   :  { %s4593_s4 = scalar_lea.vmem %s299_s11, 2048  ;;  %p4598_p13 = scmp.lt.s32.totalorder %s299_s11, %s299_s11 }
  0x9e   :  { %p4594_p12 = scmp.ne.s32.totalorder %s299_s11, %s4593_s4  ;;  %p4599_p0 = scmp.lt.s32.totalorder %s4593_s4, %s4593_s4 }
  0xa0   :  { %p4600_p1 = por %p4599_p0, %p4598_p13 }
  0xa2   :  { %p4601_p2 = pnand %p4600_p1, %p4594_p12 }
  0xa4   :  { %4604 = shalt.err (!%p4601_p2)
}
  0xa5   :  { %s5050_s25 = smov 128   ;;  %s5051_s0 = smov 8  }
  0xa6   :  { %304 = dma.hbm_to_vmem [thread:$0]  %s5202_s9, 2048, %s299_s11, [#allocation31], %s5050_s25, %s5050_s25, %s5051_s0  }
  0xa7   :  { %s5052_s24 = smov [#allocation33]   ;;  %s5053_s23 = smov [#allocation36]  }
  0xa8   :  { %s320_s22 = sshll.u32 %s5052_s24, 4  ;;  %s345_s17 = sshll.u32 %s5053_s23, 4  ;;  %s321_s22 = int_to_ptr.vmem [resolvable:$true] %s320_s22  ;;  %s346_s17 = int_to_ptr.vmem [resolvable:$true] %s345_s17 }
  0xa9   :  { %s4613_s26 = scalar_lea.vmem %s321_s22, 4096  ;;  %p4618_p4 = scmp.lt.s32.totalorder %s321_s22, %s321_s22 }
  0xaa   :  { %p4614_p3 = scmp.ne.s32.totalorder %s321_s22, %s4613_s26  ;;  %p4619_p5 = scmp.lt.s32.totalorder %s4613_s26, %s4613_s26 }
  0xac   :  { %p4620_p6 = por %p4619_p5, %p4618_p4 }
  0xae   :  { %p4621_p7 = pnand %p4620_p6, %p4614_p3 }
  0xb0   :  { %4624 = shalt.err (!%p4621_p7)
}
  0xb1   :  { %326 = dma.hbm_to_vmem [thread:$0]  %s5212_s5, 4096, %s321_s22, [#allocation34], %s5050_s25, %s5050_s25, %s5051_s0  }
  0xb2   :  { %s4633_s28 = scalar_lea.vmem %s346_s17, 32  ;;  %p4638_p9 = scmp.lt.s32.totalorder %s346_s17, %s346_s17 }
  0xb3   :  { %p4634_p8 = scmp.ne.s32.totalorder %s346_s17, %s4633_s28  ;;  %p4639_p10 = scmp.lt.s32.totalorder %s4633_s28, %s4633_s28 }
  0xb5   :  { %p4640_p11 = por %p4639_p10, %p4638_p9 }
  0xb7   :  { %p4641_p12 = pnand %p4640_p11, %p4634_p8 }
  0xb9   :  { %4644 = shalt.err (!%p4641_p12)
}
  0xba   :  { %348 = dma.hbm_to_vmem [thread:$0]  %s5222_s27, 32, %s346_s17, [#allocation37]  }
  0xbb   :  { %s5054_s9 = smov [#allocation39]   ;;  %s5055_s6 = smov [#allocation2]  }
  0xbc   :  { %s366_s1 = sshll.u32 %s5054_s9, 4  ;;  %s108_s2 = sshll.u32 %s5055_s6, 4  ;;  %s367_s1 = int_to_ptr.vmem [resolvable:$true] %s366_s1  ;;  %s109_s2 = int_to_ptr.vmem [resolvable:$true] %s108_s2 }
  0xbd   :  { %s4653_s7 = scalar_lea.vmem %s367_s1, 2048  ;;  %p4658_p0 = scmp.lt.s32.totalorder %s367_s1, %s367_s1 }
  0xbe   :  { %p4654_p13 = scmp.ne.s32.totalorder %s367_s1, %s4653_s7  ;;  %p4659_p1 = scmp.lt.s32.totalorder %s4653_s7, %s4653_s7 }
  0xc0   :  { %p4660_p2 = por %p4659_p1, %p4658_p0 }
  0xc2   :  { %p4661_p3 = pnand %p4660_p2, %p4654_p13 }
  0xc4   :  { %4664 = shalt.err (!%p4661_p3)
}
  0xc5   :  { %372 = dma.hbm_to_vmem [thread:$0]  %s5232_s12, 2048, %s367_s1, [#allocation40], %s5050_s25, %s5050_s25, %s5051_s0  }
  0xc6   :  { %s4673_s5 = scalar_lea.vmem %s109_s2, 1024  ;;  %p4678_p5 = scmp.lt.s32.totalorder %s109_s2, %s109_s2 }
  0xc7   :  { %p4674_p4 = scmp.ne.s32.totalorder %s109_s2, %s4673_s5  ;;  %p4679_p6 = scmp.lt.s32.totalorder %s4673_s5, %s4673_s5 }
  0xc9   :  { %p4680_p7 = por %p4679_p6, %p4678_p5 }
  0xcb   :  { %p4681_p8 = pnand %p4680_p7, %p4674_p4 }
  0xcd   :  { %4684 = shalt.err (!%p4681_p8)
}
  0xce   :  { %114 = dma.hbm_to_vmem [thread:$0]  %s5112_s29, 1024, %s109_s2, [#allocation3], %s5044_s14, %s5044_s14, %s5045_s18  }
  0xcf   :  { %s5056_s27 = smov [#allocation8]   ;;  %s5057_s10 = smov [#allocation11]  }
  0xd0   :  { %s130_s20 = sshll.u32 %s5056_s27, 4  ;;  %s152_s3 = sshll.u32 %s5057_s10, 4  ;;  %s131_s20 = int_to_ptr.vmem [resolvable:$true] %s130_s20  ;;  %s153_s3 = int_to_ptr.vmem [resolvable:$true] %s152_s3 }
  0xd1   :  { %s4693_s11 = scalar_lea.vmem %s131_s20, 1024  ;;  %p4698_p10 = scmp.lt.s32.totalorder %s131_s20, %s131_s20 }
  0xd2   :  { %p4694_p9 = scmp.ne.s32.totalorder %s131_s20, %s4693_s11  ;;  %p4699_p11 = scmp.lt.s32.totalorder %s4693_s11, %s4693_s11 }
  0xd4   :  { %p4700_p12 = por %p4699_p11, %p4698_p10 }
  0xd6   :  { %p4701_p13 = pnand %p4700_p12, %p4694_p9 }
  0xd8   :  { %4704 = shalt.err (!%p4701_p13)
}
  0xd9   :  { %136 = dma.hbm_to_vmem [thread:$0]  %s5122_s8, 1024, %s131_s20, [#allocation7], %s5044_s14, %s5044_s14, %s5045_s18  }
  0xda   :  { %s4713_s12 = scalar_lea.vmem %s153_s3, 1024  ;;  %p4718_p1 = scmp.lt.s32.totalorder %s153_s3, %s153_s3 }
  0xdb   :  { %p4714_p0 = scmp.ne.s32.totalorder %s153_s3, %s4713_s12  ;;  %p4719_p2 = scmp.lt.s32.totalorder %s4713_s12, %s4713_s12 }
  0xdd   :  { %p4720_p3 = por %p4719_p2, %p4718_p1 }
  0xdf   :  { %p4721_p4 = pnand %p4720_p3, %p4714_p0 }
  0xe1   :  { %4724 = shalt.err (!%p4721_p4)
}
  0xe2   :  { %s5590_s29 = sld [smem:[#allocation68_spill]]  ;;  %s5058_s15 = smov [#allocation14]  }
  0xe3   :  { %s174_s16 = sshll.u32 %s5058_s15, 4  ;;  %s5059_s4 = smov [#allocation17]   ;;  %s175_s16 = int_to_ptr.vmem [resolvable:$true] %s174_s16 }
  0xe4   :  { %s199_s24 = sshll.u32 %s5059_s4, 4  ;;  %s4733_s22 = scalar_lea.vmem %s175_s16, 1024  ;;  %s200_s24 = int_to_ptr.vmem [resolvable:$true] %s199_s24 }
  0xe5   :  { %p4734_p5 = scmp.ne.s32.totalorder %s175_s16, %s4733_s22  ;;  %p4738_p6 = scmp.lt.s32.totalorder %s175_s16, %s175_s16 }
  0xe6   :  { %p4739_p7 = scmp.lt.s32.totalorder %s4733_s22, %s4733_s22 }
  0xe8   :  { %158 = dma.hbm_to_vmem [thread:$0]  %s5590_s29, 1024, %s153_s3, [#allocation10], %s5044_s14, %s5044_s14, %s5045_s18  }
  0xe9   :  { %p4740_p8 = por %p4739_p7, %p4738_p6 }
  0xeb   :  { %p4741_p9 = pnand %p4740_p8, %p4734_p5 }
  0xed   :  { %4744 = shalt.err (!%p4741_p9)
}
  0xee   :  { %s5591_s8 = sld [smem:[#allocation69_spill]]  ;;  %s4753_s23 = scalar_lea.vmem %s200_s24, 16 }
  0xef   :  { %p4754_p10 = scmp.ne.s32.totalorder %s200_s24, %s4753_s23  ;;  %s4757_s17 = scalar_lea.vmem %s200_s24, 32 }
  0xf0   :  { %p4758_p11 = scmp.lt.s32.totalorder %s200_s24, %s200_s24  ;;  %p4759_p12 = scmp.lt.s32.totalorder %s4757_s17, %s4753_s23 }
  0xf2   :  { %p4760_p13 = por %p4759_p12, %p4758_p11 }
  0xf4   :  { %180 = dma.hbm_to_vmem [thread:$0]  %s5591_s8, 1024, %s175_s16, [#allocation13], %s5044_s14, %s5044_s14, %s5045_s18  }
  0xf5   :  { %p4761_p0 = pnand %p4760_p13, %p4754_p10 }
  0xf7   :  { %4764 = shalt.err (!%p4761_p0)
}
  0xf8   :  { %s5592_s26 = sld [smem:[#allocation70_spill]]  ;;  %s5060_s28 = smov [#allocation20]  }
  0xf9   :  { %s220_s9 = sshll.u32 %s5060_s28, 4  ;;  %s5061_s1 = smov [#allocation23]   ;;  %s221_s9 = int_to_ptr.vmem [resolvable:$true] %s220_s9 }
  0xfa   :  { %s242_s6 = sshll.u32 %s5061_s1, 4  ;;  %s4773_s2 = scalar_lea.vmem %s221_s9, 1024  ;;  %s243_s6 = int_to_ptr.vmem [resolvable:$true] %s242_s6 }
  0xfb   :  { %p4774_p1 = scmp.ne.s32.totalorder %s221_s9, %s4773_s2  ;;  %p4778_p2 = scmp.lt.s32.totalorder %s221_s9, %s221_s9 }
  0xfc   :  { %p4779_p3 = scmp.lt.s32.totalorder %s4773_s2, %s4773_s2 }
  0xfe   :  { %202 = dma.hbm_to_vmem [thread:$0]  %s5592_s26, 16, %s200_s24, [#allocation16]  }
  0xff   :  { %p4780_p4 = por %p4779_p3, %p4778_p2 }
 0x101   :  { %p4781_p5 = pnand %p4780_p4, %p4774_p1 }
 0x103   :  { %4784 = shalt.err (!%p4781_p5)
}
 0x104   :  { %s5593_s7 = sld [smem:[#allocation71_spill]]  ;;  %s4793_s5 = scalar_lea.vmem %s243_s6, 1024 }
 0x105   :  { %p4794_p6 = scmp.ne.s32.totalorder %s243_s6, %s4793_s5  ;;  %p4798_p7 = scmp.lt.s32.totalorder %s243_s6, %s243_s6 }
 0x106   :  { %p4799_p8 = scmp.lt.s32.totalorder %s4793_s5, %s4793_s5 }
 0x108   :  { %p4800_p9 = por %p4799_p8, %p4798_p7 }
 0x10a   :  { %226 = dma.hbm_to_vmem [thread:$0]  %s5593_s7, 1024, %s221_s9, [#allocation19], %s5044_s14, %s5044_s14, %s5045_s18  }
 0x10b   :  { %p4801_p10 = pnand %p4800_p9, %p4794_p6 }
 0x10d   :  { %4804 = shalt.err (!%p4801_p10)
}
 0x10e   :  { %s5594_s27 = sld [smem:[#allocation72_spill]]  ;;  %s5062_s20 = smov [#allocation26]  }
 0x10f   :  { %s264_s10 = sshll.u32 %s5062_s20, 4  ;;  %s5063_s3 = smov [#allocation29]   ;;  %s265_s10 = int_to_ptr.vmem [resolvable:$true] %s264_s10 }
 0x110   :  { %s289_s11 = sshll.u32 %s5063_s3, 4  ;;  %s4813_s12 = scalar_lea.vmem %s265_s10, 1024  ;;  %s290_s11 = int_to_ptr.vmem [resolvable:$true] %s289_s11 }
 0x111   :  { %p4814_p11 = scmp.ne.s32.totalorder %s265_s10, %s4813_s12  ;;  %p4818_p12 = scmp.lt.s32.totalorder %s265_s10, %s265_s10 }
 0x112   :  { %p4819_p13 = scmp.lt.s32.totalorder %s4813_s12, %s4813_s12 }
 0x114   :  { %248 = dma.hbm_to_vmem [thread:$0]  %s5594_s27, 1024, %s243_s6, [#allocation22], %s5044_s14, %s5044_s14, %s5045_s18  }
 0x115   :  { %p4820_p0 = por %p4819_p13, %p4818_p12 }
 0x117   :  { %p4821_p1 = pnand %p4820_p0, %p4814_p11 }
 0x119   :  { %4824 = shalt.err (!%p4821_p1)
}
 0x11a   :  { %s5595_s29 = sld [smem:[#allocation73_spill]]  ;;  %s4833_s15 = scalar_lea.vmem %s290_s11, 32 }
 0x11b   :  { %p4834_p2 = scmp.ne.s32.totalorder %s290_s11, %s4833_s15  ;;  %p4838_p3 = scmp.lt.s32.totalorder %s290_s11, %s290_s11 }
 0x11c   :  { %p4839_p4 = scmp.lt.s32.totalorder %s4833_s15, %s4833_s15 }
 0x11e   :  { %p4840_p5 = por %p4839_p4, %p4838_p3 }
 0x120   :  { %270 = dma.hbm_to_vmem [thread:$0]  %s5595_s29, 1024, %s265_s10, [#allocation25], %s5044_s14, %s5044_s14, %s5045_s18  }
 0x121   :  { %p4841_p6 = pnand %p4840_p5, %p4834_p2 }
 0x123   :  { %4844 = shalt.err (!%p4841_p6)
}
 0x124   :  { %s5596_s16 = sld [smem:[#allocation75_spill]]  ;;  %s5064_s4 = smov [#allocation32]  }
 0x125   :  { %s311_s24 = sshll.u32 %s5064_s4, 4  ;;  %s5065_s22 = smov [#allocation35]   ;;  %s312_s24 = int_to_ptr.vmem [resolvable:$true] %s311_s24 }
 0x126   :  { %s332_s8 = sshll.u32 %s5065_s22, 4  ;;  %s4853_s23 = scalar_lea.vmem %s312_s24, 32  ;;  %s333_s8 = int_to_ptr.vmem [resolvable:$true] %s332_s8 }
 0x127   :  { %p4854_p7 = scmp.ne.s32.totalorder %s312_s24, %s4853_s23  ;;  %p4858_p8 = scmp.lt.s32.totalorder %s312_s24, %s312_s24 }
 0x128   :  { %p4859_p9 = scmp.lt.s32.totalorder %s4853_s23, %s4853_s23 }
 0x12a   :  { %292 = dma.hbm_to_vmem [thread:$0]  %s5596_s16, 32, %s290_s11, [#allocation28]  }
 0x12b   :  { %p4860_p10 = por %p4859_p9, %p4858_p8 }
 0x12d   :  { %p4861_p11 = pnand %p4860_p10, %p4854_p7 }
 0x12f   :  { %4864 = shalt.err (!%p4861_p11)
}
 0x130   :  { %s5597_s14 = sld [smem:[#allocation76_spill]]  ;;  %s4873_s18 = scalar_lea.vmem %s333_s8, 2048 }
 0x131   :  { %p4874_p12 = scmp.ne.s32.totalorder %s333_s8, %s4873_s18  ;;  %p4878_p13 = scmp.lt.s32.totalorder %s333_s8, %s333_s8 }
 0x132   :  { %p4879_p0 = scmp.lt.s32.totalorder %s4873_s18, %s4873_s18 }
 0x134   :  { %p4880_p1 = por %p4879_p0, %p4878_p13 }
 0x136   :  { %314 = dma.hbm_to_vmem [thread:$0]  %s5597_s14, 32, %s312_s24, [#allocation31]  }
 0x137   :  { %p4881_p2 = pnand %p4880_p1, %p4874_p12 }
 0x139   :  { %4884 = shalt.err (!%p4881_p2)
}
 0x13a   :  { %s5598_s17 = sld [smem:[#allocation77_spill]]  ;;  %s5066_s26 = smov [#allocation38]  }
 0x13b   :  { %s354_s28 = sshll.u32 %s5066_s26, 4  ;;  %s5067_s9 = smov [#allocation41]   ;;  %s355_s28 = int_to_ptr.vmem [resolvable:$true] %s354_s28 }
 0x13c   :  { %s379_s1 = sshll.u32 %s5067_s9, 4  ;;  %s4893_s6 = scalar_lea.vmem %s355_s28, 4096  ;;  %s380_s1 = int_to_ptr.vmem [resolvable:$true] %s379_s1 }
 0x13d   :  { %p4894_p3 = scmp.ne.s32.totalorder %s355_s28, %s4893_s6  ;;  %p4898_p4 = scmp.lt.s32.totalorder %s355_s28, %s355_s28 }
 0x13e   :  { %p4899_p5 = scmp.lt.s32.totalorder %s4893_s6, %s4893_s6 }
 0x140   :  { %338 = dma.hbm_to_vmem [thread:$0]  %s5598_s17, 2048, %s333_s8, [#allocation34], %s5050_s25, %s5050_s25, %s5051_s0  }
 0x141   :  { %p4900_p6 = por %p4899_p5, %p4898_p4 }
 0x143   :  { %p4901_p7 = pnand %p4900_p6, %p4894_p3 }
 0x145   :  { %4904 = shalt.err (!%p4901_p7)
}
 0x146   :  { %s5599_s2 = sld [smem:[#allocation78_spill]]  ;;  %s4913_s7 = scalar_lea.vmem %s380_s1, 32 }
 0x147   :  { %p4914_p8 = scmp.ne.s32.totalorder %s380_s1, %s4913_s7  ;;  %p4918_p9 = scmp.lt.s32.totalorder %s380_s1, %s380_s1 }
 0x148   :  { %p4919_p10 = scmp.lt.s32.totalorder %s4913_s7, %s4913_s7 }
 0x14a   :  { %p4920_p11 = por %p4919_p10, %p4918_p9 }
 0x14c   :  { %360 = dma.hbm_to_vmem [thread:$0]  %s5599_s2, 4096, %s355_s28, [#allocation37], %s5050_s25, %s5050_s25, %s5051_s0  }
 0x14d   :  { %p4921_p12 = pnand %p4920_p11, %p4914_p8 }
 0x14f   :  { %4924 = shalt.err (!%p4921_p12)
}
 0x150   :  { %382 = dma.hbm_to_vmem [thread:$0]  %s5237_s21, 32, %s380_s1, [#allocation40]  }
 0x151   :  { %4973 = dma.done.wait [#allocation3], 1024  }
 0x152   :  { %4974 = vsyncadd [#allocation3], 4294966272 }
 0x153   :  { %4975 = dma.done.wait [#allocation7], 1040  }
 0x154   :  { %4976 = vsyncadd [#allocation7], 4294966256 }
 0x155   :  { %4977 = dma.done.wait [#allocation10], 1040  }
 0x156   :  { %4978 = vsyncadd [#allocation10], 4294966256 }
 0x157   :  { %4979 = dma.done.wait [#allocation13], 1040  }
 0x158   :  { %4980 = vsyncadd [#allocation13], 4294966256 }
 0x159   :  { %4981 = dma.done.wait [#allocation16], 1040  }
 0x15a   :  { %4982 = vsyncadd [#allocation16], 4294966256 }
 0x15b   :  { %4983 = dma.done.wait [#allocation19], 2048  }
 0x15c   :  { %4984 = vsyncadd [#allocation19], 4294965248 }
 0x15d   :  { %4985 = dma.done.wait [#allocation22], 1040  }
 0x15e   :  { %4986 = vsyncadd [#allocation22], 4294966256 }
 0x15f   :  { %4987 = dma.done.wait [#allocation25], 1040  }
 0x160   :  { %4988 = vsyncadd [#allocation25], 4294966256 }
 0x161   :  { %4989 = dma.done.wait [#allocation28], 48  }
 0x162   :  { %4990 = vsyncadd [#allocation28], 4294967248 }
 0x163   :  { %4991 = dma.done.wait [#allocation31], 2080  }
 0x164   :  { %4992 = vsyncadd [#allocation31], 4294965216 }
 0x165   :  { %4993 = dma.done.wait [#allocation34], 6144  }
 0x166   :  { %4994 = vsyncadd [#allocation34], 4294961152 }
 0x167   :  { %4995 = dma.done.wait [#allocation37], 4128  }
 0x168   :  { %4996 = vsyncadd [#allocation37], 4294963168 }
 0x169   :  { %4997 = dma.done.wait [#allocation40], 2080  }
 0x16a   :  { %4998 = vsyncadd [#allocation40], 4294965216  ;;  %s5600_s21 = sld [smem:[#allocation66_spill]]  ;;  %v5068_v0 = vmov 0.0   ;;  %vm5069_vm0 = vmmov 0   ;;  %vm713_vm1 = vcmask 130048  }
 0x16b   :  { %3816 = vmatprep.subr.bf16.mxu0 %v5068_v0  ;;  %3832 = vmatprep.mubr.msk.bf16.mxu0 %vm5069_vm0, %v5068_v0  ;;  %s5601_s5 = sld [smem:[#allocation62_spill]]  ;;  %v4128_v11 = vld [vmem:[#allocation8 + $0x38] sm:$0xff]   ;;  %v4130_v12 = vld [vmem:[#allocation8 + $0x30] sm:$0xff]   ;;  %v4132_v13 = vld [vmem:[#allocation8 + $0x28] sm:$0xff]   ;;  %v5070_v54 = vmov 0   ;;  %vm994_vm5 = vcmask 1043456  }
 0x16c   :  { %s5602_s27 = sld [smem:[#allocation65_spill]]  ;;  %v4134_v14 = vld [vmem:[#allocation8 + $0x20] sm:$0xff]   ;;  %v4136_v15 = vld [vmem:[#allocation8 + $0x18] sm:$0xff]   ;;  %v4127_v23 = vld [vmem:[#allocation2 + $0x30] sm:$0xff]   ;;  %vm990_vm6 = vcmask 195584   ;;  %s5071_s12 = smov [#allocation42]  }
 0x16d   :  { %v4126_v20 = vld [vmem:[#allocation2 + $0x38] sm:$0xff]   ;;  %v4129_v24 = vld [vmem:[#allocation2 + $0x28] sm:$0xff]   ;;  %v4131_v25 = vld [vmem:[#allocation2 + $0x20] sm:$0xff]   ;;  %s5603_s20 = sld [smem:[#allocation63_spill]]  ;;  %s3382_s29 = sshll.u32 %s5071_s12, 4  ;;  %s3383_s29 = int_to_ptr.vmem [resolvable:$true] %s3382_s29 }
 0x16e   :  { %v4133_v26 = vld [vmem:[#allocation2 + $0x18] sm:$0xff]   ;;  %v4135_v27 = vld [vmem:[#allocation2 + $0x10] sm:$0xff]   ;;  %v4137_v28 = vld [vmem:[#allocation2 + $0x8] sm:$0xff]   ;;  %s5604_s10 = sld [smem:[#allocation67_spill]]  ;;  %s5072_s15 = smov [#allocation43]  }
 0x16f   :  { %v4138_v29 = vld [vmem:[#allocation8 + $0x10] sm:$0xff]   ;;  %v4139_v30 = vld [vmem:[#allocation2] sm:$0xff]   ;;  %v4140_v31 = vld [vmem:[#allocation8 + $0x8] sm:$0xff]   ;;  %s5605_s3 = sld [smem:[#allocation64_spill]]  ;;  %s3394_s16 = sshll.u32 %s5072_s15, 4  ;;  %s3395_s16 = int_to_ptr.vmem [resolvable:$true] %s3394_s16 }
 0x170   :  { %v4115_v1 = vld [vmem:[%s5600_s21 + $0x38] sm:$0xff]   ;;  %v4116_v2 = vld [vmem:[%s5600_s21 + $0x30] sm:$0xff]   ;;  %v4117_v3 = vld [vmem:[%s5600_s21 + $0x28] sm:$0xff]   ;;  %s5606_s11 = sld [smem:[#allocation74_spill]]  ;;  %s4925_s4 = scalar_lea.vmem %s3383_s29, 256 }
 0x171   :  { %3817 = vmatpush3.bf16.msra.mxu0 %v4115_v1  ;;  %v4118_v4 = vld [vmem:[%s5600_s21 + $0x20] sm:$0xff]   ;;  %v4119_v5 = vld [vmem:[%s5600_s21 + $0x18] sm:$0xff]   ;;  %v4120_v6 = vld [vmem:[%s5600_s21 + $0x10] sm:$0xff]   ;;  %p4926_p13 = scmp.ne.s32.totalorder %s3383_s29, %s4925_s4  ;;  %p4930_p0 = scmp.lt.s32.totalorder %s3383_s29, %s3383_s29 }
 0x172   :  { %3818 = vmatprep.subr.bf16.mxu0 %v5068_v0  ;;  %v4121_v7 = vld [vmem:[%s5600_s21 + $0x8] sm:$0xff]   ;;  %v4122_v8 = vld [vmem:[%s5600_s21] sm:$0xff]   ;;  %v4146_v56 = vld [vmem:[#allocation11 + $0x30] sm:$0xff]   ;;  %p4931_p1 = scmp.lt.s32.totalorder %s4925_s4, %s4925_s4 }
 0x173   :  { %v5340_v9 = vld [vmem:[%s5601_s5] sm:$0xff]   ;;  %v5349_v22 = vld [vmem:[%s5602_s27 + $0x8] ss:$0 sps:$4 sm:$0xff]   ;;  %v4147_v57 = vld [vmem:[#allocation11 + $0x28] sm:$0xff]  }
 0x174   :  { %v5344_v10 = vld [vmem:[%s5602_s27] sm:$0xff]   ;;  %v5357_v33 = vld [vmem:[%s5603_s20 + $0x8] ss:$0 sps:$4 sm:$0xff]   ;;  %p4932_p2 = por %p4931_p1, %p4930_p0 }
 0x175   :  { %3819 = vmatpush3.bf16.msra.mxu0 %v4116_v2  ;;  %3838 = vmatprep.mubr.msk.bf16.mxu1 %vm713_vm1, %v5344_v10  ;;  %v5354_v32 = vld [vmem:[%s5603_s20] sm:$0xff]  }
 0x176   :  { %3820 = vmatprep.subr.bf16.mxu0 %v5068_v0  ;;  %v4143_v34 = vld [vmem:[#allocation8] sm:$0xff]   ;;  %v3478_v35 = vld [vmem:[%s5604_s10] ss:$0 sm:$0xff]  ;;  %p4933_p3 = pnand %p4932_p2, %p4926_p13 }
 0x177   :  { %v4145_v55 = vld [vmem:[#allocation11 + $0x38] sm:$0xff]   ;;  %v4148_v58 = vld [vmem:[#allocation11 + $0x20] sm:$0xff]  }
 0x178   :  { %v4149_v59 = vld [vmem:[#allocation11 + $0x18] sm:$0xff]  }
 0x179   :  { %3821 = vmatpush3.bf16.msra.mxu0 %v4117_v3 }
 0x17a   :  { %3822 = vmatprep.subr.bf16.mxu0 %v5068_v0 }
 0x17d   :  { %3823 = vmatpush3.bf16.msra.mxu0 %v4118_v4 }
 0x17e   :  { %3824 = vmatprep.subr.bf16.mxu0 %v5068_v0 }
 0x181   :  { %3825 = vmatpush3.bf16.msra.mxu0 %v4119_v5 }
 0x182   :  { %3826 = vmatprep.subr.bf16.mxu0 %v5068_v0 }
 0x185   :  { %3827 = vmatpush3.bf16.msra.mxu0 %v4120_v6 }
 0x186   :  { %3828 = vmatprep.subr.bf16.mxu0 %v5068_v0 }
 0x189   :  { %3829 = vmatpush3.bf16.msra.mxu0 %v4121_v7  ;;  %v5374_v7 = vld [vmem:[%s5605_s3] sm:$0xff]  }
 0x18a   :  { %3830 = vmatprep.subr.bf16.mxu0 %v5068_v0 }
 0x18d   :  { %3831 = vmatpush3.bf16.msra.mxu0 %v4122_v8  ;;  %v4150_v8 = vld [vmem:[#allocation11 + $0x10] sm:$0xff]  }
 0x18e   :  { %3862 = vmatprep.subr.bf16.mxu0 %v4128_v11 }
 0x190   :  { %3833 = vmatmul.mubr.bf16.vlgmr.msra.gmra.mxu0 %v5340_v9 }
 0x191   :  { %3863 = vmatpush3.bf16.msra.mxu0 %v4128_v11  ;;  %v4151_v11 = vld [vmem:[#allocation11 + $0x8] sm:$0xff]  }
 0x192   :  { %3864 = vmatprep.subr.bf16.mxu0 %v4130_v12 }
 0x195   :  { %3865 = vmatpush3.bf16.msra.mxu0 %v4130_v12  ;;  %v4152_v12 = vld [vmem:[#allocation11] sm:$0xff]  }
 0x196   :  { %3866 = vmatprep.subr.bf16.mxu0 %v4132_v13 }
 0x199   :  { %3867 = vmatpush3.bf16.msra.mxu0 %v4132_v13  ;;  %v3504_v13 = vld [vmem:[#allocation6] ss:$0 sm:$0xff] }
 0x19a   :  { %3868 = vmatprep.subr.bf16.mxu0 %v4134_v14 }
 0x19d   :  { %3869 = vmatpush3.bf16.msra.mxu0 %v4134_v14 }
 0x19e   :  { %3870 = vmatprep.subr.bf16.mxu0 %v4136_v15 }
 0x1a1   :  { %3871 = vmatpush3.bf16.msra.mxu0 %v4136_v15 }
 0x1a2   :  { %3872 = vmatprep.subr.bf16.mxu0 %v4138_v29 }
 0x1a5   :  { %3873 = vmatpush3.bf16.msra.mxu0 %v4138_v29  ;;  %v4157_v29 = vld [vmem:[#allocation14 + $0x18] sm:$0xff]  }
 0x1a6   :  { %3874 = vmatprep.subr.bf16.mxu0 %v4140_v31 }
 0x1a9   :  { %3875 = vmatpush3.bf16.msra.mxu0 %v4140_v31  ;;  %v4158_v31 = vld [vmem:[#allocation14 + $0x10] sm:$0xff]  }
 0x1aa   :  { %3876 = vmatprep.subr.bf16.mxu0 %v4143_v34 }
 0x1ad   :  { %3877 = vmatpush3.bf16.msra.mxu0 %v4143_v34  ;;  %v3505_v34 = vld [vmem:[#allocation9] ss:$0 sm:$0xff] }
 0x250   :  { %v691_v16 = vpop.f32.mrf.mxu0 }
 0x252   :  { %v3834_v17 = vpop.f32.mrf.mxu0 }
 0x254   :  { %v694_v18 = vpop.f32.mrf.mxu0 }
 0x255   :  { %v698_v19 = vpack.c.bf16 %v694_v18, %v691_v16 }
 0x256   :  { %v3835_v21 = vpop.f32.mrf.mxu0 }
 0x257   :  { %3836 = vmatprep.subr.bf16.mxu1 %v698_v19 }
 0x258   :  { %3837 = vmatpush3.bf16.msra.mxu1 %v698_v19 }
 0x259   :  { %3842 = vmatprep.subr.bf16.mxu1 %v4126_v20 }
 0x25b   :  { %3839 = vmatmul.mubr.msk.bf16.vlgmr.msra.gmra.mxu1 %vm713_vm1, %v5349_v22 }
 0x25c   :  { %3843 = vmatpush3.bf16.msra.mxu1 %v4126_v20  ;;  %3858 = vmatprep.mubr.bf16.mxu1 %v5354_v32 }
 0x25d   :  { %3844 = vmatprep.subr.bf16.mxu1 %v4127_v23 }
 0x260   :  { %3845 = vmatpush3.bf16.msra.mxu1 %v4127_v23 }
 0x261   :  { %3846 = vmatprep.subr.bf16.mxu1 %v4129_v24 }
 0x264   :  { %3847 = vmatpush3.bf16.msra.mxu1 %v4129_v24  ;;  %v4153_v24 = vld [vmem:[#allocation14 + $0x38] sm:$0xff]  }
 0x265   :  { %3848 = vmatprep.subr.bf16.mxu1 %v4131_v25 }
 0x268   :  { %3849 = vmatpush3.bf16.msra.mxu1 %v4131_v25 }
 0x269   :  { %3850 = vmatprep.subr.bf16.mxu1 %v4133_v26 }
 0x26c   :  { %3851 = vmatpush3.bf16.msra.mxu1 %v4133_v26  ;;  %v4154_v26 = vld [vmem:[#allocation14 + $0x30] sm:$0xff]  }
 0x26d   :  { %3852 = vmatprep.subr.bf16.mxu1 %v4135_v27 }
 0x270   :  { %3853 = vmatpush3.bf16.msra.mxu1 %v4135_v27  ;;  %v4155_v27 = vld [vmem:[#allocation14 + $0x28] sm:$0xff]  }
 0x271   :  { %3854 = vmatprep.subr.bf16.mxu1 %v4137_v28 }
 0x274   :  { %3855 = vmatpush3.bf16.msra.mxu1 %v4137_v28  ;;  %v4156_v28 = vld [vmem:[#allocation14 + $0x20] sm:$0xff]  }
 0x275   :  { %3856 = vmatprep.subr.bf16.mxu1 %v4139_v30 }
 0x278   :  { %3857 = vmatpush3.bf16.msra.mxu1 %v4139_v30 }
 0x279   :  { %3882 = vmatprep.subr.bf16.mxu1 %v5068_v0 }
 0x27b   :  { %3859 = vmatmul.mubr.bf16.vlgmr.msra.gmra.mxu1 %v5357_v33 }
 0x27c   :  { %3898 = vmatprep.mubr.msk.bf16.mxu1 %vm5069_vm0, %v5068_v0  ;;  %3883 = vmatpush3.bf16.msra.mxu1 %v4145_v55  ;;  %v4161_v55 = vld [vmem:[#allocation15 + $0x38] sm:$0xff]  }
 0x27d   :  { %3884 = vmatprep.subr.bf16.mxu1 %v5068_v0 }
 0x280   :  { %3885 = vmatpush3.bf16.msra.mxu1 %v4146_v56  ;;  %v4162_v56 = vld [vmem:[#allocation15 + $0x30] sm:$0xff]  }
 0x281   :  { %3886 = vmatprep.subr.bf16.mxu1 %v5068_v0 }
 0x284   :  { %3887 = vmatpush3.bf16.msra.mxu1 %v4147_v57  ;;  %v4163_v57 = vld [vmem:[#allocation15 + $0x28] sm:$0xff]  }
 0x285   :  { %3888 = vmatprep.subr.bf16.mxu1 %v5068_v0 }
 0x288   :  { %3889 = vmatpush3.bf16.msra.mxu1 %v4148_v58  ;;  %v4164_v58 = vld [vmem:[#allocation15 + $0x20] sm:$0xff]  }
 0x289   :  { %3890 = vmatprep.subr.bf16.mxu1 %v5068_v0 }
 0x28c   :  { %3891 = vmatpush3.bf16.msra.mxu1 %v4149_v59  ;;  %v4165_v59 = vld [vmem:[#allocation15 + $0x18] sm:$0xff]  }
 0x28d   :  { %3892 = vmatprep.subr.bf16.mxu1 %v5068_v0 }
 0x290   :  { %3893 = vmatpush3.bf16.msra.mxu1 %v4150_v8  ;;  %v4174_v8 = vld [vmem:[#allocation20 + $0x20] sm:$0xff]  }
 0x291   :  { %3894 = vmatprep.subr.bf16.mxu1 %v5068_v0 }
 0x294   :  { %3895 = vmatpush3.bf16.msra.mxu1 %v4151_v11  ;;  %v4176_v11 = vld [vmem:[#allocation20 + $0x18] sm:$0xff]  }
 0x295   :  { %3896 = vmatprep.subr.bf16.mxu1 %v5068_v0 }
 0x298   :  { %3897 = vmatpush3.bf16.msra.mxu1 %v4152_v12  ;;  %v4178_v12 = vld [vmem:[#allocation20 + $0x10] sm:$0xff]  }
 0x299   :  { %3928 = vmatprep.subr.bf16.mxu1 %v5068_v0 }
 0x31b   :  { %v3840_v36 = vpop.f32.mrf.mxu1 }
 0x31c   :  { %v763_v37 = vadd.f32 %v3840_v36, %v3478_v35 }
 0x31d   :  { %v754_v38 = vpop.f32.mrf.mxu1 }
 0x31e   :  { %v755_v39 = vadd.f32 %v3478_v35, %v754_v38  ;;  %v773_v41 = vmul.f32 0.1, %v763_v37  ;;  %vm770_vm2 = vcmp.gt.f32.partialorder %v763_v37, 0.0 }
 0x31f   :  { %v3841_v40 = vpop.f32.mrf.mxu1 }
 0x320   :  { %v771_v43 = vmul.f32 0.1, %v755_v39  ;;  %vm768_vm3 = vcmp.gt.f32.partialorder %v755_v39, 0.0  ;;  %v776_v46 = vsel %vm770_vm2, %v763_v37, %v773_v41  ;;  %v4159_v37 = vld [vmem:[#allocation14 + $0x8] sm:$0xff]   ;;  %v4160_v40 = vld [vmem:[#allocation14] sm:$0xff]  }
 0x321   :  { %v757_v42 = vpop.f32.mrf.mxu1  ;;  %v886_v50 = vpack.c.bf16 %v776_v46, %v776_v46  ;;  %v4175_v46 = vld [vmem:[#allocation18 + $0x28] sm:$0xff]  }
 0x322   :  { %v758_v44 = vadd.f32 %v3478_v35, %v757_v42  ;;  %v774_v47 = vsel %vm768_vm3, %v755_v39, %v771_v43 }
 0x324   :  { %vm769_vm4 = vcmp.gt.f32.partialorder %v758_v44, 0.0  ;;  %v772_v45 = vmul.f32 0.1, %v758_v44 }
 0x326   :  { %v775_v48 = vsel %vm769_vm4, %v758_v44, %v772_v45  ;;  %v4171_v44 = vld [vmem:[#allocation18 + $0x38] sm:$0xff]   ;;  %v4173_v45 = vld [vmem:[#allocation18 + $0x30] sm:$0xff]  }
 0x327   :  { %v885_v49 = vpack.c.bf16 %v775_v48, %v774_v47  ;;  %v4177_v47 = vld [vmem:[#allocation18 + $0x20] sm:$0xff]   ;;  %v4179_v48 = vld [vmem:[#allocation18 + $0x18] sm:$0xff]  }
 0x329   :  { %3878 = vmatprep.mubr.bf16.mxu0 %v885_v49 }
 0x32a   :  { %3879 = vmatmul.mubr.bf16.vlgmr.msra.gmra.mxu0 %v886_v50 }
 0x32b   :  { %1033 = vmatprep.mubr.bf16.mxu0 %v5070_v54 }
 0x33b   :  { %v3860_v51 = vpop.f32.mrf.mxu1 }
 0x33c   :  { %v884_v60 = vpack.c.bf16 %v3860_v51, %v3860_v51 }
 0x33d   :  { %v869_v52 = vpop.f32.mrf.mxu1 }
 0x33e   :  { %v996_v62 = vsel %vm994_vm5, %v884_v60, 0  ;;  %v4166_v60 = vld [vmem:[#allocation15 + $0x10] sm:$0xff]  }
 0x33f   :  { %v3861_v53 = vpop.f32.mrf.mxu1 }
 0x341   :  { %v872_v3 = vpop.f32.mrf.mxu1 }
 0x342   :  { %v883_v6 = vpack.c.bf16 %v872_v3, %v869_v52  ;;  %v4169_v3 = vld [vmem:[#allocation20 + $0x38] sm:$0xff]  }
 0x3ea   :  { %v3880_v61 = vpop.f32.mrf.mxu0 }
 0x3eb   :  { %v984_v63 = vpack.c.bf16 %v3880_v61, %v3880_v61 }
 0x3ec   :  { %v969_v1 = vpop.f32.mrf.mxu0 }
 0x3ed   :  { %3502 = vmatprep.subr.msk.bf16.mxu0 %vm994_vm5, %v984_v63 }
 0x3ee   :  { %v3881_v2 = vpop.f32.mrf.mxu0  ;;  %1014 = vmatpush1.bf16.msra.mxu0 %v996_v62  ;;  %v4167_v62 = vld [vmem:[#allocation15 + $0x8] sm:$0xff]  }
 0x3ef   :  { %v4168_v2 = vld [vmem:[#allocation15] sm:$0xff]  }
 0x3f0   :  { %v972_v4 = vpop.f32.mrf.mxu0 }
 0x3f1   :  { %v983_v5 = vpack.c.bf16 %v972_v4, %v969_v1 }
 0x3f3   :  { %1015 = vmatprep.subr.bf16.mxu0 %v983_v5  ;;  %v4170_v5 = vld [vmem:[#allocation20 + $0x30] sm:$0xff]  }
 0x3f4   :  { %1016 = vmatpush1.bf16.msra.mxu0 %v883_v6  ;;  %v4172_v6 = vld [vmem:[#allocation20 + $0x28] sm:$0xff]  }
 0x3f7   :  { %3503 = vmatmul.mubr.msk.bf16.vlgmr.msra.gmra.mxu0 %vm990_vm6, %v5374_v7 }
 0x3f8   :  { %3904 = vmatprep.mubr.msk.bf16.mxu0 %vm713_vm1, %v5344_v10 }
 0x4b7   :  { %v1035_v14 = vpop.f32.mrf.mxu0 }
 0x4b8   :  { %v1050_v15 = vadd.f32 %v3504_v13, %v1035_v14  ;;  %v4182_v14 = vld [vmem:[#allocation20] sm:$0xff]  }
 0x4b9   :  { %v1037_v16 = vpop.f32.mrf.mxu0 }
 0x4ba   :  { %v1054_v18 = vmul.f32 0.1, %v1050_v15  ;;  %vm1052_vm7 = vcmp.gt.f32.partialorder %v1050_v15, 0.0  ;;  %v1064_v36 = vadd.f32 %v3505_v34, %v1037_v16  ;;  %v4185_v16 = vld [vmem:[#allocation23 + $0x38] sm:$0xff]  }
 0x4bb   :  { %v1039_v17 = vpop.f32.mrf.mxu0 }
 0x4bc   :  { %v1051_v19 = vadd.f32 %v3504_v13, %v1039_v17  ;;  %v1056_v21 = vsel %vm1052_vm7, %v1050_v15, %v1054_v18  ;;  %v1068_v39 = vmul.f32 0.1, %v1064_v36  ;;  %vm1066_vm10 = vcmp.gt.f32.partialorder %v1064_v36, 0.0  ;;  %v4180_v13 = vld [vmem:[#allocation20 + $0x8] sm:$0xff]   ;;  %v4184_v15 = vld [vmem:[#allocation18] sm:$0xff]   ;;  %v4186_v17 = vld [vmem:[#allocation23 + $0x30] sm:$0xff]  }
 0x4bd   :  { %v1041_v30 = vpop.f32.mrf.mxu0  ;;  %v4187_v18 = vld [vmem:[#allocation23 + $0x28] sm:$0xff]  }
 0x4be   :  { %vm1053_vm8 = vcmp.gt.f32.partialorder %v1051_v19, 0.0  ;;  %v1055_v20 = vmul.f32 0.1, %v1051_v19  ;;  %v1065_v35 = vadd.f32 %v3505_v34, %v1041_v30  ;;  %v1070_v42 = vsel %vm1066_vm10, %v1064_v36, %v1068_v39 }
 0x4c0   :  { %v1057_v23 = vsel %vm1053_vm8, %v1051_v19, %v1055_v20  ;;  %v1069_v38 = vmul.f32 0.1, %v1065_v35  ;;  %vm1067_vm9 = vcmp.gt.f32.partialorder %v1065_v35, 0.0  ;;  %v4188_v19 = vld [vmem:[#allocation23 + $0x20] sm:$0xff]   ;;  %v4190_v20 = vld [vmem:[#allocation23 + $0x10] sm:$0xff]  }
 0x4c1   :  { %v1072_v25 = vpack.c.bf16 %v1057_v23, %v1056_v21  ;;  %v4191_v21 = vld [vmem:[#allocation23 + $0x8] sm:$0xff]   ;;  %v4192_v23 = vld [vmem:[#allocation23] sm:$0xff]  }
 0x4c2   :  { %v1071_v41 = vsel %vm1067_vm9, %v1065_v35, %v1069_v38 }
 0x4c3   :  { %3899 = vmatmul.mubr.bf16.vlgmr.msra.gmra.mxu1 %v1072_v25  ;;  %v1226_v43 = vpack.c.bf16 %v1071_v41, %v1070_v42  ;;  %v3514_v25 = vld [vmem:[#allocation12] ss:$0 sm:$0xff] }
 0x4c4   :  { %3929 = vmatpush3.bf16.msra.mxu1 %v4153_v24  ;;  %3944 = vmatprep.mubr.msk.bf16.mxu1 %vm5069_vm0, %v5068_v0  ;;  %v4193_v24 = vld [vmem:[#allocation26 + $0x38] sm:$0xff]  }
 0x4c5   :  { %3930 = vmatprep.subr.bf16.mxu1 %v5068_v0 }
 0x4c8   :  { %3931 = vmatpush3.bf16.msra.mxu1 %v4154_v26 }
 0x4c9   :  { %3932 = vmatprep.subr.bf16.mxu1 %v5068_v0 }
 0x4cc   :  { %3933 = vmatpush3.bf16.msra.mxu1 %v4155_v27 }
 0x4cd   :  { %3934 = vmatprep.subr.bf16.mxu1 %v5068_v0 }
 0x4d0   :  { %3935 = vmatpush3.bf16.msra.mxu1 %v4156_v28 }
 0x4d1   :  { %3936 = vmatprep.subr.bf16.mxu1 %v5068_v0 }
 0x4d4   :  { %3937 = vmatpush3.bf16.msra.mxu1 %v4157_v29 }
 0x4d5   :  { %3938 = vmatprep.subr.bf16.mxu1 %v5068_v0 }
 0x4d8   :  { %3939 = vmatpush3.bf16.msra.mxu1 %v4158_v31 }
 0x4d9   :  { %3940 = vmatprep.subr.bf16.mxu1 %v5068_v0 }
 0x4dc   :  { %3941 = vmatpush3.bf16.msra.mxu1 %v4159_v37 }
 0x4dd   :  { %3942 = vmatprep.subr.bf16.mxu1 %v5068_v0 }
 0x4e0   :  { %3943 = vmatpush3.bf16.msra.mxu1 %v4160_v40 }
 0x4e1   :  { %3968 = vmatprep.subr.bf16.mxu1 %v4171_v44 }
 0x4e3   :  { %3945 = vmatmul.mubr.bf16.vlgmr.msra.gmra.mxu1 %v1226_v43  ;;  %v4194_v43 = vld [vmem:[#allocation26 + $0x30] sm:$0xff]  }
 0x4e4   :  { %3969 = vmatpush3.bf16.msra.mxu1 %v4171_v44  ;;  %v4195_v44 = vld [vmem:[#allocation26 + $0x28] sm:$0xff]  }
 0x4e5   :  { %3970 = vmatprep.subr.bf16.mxu1 %v4173_v45 }
 0x4e8   :  { %3971 = vmatpush3.bf16.msra.mxu1 %v4173_v45  ;;  %v4196_v45 = vld [vmem:[#allocation26 + $0x20] sm:$0xff]  }
 0x4e9   :  { %3972 = vmatprep.subr.bf16.mxu1 %v4175_v46 }
 0x4ec   :  { %3973 = vmatpush3.bf16.msra.mxu1 %v4175_v46 }
 0x4ed   :  { %3974 = vmatprep.subr.bf16.mxu1 %v4177_v47 }
 0x4f0   :  { %3975 = vmatpush3.bf16.msra.mxu1 %v4177_v47 }
 0x4f1   :  { %3976 = vmatprep.subr.bf16.mxu1 %v4179_v48 }
 0x4f4   :  { %3977 = vmatpush3.bf16.msra.mxu1 %v4179_v48  ;;  %v3533_v48 = vld [vmem:[#allocation17] ss:$0 sm:$0xff] }
 0x583   :  { %v1155_v49 = vpop.f32.mrf.mxu1 }
 0x585   :  { %v3900_v50 = vpop.f32.mrf.mxu1 }
 0x587   :  { %v1158_v51 = vpop.f32.mrf.mxu1 }
 0x588   :  { %v1162_v52 = vpack.c.bf16 %v1158_v51, %v1155_v49 }
 0x589   :  { %v3901_v53 = vpop.f32.mrf.mxu1 }
 0x58a   :  { %3902 = vmatprep.subr.bf16.mxu0 %v1162_v52 }
 0x58b   :  { %3903 = vmatpush3.bf16.msra.mxu0 %v1162_v52 }
 0x58c   :  { %3908 = vmatprep.subr.bf16.mxu0 %v5068_v0 }
 0x58e   :  { %3905 = vmatmul.mubr.msk.bf16.vlgmr.msra.gmra.mxu0 %vm713_vm1, %v5349_v22 }
 0x58f   :  { %3909 = vmatpush3.bf16.msra.mxu0 %v4161_v55  ;;  %3924 = vmatprep.mubr.msk.bf16.mxu0 %vm5069_vm0, %v5068_v0 }
 0x590   :  { %3910 = vmatprep.subr.bf16.mxu0 %v5068_v0 }
 0x593   :  { %3911 = vmatpush3.bf16.msra.mxu0 %v4162_v56 }
 0x594   :  { %3912 = vmatprep.subr.bf16.mxu0 %v5068_v0 }
 0x597   :  { %3913 = vmatpush3.bf16.msra.mxu0 %v4163_v57 }
 0x598   :  { %3914 = vmatprep.subr.bf16.mxu0 %v5068_v0 }
 0x59b   :  { %3915 = vmatpush3.bf16.msra.mxu0 %v4164_v58 }
 0x59c   :  { %3916 = vmatprep.subr.bf16.mxu0 %v5068_v0 }
 0x59f   :  { %3917 = vmatpush3.bf16.msra.mxu0 %v4165_v59 }
 0x5a0   :  { %3918 = vmatprep.subr.bf16.mxu0 %v5068_v0 }
 0x5a3   :  { %v5402_v61 = vpop.f32.mrf.mxu1  ;;  %3919 = vmatpush3.bf16.msra.mxu0 %v4166_v60 }
 0x5a4   :  { %3920 = vmatprep.subr.bf16.mxu0 %v5068_v0 }
 0x5a5   :  { %v3946_v63 = vpop.f32.mrf.mxu1 }
 0x5a6   :  { %v4198_v63 = vld [vmem:[#allocation26 + $0x10] sm:$0xff]  }
 0x5a7   :  { %v5405_v1 = vpop.f32.mrf.mxu1  ;;  %3921 = vmatpush3.bf16.msra.mxu0 %v4167_v62  ;;  %v4197_v62 = vld [vmem:[#allocation26 + $0x18] sm:$0xff]  }
 0x5a8   :  { %3922 = vmatprep.subr.bf16.mxu0 %v5068_v0 }
 0x5a9   :  { %v3947_v4 = vpop.f32.mrf.mxu1 }
 0x5ab   :  { %3923 = vmatpush3.bf16.msra.mxu0 %v4168_v2  ;;  %v4200_v2 = vld [vmem:[#allocation26] sm:$0xff]  }
 0x5ac   :  { %3948 = vmatprep.subr.bf16.mxu0 %v4169_v3 }
 0x5ae   :  { %3925 = vmatmul.mubr.bf16.vlgmr.msra.gmra.mxu0 %v5340_v9  ;;  %v4181_v9 = vld [vmem:[#allocation18 + $0x10] sm:$0xff]  }
 0x5af   :  { %3949 = vmatpush3.bf16.msra.mxu0 %v4169_v3  ;;  %3964 = vmatprep.mubr.bf16.mxu0 %v5354_v32  ;;  %v4183_v32 = vld [vmem:[#allocation18 + $0x8] sm:$0xff]  }
 0x5b0   :  { %3950 = vmatprep.subr.bf16.mxu0 %v4170_v5  ;;  %3978 = vmatprep.subr.bf16.mxu1 %v4181_v9 }
 0x5b1   :  { %3979 = vmatpush3.bf16.msra.mxu1 %v4181_v9 }
 0x5b2   :  { %3980 = vmatprep.subr.bf16.mxu1 %v4183_v32 }
 0x5b3   :  { %3951 = vmatpush3.bf16.msra.mxu0 %v4170_v5 }
 0x5b4   :  { %3952 = vmatprep.subr.bf16.mxu0 %v4172_v6 }
 0x5b5   :  { %3981 = vmatpush3.bf16.msra.mxu1 %v4183_v32 }
 0x5b6   :  { %3982 = vmatprep.subr.bf16.mxu1 %v4184_v15 }
 0x5b7   :  { %3953 = vmatpush3.bf16.msra.mxu0 %v4172_v6  ;;  %v3550_v6 = vld [vmem:[#allocation21] ss:$0 sm:$0xff] }
 0x5b8   :  { %3954 = vmatprep.subr.bf16.mxu0 %v4174_v8 }
 0x5b9   :  { %3983 = vmatpush3.bf16.msra.mxu1 %v4184_v15 }
 0x5ba   :  { %4014 = vmatprep.subr.bf16.mxu1 %v4193_v24 }
 0x5bb   :  { %3955 = vmatpush3.bf16.msra.mxu0 %v4174_v8 }
 0x5bc   :  { %3956 = vmatprep.subr.bf16.mxu0 %v4176_v11 }
 0x5bf   :  { %3957 = vmatpush3.bf16.msra.mxu0 %v4176_v11 }
 0x5c0   :  { %3958 = vmatprep.subr.bf16.mxu0 %v4178_v12 }
 0x5c3   :  { %3959 = vmatpush3.bf16.msra.mxu0 %v4178_v12 }
 0x5c4   :  { %3960 = vmatprep.subr.bf16.mxu0 %v4180_v13 }
 0x5c7   :  { %3961 = vmatpush3.bf16.msra.mxu0 %v4180_v13 }
 0x5c8   :  { %3962 = vmatprep.subr.bf16.mxu0 %v4182_v14 }
 0x5cb   :  { %3963 = vmatpush3.bf16.msra.mxu0 %v4182_v14 }
 0x5cc   :  { %3988 = vmatprep.subr.bf16.mxu0 %v5068_v0 }
 0x5ce   :  { %3965 = vmatmul.mubr.bf16.vlgmr.msra.gmra.mxu0 %v5357_v33  ;;  %v4189_v33 = vld [vmem:[#allocation23 + $0x18] sm:$0xff]  }
 0x5cf   :  { %4004 = vmatprep.mubr.msk.bf16.mxu0 %vm5069_vm0, %v5068_v0  ;;  %3989 = vmatpush3.bf16.msra.mxu0 %v4185_v16 }
 0x5d0   :  { %3990 = vmatprep.subr.bf16.mxu0 %v5068_v0 }
 0x5d3   :  { %3991 = vmatpush3.bf16.msra.mxu0 %v4186_v17 }
 0x5d4   :  { %3992 = vmatprep.subr.bf16.mxu0 %v5068_v0 }
 0x5d7   :  { %3993 = vmatpush3.bf16.msra.mxu0 %v4187_v18 }
 0x5d8   :  { %3994 = vmatprep.subr.bf16.mxu0 %v5068_v0 }
 0x5db   :  { %3995 = vmatpush3.bf16.msra.mxu0 %v4188_v19 }
 0x5dc   :  { %3996 = vmatprep.subr.bf16.mxu0 %v5068_v0 }
 0x5df   :  { %3997 = vmatpush3.bf16.msra.mxu0 %v4189_v33 }
 0x5e0   :  { %3998 = vmatprep.subr.bf16.mxu0 %v5068_v0 }
 0x5e3   :  { %3999 = vmatpush3.bf16.msra.mxu0 %v4190_v20 }
 0x5e4   :  { %4000 = vmatprep.subr.bf16.mxu0 %v5068_v0 }
 0x5e7   :  { %4001 = vmatpush3.bf16.msra.mxu0 %v4191_v21 }
 0x5e8   :  { %4002 = vmatprep.subr.bf16.mxu0 %v5068_v0 }
 0x5eb   :  { %4003 = vmatpush3.bf16.msra.mxu0 %v4192_v23 }
 0x64e   :  { %v3906_v26 = vpop.f32.mrf.mxu0 }
 0x64f   :  { %v1212_v27 = vadd.f32 %v3906_v26, %v3514_v25  ;;  %v4201_v26 = vld [vmem:[%s5606_s11 + $0x70] ss:$8 sps:$4 sm:$0xff]  }
 0x650   :  { %v1203_v28 = vpop.f32.mrf.mxu0 }
 0x651   :  { %v1204_v29 = vadd.f32 %v3514_v25, %v1203_v28  ;;  %v1222_v31 = vmul.f32 0.1, %v1212_v27  ;;  %vm1219_vm11 = vcmp.gt.f32.partialorder %v1212_v27, 0.0  ;;  %v4204_v28 = vld [vmem:[%s5606_s11 + $0x60] ss:$8 sps:$4 sm:$0xff]  }
 0x652   :  { %v3907_v30 = vpop.f32.mrf.mxu0 }
 0x653   :  { %v1220_v35 = vmul.f32 0.1, %v1204_v29  ;;  %vm1217_vm12 = vcmp.gt.f32.partialorder %v1204_v29, 0.0  ;;  %v1225_v38 = vsel %vm1219_vm11, %v1212_v27, %v1222_v31  ;;  %v4206_v27 = vld [vmem:[%s5606_s11 + $0x64] ss:$8 sps:$4 sm:$0xff]  }
 0x654   :  { %v1206_v34 = vpop.f32.mrf.mxu0  ;;  %v1417_v42 = vpack.c.bf16 %v1225_v38, %v1225_v38  ;;  %v4207_v30 = vld [vmem:[%s5606_s11 + $0x50] ss:$8 sps:$4 sm:$0xff]   ;;  %v4210_v31 = vld [vmem:[%s5606_s11 + $0x40] ss:$8 sps:$4 sm:$0xff]   ;;  %v4221_v38 = vld [vmem:[%s5606_s11 + $0x14] ss:$8 sps:$4 sm:$0xff]  }
 0x655   :  { %v1207_v36 = vadd.f32 %v3514_v25, %v1206_v34  ;;  %v1223_v39 = vsel %vm1217_vm12, %v1204_v29, %v1220_v35  ;;  %v4203_v25 = vld [vmem:[%s5606_s11 + $0x74] ss:$8 sps:$4 sm:$0xff]   ;;  %v4213_v35 = vld [vmem:[%s5606_s11 + $0x30] ss:$8 sps:$4 sm:$0xff]  }
 0x656   :  { %v4209_v29 = vld [vmem:[%s5606_s11 + $0x54] ss:$8 sps:$4 sm:$0xff]  }
 0x657   :  { %vm1218_vm13 = vcmp.gt.f32.partialorder %v1207_v36, 0.0  ;;  %v1221_v37 = vmul.f32 0.1, %v1207_v36  ;;  %v4215_v34 = vld [vmem:[%s5606_s11 + $0x34] ss:$8 sps:$4 sm:$0xff]  }
 0x659   :  { %v1224_v40 = vsel %vm1218_vm13, %v1207_v36, %v1221_v37  ;;  %v4218_v36 = vld [vmem:[%s5606_s11 + $0x24] ss:$8 sps:$4 sm:$0xff]   ;;  %v4216_v37 = vld [vmem:[%s5606_s11 + $0x20] ss:$8 sps:$4 sm:$0xff]  }
 0x65a   :  { %v1416_v41 = vpack.c.bf16 %v1224_v40, %v1223_v39  ;;  %v4219_v39 = vld [vmem:[%s5606_s11 + $0x10] ss:$8 sps:$4 sm:$0xff]   ;;  %v4224_v40 = vld [vmem:[%s5606_s11 + $0x4] ss:$8 sps:$4 sm:$0xff]  }
 0x65c   :  { %3984 = vmatprep.mubr.bf16.mxu1 %v1416_v41  ;;  %v4222_v41 = vld [vmem:[%s5606_s11] ss:$8 sps:$4 sm:$0xff]  }
 0x65d   :  { %3985 = vmatmul.mubr.bf16.vlgmr.msra.gmra.mxu1 %v1417_v42 }
 0x65e   :  { %4015 = vmatpush3.bf16.msra.mxu1 %v4193_v24 }
 0x65f   :  { %4016 = vmatprep.subr.bf16.mxu1 %v4194_v43 }
 0x662   :  { %4017 = vmatpush3.bf16.msra.mxu1 %v4194_v43 }
 0x663   :  { %4018 = vmatprep.subr.bf16.mxu1 %v4195_v44 }
 0x666   :  { %4019 = vmatpush3.bf16.msra.mxu1 %v4195_v44 }
 0x667   :  { %4020 = vmatprep.subr.bf16.mxu1 %v4196_v45 }
 0x66a   :  { %4021 = vmatpush3.bf16.msra.mxu1 %v4196_v45 }
 0x66b   :  { %4022 = vmatprep.subr.bf16.mxu1 %v4197_v62 }
 0x66e   :  { %v1309_v46 = vpop.f32.mrf.mxu0  ;;  %4023 = vmatpush3.bf16.msra.mxu1 %v4197_v62 }
 0x66f   :  { %v1399_v47 = vadd.f32 %v5402_v61, %v1309_v46  ;;  %4024 = vmatprep.subr.bf16.mxu1 %v4198_v63  ;;  %v3559_v46 = vld [vmem:[#allocation24] ss:$0 sm:$0xff] }
 0x670   :  { %v3926_v49 = vpop.f32.mrf.mxu0 }
 0x671   :  { %v1411_v51 = vadd.f32 %v3533_v48, %v1399_v47 }
 0x672   :  { %v1312_v50 = vpop.f32.mrf.mxu0  ;;  %4025 = vmatpush3.bf16.msra.mxu1 %v4198_v63  ;;  %v4249_v63 = vld [vmem:[#allocation33 + $0x70] ss:$8 sps:$4 sm:$0xff]  }
 0x673   :  { %v1402_v52 = vadd.f32 %v5405_v1, %v1312_v50  ;;  %v1413_v56 = vmax.f32 %v1411_v51, 0.0  ;;  %v4199_v1 = vld [vmem:[#allocation26 + $0x8] sm:$0xff]  }
 0x674   :  { %v3927_v53 = vpop.f32.mrf.mxu0  ;;  %4026 = vmatprep.subr.bf16.mxu1 %v4199_v1 }
 0x675   :  { %v1412_v55 = vadd.f32 %v3533_v48, %v1402_v52 }
 0x676   :  { %4027 = vmatpush3.bf16.msra.mxu1 %v4199_v1  ;;  %v4251_v1 = vld [vmem:[#allocation33 + $0x74] ss:$8 sps:$4 sm:$0xff]  }
 0x677   :  { %v1414_v57 = vmax.f32 %v1412_v55, 0.0  ;;  %4028 = vmatprep.subr.bf16.mxu1 %v4200_v2 }
 0x679   :  { %v5423_v58 = vpack.c.bf16 %v1414_v57, %v1413_v56 }
 0x67a   :  { %4029 = vmatpush3.bf16.msra.mxu1 %v4200_v2  ;;  %v4254_v2 = vld [vmem:[#allocation33 + $0x64] ss:$8 sps:$4 sm:$0xff]  }
 0x67b   :  { %4005 = vmatmul.mubr.bf16.vlgmr.msra.gmra.mxu0 %v5423_v58 }
 0x67c   :  { %4010 = vmatprep.mubr.msk.bf16.mxu0 %vm713_vm1, %v5344_v10 }
 0x68e   :  { %v3966_v59 = vpop.f32.mrf.mxu0 }
 0x690   :  { %v1500_v60 = vpop.f32.mrf.mxu0 }
 0x692   :  { %v3967_v61 = vpop.f32.mrf.mxu0 }
 0x694   :  { %v1503_v11 = vpop.f32.mrf.mxu0 }
 0x71d   :  { %v3986_v3 = vpop.f32.mrf.mxu1 }
 0x71e   :  { %v1605_v4 = vadd.f32 %v3986_v3, %v3966_v59  ;;  %v4252_v3 = vld [vmem:[#allocation33 + $0x60] ss:$8 sps:$4 sm:$0xff]  }
 0x71f   :  { %v1596_v5 = vpop.f32.mrf.mxu1 }
 0x720   :  { %v1597_v10 = vadd.f32 %v1596_v5, %v1500_v60  ;;  %v1618_v12 = vadd.f32 %v3550_v6, %v1605_v4  ;;  %v4257_v4 = vld [vmem:[#allocation33 + $0x54] ss:$8 sps:$4 sm:$0xff]   ;;  %v4255_v5 = vld [vmem:[#allocation33 + $0x50] ss:$8 sps:$4 sm:$0xff]  }
 0x721   :  { %v3987_v8 = vpop.f32.mrf.mxu1 }
 0x722   :  { %v1616_v9 = vadd.f32 %v3550_v6, %v1597_v10  ;;  %v1621_v15 = vmax.f32 %v1618_v12, 0.0  ;;  %v4258_v10 = vld [vmem:[#allocation33 + $0x40] ss:$8 sps:$4 sm:$0xff]   ;;  %v4263_v8 = vld [vmem:[#allocation33 + $0x34] ss:$8 sps:$4 sm:$0xff]  }
 0x723   :  { %v1599_v13 = vpop.f32.mrf.mxu1  ;;  %v4266_v12 = vld [vmem:[#allocation33 + $0x24] ss:$8 sps:$4 sm:$0xff]  }
 0x724   :  { %v1600_v14 = vadd.f32 %v1599_v13, %v1503_v11  ;;  %v1619_v16 = vmax.f32 %v1616_v9, 0.0  ;;  %v5430_v19 = vpack.c.bf16 %v1621_v15, %v1621_v15  ;;  %v4261_v11 = vld [vmem:[#allocation33 + $0x30] ss:$8 sps:$4 sm:$0xff]   ;;  %v4264_v13 = vld [vmem:[#allocation33 + $0x20] ss:$8 sps:$4 sm:$0xff]  }
 0x725   :  { %v4269_v9 = vld [vmem:[#allocation33 + $0x14] ss:$8 sps:$4 sm:$0xff]   ;;  %v4273_v15 = vld [vmem:[#allocation33] ss:$8 sps:$4 sm:$0xff]  }
 0x726   :  { %v1617_v32 = vadd.f32 %v3550_v6, %v1600_v14  ;;  %v4260_v6 = vld [vmem:[#allocation33 + $0x44] ss:$8 sps:$4 sm:$0xff]   ;;  %v4267_v14 = vld [vmem:[#allocation33 + $0x10] ss:$8 sps:$4 sm:$0xff]  }
 0x728   :  { %v1620_v17 = vmax.f32 %v1617_v32, 0.0  ;;  %v4275_v32 = vld [vmem:[#allocation33 + $0x4] ss:$8 sps:$4 sm:$0xff]  }
 0x72a   :  { %v5428_v18 = vpack.c.bf16 %v1620_v17, %v1619_v16  ;;  %v4281_v16 = vld [vmem:[#allocation33 + $0xf4] ss:$8 sps:$4 sm:$0xff]   ;;  %v4279_v17 = vld [vmem:[#allocation33 + $0xf0] ss:$8 sps:$4 sm:$0xff]  }
 0x72c   :  { %4030 = vmatprep.mubr.bf16.mxu1 %v5428_v18 }
 0x72d   :  { %4031 = vmatmul.mubr.bf16.vlgmr.msra.gmra.mxu1 %v5430_v19 }
 0x72e   :  { %2219 = vmatprep.mubr.bf16.mxu1 %v5070_v54 }
 0x73b   :  { %v1872_v33 = vpop.f32.mrf.mxu0 }
 0x73d   :  { %v4006_v20 = vpop.f32.mrf.mxu0 }
 0x73e   :  { %v4285_v20 = vld [vmem:[#allocation33 + $0xe0] ss:$8 sps:$4 sm:$0xff]  }
 0x73f   :  { %v1875_v21 = vpop.f32.mrf.mxu0 }
 0x740   :  { %v1879_v23 = vpack.c.bf16 %v1875_v21, %v1872_v33  ;;  %v4287_v33 = vld [vmem:[#allocation33 + $0xe4] ss:$8 sps:$4 sm:$0xff]   ;;  %v4293_v21 = vld [vmem:[#allocation33 + $0xd4] ss:$8 sps:$4 sm:$0xff]  }
 0x741   :  { %v4007_v24 = vpop.f32.mrf.mxu0 }
 0x742   :  { %4008 = vmatprep.subr.bf16.mxu0 %v1879_v23 }
 0x743   :  { %4009 = vmatpush3.bf16.msra.mxu0 %v1879_v23  ;;  %v4291_v23 = vld [vmem:[#allocation33 + $0xd0] ss:$8 sps:$4 sm:$0xff]  }
 0x744   :  { %2123 = vmatprep.subr.bf16.mxu0 %v4203_v25 }
 0x746   :  { %4011 = vmatmul.mubr.msk.bf16.vlgmr.msra.gmra.mxu0 %vm713_vm1, %v5349_v22  ;;  %v4212_v22 = vld [vmem:[%s5606_s11 + $0x44] ss:$8 sps:$4 sm:$0xff]  }
 0x747   :  { %2155 = vmatprep.mubr.bf16.mxu0 %v5070_v54  ;;  %2124 = vmatpush1.bf16.msra.mxu0 %v4201_v26 }
 0x748   :  { %2125 = vmatprep.subr.bf16.mxu0 %v4206_v27 }
 0x74b   :  { %2126 = vmatpush1.bf16.msra.mxu0 %v4204_v28 }
 0x74c   :  { %2127 = vmatprep.subr.bf16.mxu0 %v4209_v29 }
 0x74f   :  { %2128 = vmatpush1.bf16.msra.mxu0 %v4207_v30 }
 0x750   :  { %2129 = vmatprep.subr.bf16.mxu0 %v4212_v22 }
 0x753   :  { %2130 = vmatpush1.bf16.msra.mxu0 %v4210_v31 }
 0x754   :  { %2131 = vmatprep.subr.bf16.mxu0 %v4215_v34 }
 0x757   :  { %2132 = vmatpush1.bf16.msra.mxu0 %v4213_v35 }
 0x758   :  { %2133 = vmatprep.subr.bf16.mxu0 %v4218_v36 }
 0x75b   :  { %2134 = vmatpush1.bf16.msra.mxu0 %v4216_v37 }
 0x75c   :  { %2135 = vmatprep.subr.bf16.mxu0 %v4221_v38 }
 0x75f   :  { %2136 = vmatpush1.bf16.msra.mxu0 %v4219_v39 }
 0x760   :  { %2137 = vmatprep.subr.bf16.mxu0 %v4224_v40 }
 0x763   :  { %2138 = vmatpush1.bf16.msra.mxu0 %v4222_v41  ;;  %v4227_v41 = vld [vmem:[#allocation35 + $0x74] ss:$8 sps:$4 sm:$0xff]  }
 0x764   :  { %2597 = vmatprep.subr.bf16.mxu0 %v4251_v1  ;;  %v4290_v1 = vld [vmem:[#allocation30 + $0x44] ss:$8 sps:$4 sm:$0xff]  }
 0x7ed   :  { %v5454_v42 = vpop.f32.mrf.mxu1 }
 0x7ee   :  { %v2040_v28 = vpack.c.bf16 %v5454_v42, %v5454_v42 }
 0x7ef   :  { %v5456_v43 = vpop.f32.mrf.mxu1 }
 0x7f0   :  { %v2179_v31 = vsel %vm994_vm5, %v2040_v28, 0 }
 0x7f1   :  { %v4033_v44 = vpop.f32.mrf.mxu1 }
 0x7f2   :  { %v4230_v44 = vld [vmem:[#allocation35 + $0x64] ss:$8 sps:$4 sm:$0xff]  }
 0x7f3   :  { %v2028_v34 = vpop.f32.mrf.mxu1 }
 0x7f4   :  { %v2039_v37 = vpack.c.bf16 %v2028_v34, %v5456_v43  ;;  %v4225_v43 = vld [vmem:[#allocation35 + $0x70] ss:$8 sps:$4 sm:$0xff]  }
 0x806   :  { %v4012_v45 = vpop.f32.mrf.mxu0 }
 0x807   :  { %v1929_v53 = vadd.f32 %v4012_v45, %v3559_v46  ;;  %v4228_v45 = vld [vmem:[#allocation35 + $0x60] ss:$8 sps:$4 sm:$0xff]  }
 0x808   :  { %v1920_v47 = vpop.f32.mrf.mxu0 }
 0x809   :  { %v1921_v48 = vadd.f32 %v3559_v46, %v1920_v47  ;;  %v1939_v60 = vmul.f32 0.1, %v1929_v53  ;;  %vm1936_vm2 = vcmp.gt.f32.partialorder %v1929_v53, 0.0  ;;  %v4231_v47 = vld [vmem:[#allocation35 + $0x50] ss:$8 sps:$4 sm:$0xff]  }
 0x80a   :  { %v4013_v49 = vpop.f32.mrf.mxu0 }
 0x80b   :  { %v1937_v51 = vmul.f32 0.1, %v1921_v48  ;;  %vm1934_vm14 = vcmp.gt.f32.partialorder %v1921_v48, 0.0  ;;  %v1942_v61 = vsel %vm1936_vm2, %v1929_v53, %v1939_v60  ;;  %v4239_v49 = vld [vmem:[#allocation35 + $0x34] ss:$8 sps:$4 sm:$0xff]  }
 0x80c   :  { %v1923_v50 = vpop.f32.mrf.mxu0  ;;  %v2042_v62 = vpack.c.bf16 %v1942_v61, %v1942_v61  ;;  %v4243_v53 = vld [vmem:[#allocation35 + $0x10] ss:$8 sps:$4 sm:$0xff]   ;;  %v4278_v60 = vld [vmem:[#allocation30 + $0x64] ss:$8 sps:$4 sm:$0xff]   ;;  %v4276_v61 = vld [vmem:[#allocation30 + $0x60] ss:$8 sps:$4 sm:$0xff]  }
 0x80d   :  { %v1924_v52 = vadd.f32 %v3559_v46, %v1923_v50  ;;  %v1940_v56 = vsel %vm1934_vm14, %v1921_v48, %v1937_v51  ;;  %v4233_v46 = vld [vmem:[#allocation35 + $0x54] ss:$8 sps:$4 sm:$0xff]   ;;  %v4236_v48 = vld [vmem:[#allocation35 + $0x44] ss:$8 sps:$4 sm:$0xff]   ;;  %v4237_v50 = vld [vmem:[#allocation35 + $0x30] ss:$8 sps:$4 sm:$0xff]  }
 0x80e   :  { %v4242_v51 = vld [vmem:[#allocation35 + $0x24] ss:$8 sps:$4 sm:$0xff]  }
 0x80f   :  { %vm1935_vm15 = vcmp.gt.f32.partialorder %v1924_v52, 0.0  ;;  %v1938_v55 = vmul.f32 0.1, %v1924_v52 }
 0x811   :  { %v1941_v57 = vsel %vm1935_vm15, %v1924_v52, %v1938_v55  ;;  %v4245_v52 = vld [vmem:[#allocation35 + $0x14] ss:$8 sps:$4 sm:$0xff]   ;;  %v4248_v55 = vld [vmem:[#allocation35 + $0x4] ss:$8 sps:$4 sm:$0xff]  }
 0x812   :  { %v2041_v59 = vpack.c.bf16 %v1941_v57, %v1940_v56  ;;  %v4246_v56 = vld [vmem:[#allocation35] ss:$8 sps:$4 sm:$0xff]   ;;  %v4272_v57 = vld [vmem:[#allocation30 + $0x74] ss:$8 sps:$4 sm:$0xff]  }
 0x814   :  { %2156 = vmatmul.mubr.bf16.vlgmr.msra.gmra.mxu0 %v2041_v59  ;;  %v4270_v59 = vld [vmem:[#allocation30 + $0x70] ss:$8 sps:$4 sm:$0xff]  }
 0x815   :  { %2165 = vmatprep.mubr.bf16.mxu0 %v5070_v54  ;;  %2598 = vmatpush1.bf16.msra.mxu0 %v4249_v63  ;;  %v4282_v63 = vld [vmem:[#allocation30 + $0x50] ss:$8 sps:$4 sm:$0xff]  }
 0x816   :  { %2599 = vmatprep.subr.bf16.mxu0 %v4254_v2  ;;  %v4288_v2 = vld [vmem:[#allocation30 + $0x40] ss:$8 sps:$4 sm:$0xff]  }
 0x819   :  { %2600 = vmatpush1.bf16.msra.mxu0 %v4252_v3  ;;  %v4296_v3 = vld [vmem:[#allocation30 + $0x34] ss:$8 sps:$4 sm:$0xff]  }
 0x81a   :  { %2601 = vmatprep.subr.bf16.mxu0 %v4257_v4  ;;  %v4294_v4 = vld [vmem:[#allocation30 + $0x30] ss:$8 sps:$4 sm:$0xff]  }
 0x81c   :  { %2166 = vmatmul.mubr.bf16.gmra.mxu0 %v2042_v62  ;;  %v4284_v62 = vld [vmem:[#allocation30 + $0x54] ss:$8 sps:$4 sm:$0xff]  }
 0x81d   :  { %2602 = vmatpush1.bf16.msra.mxu0 %v4255_v5  ;;  %v4299_v5 = vld [vmem:[#allocation33 + $0xc4] ss:$8 sps:$4 sm:$0xff]  }
 0x81e   :  { %2603 = vmatprep.subr.bf16.mxu0 %v4260_v6  ;;  %v4297_v6 = vld [vmem:[#allocation33 + $0xc0] ss:$8 sps:$4 sm:$0xff]  }
 0x821   :  { %2604 = vmatpush1.bf16.msra.mxu0 %v4258_v10  ;;  %v4300_v10 = vld [vmem:[#allocation30 + $0x20] ss:$8 sps:$4 sm:$0xff]  }
 0x822   :  { %2605 = vmatprep.subr.bf16.mxu0 %v4263_v8  ;;  %v4305_v8 = vld [vmem:[#allocation33 + $0xb4] ss:$8 sps:$4 sm:$0xff]  }
 0x825   :  { %2606 = vmatpush1.bf16.msra.mxu0 %v4261_v11  ;;  %v4308_v11 = vld [vmem:[#allocation30 + $0x14] ss:$8 sps:$4 sm:$0xff]  }
 0x826   :  { %2607 = vmatprep.subr.bf16.mxu0 %v4266_v12  ;;  %v4303_v12 = vld [vmem:[#allocation33 + $0xb0] ss:$8 sps:$4 sm:$0xff]  }
 0x829   :  { %2608 = vmatpush1.bf16.msra.mxu0 %v4264_v13  ;;  %v4306_v13 = vld [vmem:[#allocation30 + $0x10] ss:$8 sps:$4 sm:$0xff]  }
 0x82a   :  { %2609 = vmatprep.subr.bf16.mxu0 %v4269_v9  ;;  %v4311_v9 = vld [vmem:[#allocation33 + $0xa4] ss:$8 sps:$4 sm:$0xff]  }
 0x82d   :  { %2610 = vmatpush1.bf16.msra.mxu0 %v4267_v14  ;;  %v4314_v14 = vld [vmem:[#allocation30 + $0x4] ss:$8 sps:$4 sm:$0xff]  }
 0x82e   :  { %2611 = vmatprep.subr.bf16.mxu0 %v4275_v32  ;;  %v4309_v32 = vld [vmem:[#allocation33 + $0xa0] ss:$8 sps:$4 sm:$0xff]  }
 0x831   :  { %2612 = vmatpush1.bf16.msra.mxu0 %v4273_v15  ;;  %v4312_v15 = vld [vmem:[#allocation30] ss:$8 sps:$4 sm:$0xff]  }
 0x832   :  { %2613 = vmatprep.subr.bf16.mxu0 %v4281_v16  ;;  %v4317_v16 = vld [vmem:[#allocation33 + $0x94] ss:$8 sps:$4 sm:$0xff]  }
 0x835   :  { %2614 = vmatpush2.bf16.msra.mxu0 %v4279_v17  ;;  %v4315_v17 = vld [vmem:[#allocation33 + $0x90] ss:$8 sps:$4 sm:$0xff]  }
 0x836   :  { %2615 = vmatprep.subr.bf16.mxu0 %v4287_v33  ;;  %v4318_v33 = vld [vmem:[#allocation33 + $0x80] ss:$8 sps:$4 sm:$0xff]  }
 0x839   :  { %2616 = vmatpush2.bf16.msra.mxu0 %v4285_v20  ;;  %v4320_v20 = vld [vmem:[#allocation33 + $0x84] ss:$8 sps:$4 sm:$0xff]  }
 0x83a   :  { %2617 = vmatprep.subr.bf16.mxu0 %v4293_v21  ;;  %v4323_v21 = vld [vmem:[#allocation39 + $0x74] ss:$8 sps:$4 sm:$0xff]  }
 0x83d   :  { %2618 = vmatpush2.bf16.msra.mxu0 %v4291_v23  ;;  %v2286_v23 = vlaneseq }
 0x83e   :  { %2619 = vmatprep.subr.bf16.mxu0 %v4299_v5  ;;  %v4335_v5 = vld [vmem:[#allocation39 + $0x34] ss:$8 sps:$4 sm:$0xff]  }
 0x841   :  { %2620 = vmatpush2.bf16.msra.mxu0 %v4297_v6  ;;  %v4338_v6 = vld [vmem:[#allocation39 + $0x24] ss:$8 sps:$4 sm:$0xff]  }
 0x842   :  { %2621 = vmatprep.subr.bf16.mxu0 %v4305_v8  ;;  %v4341_v8 = vld [vmem:[#allocation39 + $0x14] ss:$8 sps:$4 sm:$0xff]  }
 0x845   :  { %2622 = vmatpush2.bf16.msra.mxu0 %v4303_v12  ;;  %v4344_v12 = vld [vmem:[#allocation39 + $0x4] ss:$8 sps:$4 sm:$0xff]  }
 0x846   :  { %2623 = vmatprep.subr.bf16.mxu0 %v4311_v9 }
 0x849   :  { %2624 = vmatpush2.bf16.msra.mxu0 %v4309_v32 }
 0x84a   :  { %2625 = vmatprep.subr.bf16.mxu0 %v4317_v16 }
 0x84d   :  { %2626 = vmatpush2.bf16.msra.mxu0 %v4315_v17 }
 0x84e   :  { %2627 = vmatprep.subr.bf16.mxu0 %v4320_v20  ;;  %v1740_v20 = vld [vmem:[#allocation36] sm:$0x3] }
 0x851   :  { %2628 = vmatpush2.bf16.msra.mxu0 %v4318_v33 }
 0x852   :  { %2945 = vmatprep.subr.bf16.mxu0 %v4323_v21 }
 0x8d4   :  { %v2157_v24 = vpop.f32.mrf.mxu0 }
 0x8d6   :  { %v2159_v25 = vpop.f32.mrf.mxu0 }
 0x8d8   :  { %v2161_v26 = vpop.f32.mrf.mxu0 }
 0x8d9   :  { %v2174_v35 = vpack.c.bf16 %v2161_v26, %v2157_v24  ;;  %v3589_v24 = vld [vmem:[#allocation27] ss:$0 sm:$0xff] }
 0x8da   :  { %v2163_v27 = vpop.f32.mrf.mxu0 }
 0x8db   :  { %v2175_v42 = vpack.c.bf16 %v2163_v27, %v2159_v25  ;;  %v2287_v25 = vshrl.u32 %v2286_v23, 7 }
 0x8dc   :  { %v2167_v29 = vpop.f32.mrf.mxu0 }
 0x8dd   :  { %v2176_v30 = vpack.c.bf16 %v2167_v29, %v2167_v29  ;;  %v5477_v28 = vsub.s32 1, %v2287_v25 }
 0x8de   :  { %v2169_v22 = vpop.f32.mrf.mxu0 }
 0x8df   :  { %3586 = vmatprep.subr.msk.bf16.mxu1 %vm994_vm5, %v2176_v30  ;;  %v2177_v39 = vpack.c.bf16 %v2169_v22, %v2169_v22  ;;  %v5479_v30 = vsub.s32 0, %v2287_v25  ;;  %v1674_v22 = vld [vmem:[#allocation29] sm:$0x3]  ;;  %v4347_v25 = vld [vmem:[#allocation38 + $0x74] ss:$8 sps:$4 sm:$0xff]  }
 0x8e0   :  { %v2171_v36 = vpop.f32.mrf.mxu0  ;;  %2200 = vmatpush1.bf16.msra.mxu1 %v2179_v31 }
 0x8e1   :  { %2201 = vmatprep.subr.bf16.mxu1 %v2174_v35  ;;  %v2185_v40 = vsel %vm994_vm5, %v2177_v39, 0  ;;  %v2293_v36 = vrot.slane %v1674_v22, %v5477_v28 }
 0x8e2   :  { %v2172_v38 = vpop.f32.mrf.mxu0 }
 0x8e4   :  { %2202 = vmatpush1.bf16.msra.mxu1 %v2039_v37  ;;  %v2289_v37 = vrot.slane %v1674_v22, %v5479_v30  ;;  %v4345_v22 = vld [vmem:[#allocation38 + $0x70] ss:$8 sps:$4 sm:$0xff]  }
 0x8e5   :  { %4034 = vmatprep.subr.bf16.mxu1 %v5068_v0 }
 0x8e7   :  { %3587 = vmatmul.mubr.msk.bf16.vlgmr.msra.gmra.mxu1 %vm990_vm6, %v5374_v7 }
 0x8e8   :  { %4035 = vmatpush3.bf16.msra.mxu1 %v2185_v40  ;;  %4038 = vmatprep.mubr.msk.bf16.mxu1 %vm5069_vm0, %v5068_v0 }
 0x8e9   :  { %4036 = vmatprep.subr.bf16.mxu1 %v5068_v0  ;;  %v4234_v0 = vld [vmem:[#allocation35 + $0x40] ss:$8 sps:$4 sm:$0xff]  }
 0x8ec   :  { %4037 = vmatpush3.bf16.msra.mxu1 %v2175_v42 }
 0x8ed   :  { %2394 = vmatprep.subr.bf16.mxu1 %v4227_v41 }
 0x8ef   :  { %4039 = vmatmul.mubr.msk.bf16.vlgmr.msra.gmra.mxu1 %vm990_vm6, %v5374_v7  ;;  %v4240_v7 = vld [vmem:[#allocation35 + $0x20] ss:$8 sps:$4 sm:$0xff]  }
 0x8f0   :  { %2395 = vmatpush1.bf16.msra.mxu1 %v4225_v43  ;;  %2426 = vmatprep.mubr.bf16.mxu1 %v5070_v54 }
 0x8f1   :  { %2396 = vmatprep.subr.bf16.mxu1 %v4230_v44 }
 0x8f4   :  { %2397 = vmatpush1.bf16.msra.mxu1 %v4228_v45 }
 0x8f5   :  { %2398 = vmatprep.subr.bf16.mxu1 %v4233_v46 }
 0x8f8   :  { %2399 = vmatpush1.bf16.msra.mxu1 %v4231_v47 }
 0x8f9   :  { %2400 = vmatprep.subr.bf16.mxu1 %v4236_v48 }
 0x8fc   :  { %2401 = vmatpush1.bf16.msra.mxu1 %v4234_v0 }
 0x8fd   :  { %2402 = vmatprep.subr.bf16.mxu1 %v4239_v49 }
 0x900   :  { %2403 = vmatpush1.bf16.msra.mxu1 %v4237_v50 }
 0x901   :  { %2404 = vmatprep.subr.bf16.mxu1 %v4242_v51 }
 0x904   :  { %2405 = vmatpush1.bf16.msra.mxu1 %v4240_v7 }
 0x905   :  { %2406 = vmatprep.subr.bf16.mxu1 %v4245_v52 }
 0x908   :  { %2407 = vmatpush1.bf16.msra.mxu1 %v4243_v53 }
 0x909   :  { %2408 = vmatprep.subr.bf16.mxu1 %v4248_v55 }
 0x90c   :  { %2409 = vmatpush1.bf16.msra.mxu1 %v4246_v56 }
 0x90d   :  { %2736 = vmatprep.subr.bf16.mxu1 %v4272_v57 }
 0x90f   :  { %2427 = vmatmul.mubr.bf16.vlgmr.msra.gmra.mxu1 %v5423_v58  ;;  %v4302_v58 = vld [vmem:[#allocation30 + $0x24] ss:$8 sps:$4 sm:$0xff]  }
 0x910   :  { %2737 = vmatpush1.bf16.msra.mxu1 %v4270_v59  ;;  %2768 = vmatprep.mubr.bf16.mxu1 %v5070_v54 }
 0x911   :  { %2738 = vmatprep.subr.bf16.mxu1 %v4278_v60  ;;  %v4321_v60 = vld [vmem:[#allocation39 + $0x70] ss:$8 sps:$4 sm:$0xff]  }
 0x914   :  { %2739 = vmatpush1.bf16.msra.mxu1 %v4276_v61 }
 0x915   :  { %2740 = vmatprep.subr.bf16.mxu1 %v4284_v62  ;;  %v4326_v62 = vld [vmem:[#allocation39 + $0x64] ss:$8 sps:$4 sm:$0xff]  }
 0x918   :  { %2741 = vmatpush1.bf16.msra.mxu1 %v4282_v63  ;;  %v4324_v63 = vld [vmem:[#allocation39 + $0x60] ss:$8 sps:$4 sm:$0xff]  }
 0x919   :  { %2742 = vmatprep.subr.bf16.mxu1 %v4290_v1  ;;  %v4329_v1 = vld [vmem:[#allocation39 + $0x54] ss:$8 sps:$4 sm:$0xff]  }
 0x91c   :  { %2743 = vmatpush1.bf16.msra.mxu1 %v4288_v2  ;;  %v4327_v2 = vld [vmem:[#allocation39 + $0x50] ss:$8 sps:$4 sm:$0xff]  }
 0x91d   :  { %2744 = vmatprep.subr.bf16.mxu1 %v4296_v3  ;;  %v4332_v3 = vld [vmem:[#allocation39 + $0x44] ss:$8 sps:$4 sm:$0xff]  }
 0x920   :  { %2745 = vmatpush1.bf16.msra.mxu1 %v4294_v4  ;;  %v4330_v4 = vld [vmem:[#allocation39 + $0x40] ss:$8 sps:$4 sm:$0xff]  }
 0x921   :  { %2746 = vmatprep.subr.bf16.mxu1 %v4302_v58  ;;  %v4333_v58 = vld [vmem:[#allocation39 + $0x30] ss:$8 sps:$4 sm:$0xff]  }
 0x924   :  { %2747 = vmatpush1.bf16.msra.mxu1 %v4300_v10  ;;  %v4336_v10 = vld [vmem:[#allocation39 + $0x20] ss:$8 sps:$4 sm:$0xff]  }
 0x925   :  { %2748 = vmatprep.subr.bf16.mxu1 %v4308_v11  ;;  %v4339_v11 = vld [vmem:[#allocation39 + $0x10] ss:$8 sps:$4 sm:$0xff]  }
 0x928   :  { %2749 = vmatpush1.bf16.msra.mxu1 %v4306_v13  ;;  %v4342_v13 = vld [vmem:[#allocation39] ss:$8 sps:$4 sm:$0xff]  }
 0x929   :  { %2750 = vmatprep.subr.bf16.mxu1 %v4314_v14 }
 0x92c   :  { %2751 = vmatpush1.bf16.msra.mxu1 %v4312_v15 }
 0x9a7   :  { %v2221_v26 = vpop.f32.mrf.mxu1 }
 0x9a8   :  { %v2277_v27 = vadd.f32 %v3589_v24, %v2221_v26 }
 0x9a9   :  { %v2223_v29 = vpop.f32.mrf.mxu1 }
 0x9aa   :  { %v2281_v34 = vmul.f32 0.1, %v2277_v27  ;;  %vm2279_vm0 = vcmp.gt.f32.partialorder %v2277_v27, 0.0  ;;  %v2296_v45 = vadd.f32 %v2289_v37, %v2223_v29 }
 0x9ab   :  { %v2225_v31 = vpop.f32.mrf.mxu1 }
 0x9ac   :  { %v2278_v35 = vadd.f32 %v3589_v24, %v2225_v31  ;;  %v2283_v42 = vsel %vm2279_vm0, %v2277_v27, %v2281_v34  ;;  %v2304_v51 = vmul.f32 0.1, %v2296_v45  ;;  %vm2300_vm6 = vcmp.gt.f32.partialorder %v2296_v45, 0.0  ;;  %v4350_v34 = vld [vmem:[#allocation38 + $0x64] ss:$8 sps:$4 sm:$0xff]  }
 0x9ad   :  { %v2227_v38 = vpop.f32.mrf.mxu1  ;;  %v2644_v27 = vrot.slane %v1740_v20, %v5479_v30 }
 0x9ae   :  { %vm2280_vm3 = vcmp.gt.f32.partialorder %v2278_v35, 0.0  ;;  %v2282_v39 = vmul.f32 0.1, %v2278_v35  ;;  %v2298_v40 = vadd.f32 %v2289_v37, %v2227_v38  ;;  %v2308_v57 = vsel %vm2300_vm6, %v2296_v45, %v2304_v51  ;;  %v4423_v38 = vld [vmem:[%s5602_s27] sm:$0xff]   ;;  %v4424_v51 = vld [vmem:[%s5602_s27 + $0x8] ss:$0 sps:$4 sm:$0xff]  }
 0x9af   :  { %v2264_v41 = vpop.f32.mrf.mxu1 }
 0x9b0   :  { %v2284_v43 = vsel %vm2280_vm3, %v2278_v35, %v2282_v39  ;;  %v2297_v44 = vadd.f32 %v2293_v36, %v2264_v41  ;;  %v2306_v0 = vmul.f32 0.1, %v2298_v40  ;;  %vm2302_vm5 = vcmp.gt.f32.partialorder %v2298_v40, 0.0  ;;  %v4348_v41 = vld [vmem:[#allocation38 + $0x60] ss:$8 sps:$4 sm:$0xff]  }
 0x9b1   :  { %v2655_v46 = vpack.c.bf16 %v2284_v43, %v2283_v42  ;;  %v4040_v47 = vpop.f32.mrf.mxu1  ;;  %v4353_v43 = vld [vmem:[#allocation38 + $0x54] ss:$8 sps:$4 sm:$0xff]  }
 0x9b2   :  { %v2305_v48 = vmul.f32 0.1, %v2297_v44  ;;  %vm2301_vm4 = vcmp.gt.f32.partialorder %v2297_v44, 0.0  ;;  %v2310_v55 = vsel %vm2302_vm5, %v2298_v40, %v2306_v0  ;;  %v4351_v0 = vld [vmem:[#allocation38 + $0x50] ss:$8 sps:$4 sm:$0xff]  }
 0x9b3   :  { %v2267_v49 = vpop.f32.mrf.mxu1  ;;  %2769 = vmatmul.mubr.bf16.vlgmr.msra.gmra.mxu1 %v2655_v46  ;;  %v2312_v61 = vpack.c.bf16 %v2310_v55, %v2308_v57  ;;  %v4362_v57 = vld [vmem:[#allocation38 + $0x24] ss:$8 sps:$4 sm:$0xff]  }
 0x9b4   :  { %v2299_v50 = vadd.f32 %v2293_v36, %v2267_v49  ;;  %2824 = vmatprep.mubr.bf16.mxu1 %v5070_v54  ;;  %v2309_v53 = vsel %vm2301_vm4, %v2297_v44, %v2305_v48 }
 0x9b5   :  { %v4041_v7 = vpop.f32.mrf.mxu1 }
 0x9b6   :  { %vm2303_vm7 = vcmp.gt.f32.partialorder %v2299_v50, 0.0  ;;  %v2307_v52 = vmul.f32 0.1, %v2299_v50 }
 0x9b8   :  { %v2311_v56 = vsel %vm2303_vm7, %v2299_v50, %v2307_v52  ;;  %v4354_v52 = vld [vmem:[#allocation38 + $0x40] ss:$8 sps:$4 sm:$0xff]  }
 0x9b9   :  { %v2313_v59 = vpack.c.bf16 %v2311_v56, %v2309_v53  ;;  %v4359_v53 = vld [vmem:[#allocation38 + $0x34] ss:$8 sps:$4 sm:$0xff]   ;;  %v4357_v56 = vld [vmem:[#allocation38 + $0x30] ss:$8 sps:$4 sm:$0xff]  }
 0x9bb   :  { %2629 = vmatprep.mubr.bf16.mxu0 %v2313_v59  ;;  %v4360_v59 = vld [vmem:[#allocation38 + $0x20] ss:$8 sps:$4 sm:$0xff]  }
 0x9bc   :  { %2630 = vmatmul.mubr.bf16.vlgmr.msra.gmra.mxu0 %v2312_v61  ;;  %v4363_v61 = vld [vmem:[#allocation38 + $0x10] ss:$8 sps:$4 sm:$0xff]  }
 0x9bd   :  { %2946 = vmatpush1.bf16.msra.mxu0 %v4321_v60  ;;  %2977 = vmatprep.mubr.bf16.mxu0 %v5070_v54  ;;  %v4365_v60 = vld [vmem:[#allocation38 + $0x14] ss:$8 sps:$4 sm:$0xff]  }
 0x9be   :  { %2947 = vmatprep.subr.bf16.mxu0 %v4326_v62 }
 0x9c1   :  { %2948 = vmatpush1.bf16.msra.mxu0 %v4324_v63  ;;  %v4368_v63 = vld [vmem:[#allocation38 + $0x4] ss:$8 sps:$4 sm:$0xff]  }
 0x9c2   :  { %2949 = vmatprep.subr.bf16.mxu0 %v4329_v1 }
 0x9c5   :  { %2950 = vmatpush1.bf16.msra.mxu0 %v4327_v2  ;;  %v4366_v2 = vld [vmem:[#allocation38] ss:$8 sps:$4 sm:$0xff]  }
 0x9c6   :  { %2951 = vmatprep.subr.bf16.mxu0 %v4332_v3 }
 0x9c9   :  { %2952 = vmatpush1.bf16.msra.mxu0 %v4330_v4  ;;  %v4371_v4 = vld [vmem:[#allocation38 + $0xf4] ss:$8 sps:$4 sm:$0xff]  }
 0x9ca   :  { %2953 = vmatprep.subr.bf16.mxu0 %v4335_v5 }
 0x9cd   :  { %2954 = vmatpush1.bf16.msra.mxu0 %v4333_v58 }
 0x9ce   :  { %2955 = vmatprep.subr.bf16.mxu0 %v4338_v6  ;;  %v4369_v6 = vld [vmem:[#allocation38 + $0xf0] ss:$8 sps:$4 sm:$0xff]  }
 0x9cf   :  { %v2428_v9 = vpop.f32.mrf.mxu1 }
 0x9d1   :  { %2956 = vmatpush1.bf16.msra.mxu0 %v4336_v10  ;;  %v2430_v14 = vpop.f32.mrf.mxu1 }
 0x9d2   :  { %2957 = vmatprep.subr.bf16.mxu0 %v4341_v8  ;;  %v4374_v8 = vld [vmem:[#allocation38 + $0xe4] ss:$8 sps:$4 sm:$0xff]  }
 0x9d3   :  { %v2432_v32 = vpop.f32.mrf.mxu1 }
 0x9d5   :  { %2958 = vmatpush1.bf16.msra.mxu0 %v4339_v11  ;;  %v2434_v15 = vpop.f32.mrf.mxu1 }
 0x9d6   :  { %2959 = vmatprep.subr.bf16.mxu0 %v4344_v12  ;;  %v4372_v12 = vld [vmem:[#allocation38 + $0xe0] ss:$8 sps:$4 sm:$0xff]  }
 0x9d9   :  { %2960 = vmatpush1.bf16.msra.mxu0 %v4342_v13 }
 0x9dc   :  { %2978 = vmatmul.mubr.bf16.vlgmr.msra.gmra.mxu0 %v5428_v18 }
 0x9dd   :  { %2987 = vmatprep.mubr.bf16.mxu0 %v5070_v54 }
 0x9e4   :  { %2988 = vmatmul.mubr.bf16.gmra.mxu0 %v5430_v19  ;;  %v2648_v19 = vrot.slane %v1740_v20, %v5477_v28 }
 0xa73   :  { %v2770_v16 = vpop.f32.mrf.mxu1 }
 0xa75   :  { %v2772_v17 = vpop.f32.mrf.mxu1 }
 0xa77   :  { %v2774_v33 = vpop.f32.mrf.mxu1 }
 0xa78   :  { %v2779_v26 = vpack.c.bf16 %v2774_v33, %v2770_v16 }
 0xa79   :  { %v2776_v21 = vpop.f32.mrf.mxu1 }
 0xa7a   :  { %v2780_v24 = vpack.c.bf16 %v2776_v21, %v2772_v17  ;;  %v4380_v17 = vld [vmem:[#allocation38 + $0xc4] ss:$8 sps:$4 sm:$0xff]  }
 0xa7c   :  { %v2631_v18 = vpop.f32.mrf.mxu0  ;;  %2806 = vmatprep.subr.bf16.mxu1 %v2780_v24 }
 0xa7d   :  { %v2632_v29 = vadd.f32 %v2631_v18, %v2428_v9  ;;  %2807 = vmatpush1.bf16.msra.mxu1 %v2779_v26  ;;  %v4377_v9 = vld [vmem:[#allocation38 + $0xd4] ss:$8 sps:$4 sm:$0xff]  }
 0xa7e   :  { %v2633_v31 = vpop.f32.mrf.mxu0  ;;  %3156 = vmatprep.subr.bf16.mxu1 %v4347_v25  ;;  %v4378_v25 = vld [vmem:[#allocation38 + $0xc0] ss:$8 sps:$4 sm:$0xff]   ;;  %v4383_v18 = vld [vmem:[#allocation38 + $0xb4] ss:$8 sps:$4 sm:$0xff]  }
 0xa7f   :  { %v5490_v35 = vadd.f32 %v2644_v27, %v2632_v29  ;;  %v2634_v36 = vadd.f32 %v2633_v31, %v2430_v14 }
 0xa80   :  { %v2635_v37 = vpop.f32.mrf.mxu0  ;;  %3654 = vmatmul.mubr.msk.bf16.vlgmr.msra.gmra.mxu1 %vm713_vm1, %v4423_v38 }
 0xa81   :  { %3224 = vst [vmem:[#allocation42] sm:$0xff] %v5490_v35  ;;  %v5495_v39 = vadd.f32 %v2648_v19, %v2634_v36  ;;  %v2636_v40 = vadd.f32 %v2635_v37, %v2432_v32  ;;  %2834 = vmatprep.mubr.bf16.mxu1 %v5070_v54  ;;  %3157 = vmatpush1.bf16.msra.mxu1 %v4345_v22  ;;  %v4356_v54 = vld [vmem:[#allocation38 + $0x44] ss:$8 sps:$4 sm:$0xff]   ;;  %v4375_v32 = vld [vmem:[#allocation38 + $0xd0] ss:$8 sps:$4 sm:$0xff]  }
 0xa82   :  { %v2637_v42 = vpop.f32.mrf.mxu0  ;;  %3158 = vmatprep.subr.bf16.mxu1 %v4350_v34  ;;  %v4381_v36 = vld [vmem:[#allocation38 + $0xb0] ss:$8 sps:$4 sm:$0xff]  }
 0xa83   :  { %v3241_v44 = vand.u32 2147483647, %v5495_v39  ;;  %v5499_v45 = vadd.f32 %v2644_v27, %v2636_v40  ;;  %v2638_v46 = vadd.f32 %v2637_v42, %v2434_v15  ;;  %v3239_v33 = vmax.f32 %v5495_v39, 0.0 }
 0xa85   :  { %v3243_v47 = vsub.f32 0.0, %v3241_v44  ;;  %3225 = vst [vmem:[#allocation42 + $0x8] sm:$0xff] %v5499_v45  ;;  %v5502_v48 = vadd.f32 %v2648_v19, %v2638_v46  ;;  %3159 = vmatpush1.bf16.msra.mxu1 %v4348_v41 }
 0xa86   :  { %3160 = vmatprep.subr.bf16.mxu1 %v4353_v43  ;;  %v3269_v43 = vmul.f32 %v5490_v35, %v5490_v35 }
 0xa87   :  { %v3245_v49 = vmul.f32 1.442695, %v3243_v47  ;;  %v3242_v50 = vand.u32 2147483647, %v5502_v48  ;;  %v3240_v19 = vmax.f32 %v5502_v48, 0.0  ;;  %v3270_v48 = vmul.f32 %v5499_v45, %v5499_v45 }
 0xa88   :  { %3655 = vmatmul.mubr.msk.bf16.gmra.mxu1 %vm713_vm1, %v4424_v51  ;;  %v4386_v47 = vld [vmem:[#allocation38 + $0xa4] ss:$8 sps:$4 sm:$0xff]  }
 0xa89   :  { %4393 = vpow2.f32 %v3245_v49  ;;  %v3244_v7 = vsub.f32 0.0, %v3242_v50  ;;  %3161 = vmatpush1.bf16.msra.mxu1 %v4351_v0  ;;  %v4384_v49 = vld [vmem:[#allocation38 + $0xa0] ss:$8 sps:$4 sm:$0xff]   ;;  %v4392_v45 = vld [vmem:[#allocation38 + $0x84] ss:$8 sps:$4 sm:$0xff]  }
 0xa8a   :  { %3162 = vmatprep.subr.bf16.mxu1 %v4356_v54 }
 0xa8b   :  { %v3247_v55 = vmul.f32 1.442695, %v3244_v7 }
 0xa8d   :  { %4395 = vpow2.f32 %v3247_v55  ;;  %3163 = vmatpush1.bf16.msra.mxu1 %v4354_v52  ;;  %v5526_v52 = vand.u32 127, %v2286_v23 }
 0xa8e   :  { %3164 = vmatprep.subr.bf16.mxu1 %v4359_v53  ;;  %v4389_v53 = vld [vmem:[#allocation38 + $0x94] ss:$8 sps:$4 sm:$0xff]  }
 0xa8f   :  { %vm3236_vm1 = vcmp.lt.s32.totalorder %v5526_v52, 32 }
 0xa91   :  { %3165 = vmatpush1.bf16.msra.mxu1 %v4357_v56  ;;  %v4387_v56 = vld [vmem:[#allocation38 + $0x90] ss:$8 sps:$4 sm:$0xff]  }
 0xa92   :  { %3166 = vmatprep.subr.bf16.mxu1 %v4362_v57 }
 0xa95   :  { %3167 = vmatpush1.bf16.msra.mxu1 %v4360_v59 }
 0xa96   :  { %v4394_v62 = vpop.eup %4393  ;;  %3168 = vmatprep.subr.bf16.mxu1 %v4365_v60 }
 0xa97   :  { %v3249_v1 = vadd.f32 1.0, %v4394_v62 }
 0xa99   :  { %4397 = vlog2.f32 %v3249_v1  ;;  %3169 = vmatpush1.bf16.msra.mxu1 %v4363_v61  ;;  %v4390_v61 = vld [vmem:[#allocation38 + $0x80] ss:$8 sps:$4 sm:$0xff]   ;;  %v1691_v1 = vld [vmem:[#allocation32] sm:$0x3] }
 0xa9a   :  { %v4396_v3 = vpop.eup %4395  ;;  %3170 = vmatprep.subr.bf16.mxu1 %v4368_v63 }
 0xa9b   :  { %v3250_v5 = vadd.f32 1.0, %v4396_v3  ;;  %v2785_v3 = vrot.slane %v1691_v1, %v5479_v30 }
 0xa9c   :  { %v5507_v58 = vpop.f32.mrf.mxu0 }
 0xa9d   :  { %4399 = vlog2.f32 %v3250_v5  ;;  %3171 = vmatpush1.bf16.msra.mxu1 %v4366_v2  ;;  %v2789_v2 = vrot.slane %v1691_v1, %v5477_v28 }
 0xa9e   :  { %v5509_v10 = vpop.f32.mrf.mxu0  ;;  %3172 = vmatprep.subr.bf16.mxu1 %v4371_v4 }
 0xaa0   :  { %v5511_v11 = vpop.f32.mrf.mxu0 }
 0xaa1   :  { %3173 = vmatpush2.bf16.msra.mxu1 %v4369_v6 }
 0xaa2   :  { %v5513_v13 = vpop.f32.mrf.mxu0  ;;  %3174 = vmatprep.subr.bf16.mxu1 %v4374_v8 }
 0xaa4   :  { %v5515_v14 = vpop.f32.mrf.mxu0 }
 0xaa5   :  { %3175 = vmatpush2.bf16.msra.mxu1 %v4372_v12 }
 0xaa6   :  { %v4398_v15 = vpop.eup %4397  ;;  %v5517_v16 = vpop.f32.mrf.mxu0  ;;  %3176 = vmatprep.subr.bf16.mxu1 %v4377_v9 }
 0xaa7   :  { %v3252_v20 = vmul.f32 0.6931472, %v4398_v15 }
 0xaa8   :  { %v2993_v21 = vpop.f32.mrf.mxu0 }
 0xaa9   :  { %v3255_v24 = vadd.f32 %v3252_v20, %v3239_v33  ;;  %3177 = vmatpush2.bf16.msra.mxu1 %v4375_v32 }
 0xaaa   :  { %v4400_v26 = vpop.eup %4399  ;;  %v2994_v27 = vpop.f32.mrf.mxu0  ;;  %3178 = vmatprep.subr.bf16.mxu1 %v4380_v17 }
 0xaab   :  { %v3257_v29 = vmul.f32 0.9, %v3255_v24  ;;  %v3254_v22 = vmul.f32 0.6931472, %v4400_v26 }
 0xaad   :  { %v3256_v31 = vadd.f32 %v3254_v22, %v3240_v19  ;;  %v3259_v34 = vadd.f32 0.1, %v3257_v29  ;;  %3179 = vmatpush2.bf16.msra.mxu1 %v4378_v25 }
 0xaae   :  { %3180 = vmatprep.subr.bf16.mxu1 %v4383_v18 }
 0xaaf   :  { %v3258_v37 = vmul.f32 0.9, %v3256_v31  ;;  %v3263_v38 = vmul.f32 2.0, %v3259_v34  ;;  %v3261_v0 = vsub.f32 1.2819356, %v3259_v34 }
 0xab1   :  { %v3260_v39 = vadd.f32 0.1, %v3258_v37  ;;  %v3265_v40 = vmul.f32 1.442695, %v3263_v38  ;;  %3181 = vmatpush2.bf16.msra.mxu1 %v4381_v36 }
 0xab2   :  { %3182 = vmatprep.subr.bf16.mxu1 %v4386_v47 }
 0xab3   :  { %v3264_v41 = vmul.f32 2.0, %v3260_v39  ;;  %4401 = vpow2.f32 %v3265_v40  ;;  %v3262_v55 = vsub.f32 1.2819356, %v3260_v39 }
 0xab5   :  { %v3267_v42 = vmul.f32 1.442695, %v3264_v41  ;;  %3183 = vmatpush2.bf16.msra.mxu1 %v4384_v49 }
 0xab6   :  { %3184 = vmatprep.subr.bf16.mxu1 %v4389_v53 }
 0xab7   :  { %4403 = vpow2.f32 %v3267_v42 }
 0xab9   :  { %3185 = vmatpush2.bf16.msra.mxu1 %v4387_v56 }
 0xaba   :  { %3186 = vmatprep.subr.bf16.mxu1 %v4392_v45 }
 0xabd   :  { %3187 = vmatpush2.bf16.msra.mxu1 %v4390_v61 }
 0xac0   :  { %v4402_v44 = vpop.eup %4401 }
 0xac1   :  { %v3271_v46 = vadd.f32 %v4402_v44, %v3269_v43 }
 0xac3   :  { %v3273_v54 = vmul.f32 0.038503036, %v3271_v46 }
 0xac4   :  { %v4404_v50 = vpop.eup %4403 }
 0xac5   :  { %v3272_v51 = vadd.f32 %v4404_v50, %v3270_v48  ;;  %v3275_v7 = vadd.f32 %v3273_v54, %v3261_v0  ;;  %v1789_v50 = vld [vmem:[#allocation41] sm:$0x3] }
 0xac7   :  { %v3274_v35 = vmul.f32 0.038503036, %v3272_v51  ;;  %v3704_v59 = vadd.f32 -0.5, %v3275_v7  ;;  %v3211_v51 = vrot.slane %v1789_v50, %v5479_v30 }
 0xac9   :  { %v3276_v57 = vadd.f32 %v3274_v35, %v3262_v55  ;;  %v3279_v62 = vsel %vm3236_vm1, %v3704_v59, 0.0  ;;  %v3215_v55 = vrot.slane %v1789_v50, %v5477_v28 }
 0xacb   :  { %v3705_v60 = vadd.f32 -0.5, %v3276_v57 }
 0xacd   :  { %v3280_v23 = vsel %vm3236_vm1, %v3705_v60, 0.0 }
 0xace   :  { %v3281_v63 = vadd.f32 %v3280_v23, %v3279_v62 }
 0xad0   :  { %3282 = vadd.xlane.f32.xlu0 %v3281_v63 }
 0xb40   :  { %v2826_v4 = vpop.f32.mrf.mxu1 }
 0xb41   :  { %v2827_v8 = vadd.f32 %v2826_v4, %v2785_v3 }
 0xb42   :  { %v2828_v5 = vpop.f32.mrf.mxu1 }
 0xb43   :  { %v2829_v6 = vadd.f32 %v2828_v5, %v2789_v2  ;;  %v2849_v20 = vmul.f32 0.1, %v2827_v8  ;;  %vm2843_vm10 = vcmp.gt.f32.partialorder %v2827_v8, 0.0 }
 0xb44   :  { %v2830_v12 = vpop.f32.mrf.mxu1 }
 0xb45   :  { %v2831_v9 = vadd.f32 %v2830_v12, %v2785_v3  ;;  %v2850_v15 = vmul.f32 0.1, %v2829_v6  ;;  %vm2844_vm9 = vcmp.gt.f32.partialorder %v2829_v6, 0.0  ;;  %v2855_v22 = vsel %vm2843_vm10, %v2827_v8, %v2849_v20 }
 0xb46   :  { %v2832_v32 = vpop.f32.mrf.mxu1 }
 0xb47   :  { %vm2845_vm8 = vcmp.gt.f32.partialorder %v2831_v9, 0.0  ;;  %v2851_v17 = vmul.f32 0.1, %v2831_v9  ;;  %v2833_v33 = vadd.f32 %v2832_v32, %v2789_v2  ;;  %v2856_v29 = vsel %vm2844_vm9, %v2829_v6, %v2850_v15 }
 0xb48   :  { %v2836_v21 = vpop.f32.mrf.mxu1 }
 0xb49   :  { %vm2846_vm11 = vcmp.gt.f32.partialorder %v2833_v33, 0.0  ;;  %v2852_v24 = vmul.f32 0.1, %v2833_v33  ;;  %v2857_v25 = vsel %vm2845_vm8, %v2831_v9, %v2851_v17  ;;  %v2837_v26 = vadd.f32 %v2836_v21, %v2785_v3 }
 0xb4a   :  { %v2838_v27 = vpop.f32.mrf.mxu1  ;;  %v2861_v36 = vpack.c.bf16 %v2857_v25, %v2855_v22 }
 0xb4b   :  { %v2839_v18 = vadd.f32 %v2838_v27, %v2789_v2  ;;  %v2858_v19 = vsel %vm2846_vm11, %v2833_v33, %v2852_v24  ;;  %v2853_v38 = vmul.f32 0.1, %v2837_v26  ;;  %vm2847_vm13 = vcmp.gt.f32.partialorder %v2837_v26, 0.0 }
 0xb4c   :  { %v2862_v31 = vpack.c.bf16 %v2858_v19, %v2856_v29  ;;  %v2840_v34 = vpop.f32.mrf.mxu1 }
 0xb4d   :  { %vm2848_vm12 = vcmp.gt.f32.partialorder %v2839_v18, 0.0  ;;  %v2854_v37 = vmul.f32 0.1, %v2839_v18  ;;  %v2859_v42 = vsel %vm2847_vm13, %v2837_v26, %v2853_v38 }
 0xb4e   :  { %3188 = vmatprep.mubr.bf16.mxu1 %v2862_v31  ;;  %v2841_v39 = vpop.f32.mrf.mxu1  ;;  %v2863_v43 = vpack.c.bf16 %v2859_v42, %v2859_v42 }
 0xb4f   :  { %3189 = vmatmul.mubr.bf16.vlgmr.msra.gmra.mxu1 %v2861_v36  ;;  %v2860_v40 = vsel %vm2848_vm12, %v2839_v18, %v2854_v37 }
 0xb50   :  { %v2864_v41 = vpack.c.bf16 %v2860_v40, %v2860_v40 }
 0xb52   :  { %3198 = vmatprep.mubr.bf16.mxu1 %v2864_v41 }
 0xb57   :  { %3199 = vmatmul.mubr.bf16.gmra.mxu1 %v2863_v43 }
 0xb59   :  { %v3283_v44 = vpop.xlane.xlu0 %3282 }
 0xb5a   :  { %v3284_v46 = vrot.slane %v3283_v44, 4 }
 0xb5c   :  { %v3285_v47 = vadd.f32 %v3284_v46, %v3283_v44 }
 0xb5e   :  { %v3286_v48 = vrot.slane %v3285_v47, 2 }
 0xb60   :  { %v3287_v0 = vadd.f32 %v3286_v48, %v3285_v47 }
 0xb62   :  { %v3288_v54 = vrot.slane %v3287_v0, 1 }
 0xb64   :  { %v3289_v49 = vadd.f32 %v3288_v54, %v3287_v0 }
 0xb66   :  { %4042 = vpush %v3289_v49 }
 0xc0f   :  { %v3190_v7 = vpop.f32.mrf.mxu1 }
 0xc10   :  { %v3191_v53 = vadd.f32 %v3190_v7, %v5507_v58 }
 0xc11   :  { %v3192_v35 = vpop.f32.mrf.mxu1 }
 0xc12   :  { %v5538_v56 = vadd.f32 %v3211_v51, %v3191_v53  ;;  %v3193_v57 = vadd.f32 %v3192_v35, %v5509_v10 }
 0xc13   :  { %v3194_v59 = vpop.f32.mrf.mxu1 }
 0xc14   :  { %3226 = vst [vmem:[#allocation43] sm:$0xff] %v5538_v56  ;;  %v3219_v45 = vadd.f32 %v3215_v55, %v3193_v57  ;;  %v3195_v60 = vadd.f32 %v3194_v59, %v5511_v11  ;;  %v3344_v49 = vmul.f32 %v5538_v56, %v5538_v56 }
 0xc15   :  { %v3196_v61 = vpop.f32.mrf.mxu1 }
 0xc16   :  { %v3302_v62 = vand.u32 2147483647, %v3219_v45  ;;  %v5543_v23 = vadd.f32 %v3211_v51, %v3195_v60  ;;  %v3197_v30 = vadd.f32 %v3196_v61, %v5513_v13  ;;  %v3299_v25 = vmax.f32 %v3219_v45, 0.0 }
 0xc17   :  { %v3200_v58 = vpop.f32.mrf.mxu1 }
 0xc18   :  { %v3305_v63 = vsub.f32 0.0, %v3302_v62  ;;  %3227 = vst [vmem:[#allocation43 + $0x8] sm:$0xff] %v5543_v23  ;;  %v3221_v28 = vadd.f32 %v3215_v55, %v3197_v30  ;;  %v3201_v1 = vadd.f32 %v3200_v58, %v5515_v14  ;;  %v3345_v7 = vmul.f32 %v5543_v23, %v5543_v23 }
 0xc19   :  { %v3202_v10 = vpop.f32.mrf.mxu1 }
 0xc1a   :  { %v3308_v2 = vmul.f32 1.442695, %v3305_v63  ;;  %v3303_v3 = vand.u32 2147483647, %v3221_v28  ;;  %v3222_v4 = vadd.f32 %v3211_v51, %v3201_v1  ;;  %v3203_v5 = vadd.f32 %v3202_v10, %v5517_v16 }
 0xc1b   :  { %v3204_v11 = vpop.f32.mrf.mxu1  ;;  %v3300_v19 = vmax.f32 %v3221_v28, 0.0 }
 0xc1c   :  { %4405 = vpow2.f32 %v3308_v2  ;;  %v3306_v6 = vsub.f32 0.0, %v3303_v3  ;;  %3228 = vst [vmem:[#allocation43 + $0x10] sm:$0xff] %v3222_v4  ;;  %v3223_v8 = vadd.f32 %v3215_v55, %v3203_v5  ;;  %v3346_v61 = vmul.f32 %v3222_v4, %v3222_v4 }
 0xc1d   :  { %v3205_v12 = vpop.f32.mrf.mxu1 }
 0xc1e   :  { %v3310_v13 = vmul.f32 1.442695, %v3306_v6  ;;  %v3304_v9 = vand.u32 2147483647, %v3223_v8  ;;  %v3301_v39 = vmax.f32 %v3223_v8, 0.0 }
 0xc20   :  { %4407 = vpow2.f32 %v3310_v13  ;;  %v3307_v32 = vsub.f32 0.0, %v3304_v9 }
 0xc22   :  { %v3312_v15 = vmul.f32 1.442695, %v3307_v32 }
 0xc24   :  { %4409 = vpow2.f32 %v3312_v15 }
 0xc29   :  { %v4406_v17 = vpop.eup %4405 }
 0xc2a   :  { %v3314_v14 = vadd.f32 1.0, %v4406_v17 }
 0xc2c   :  { %4411 = vlog2.f32 %v3314_v14 }
 0xc2d   :  { %v4408_v33 = vpop.eup %4407 }
 0xc2e   :  { %v3315_v20 = vadd.f32 1.0, %v4408_v33 }
 0xc30   :  { %4413 = vlog2.f32 %v3315_v20 }
 0xc31   :  { %v4410_v21 = vpop.eup %4409 }
 0xc32   :  { %v3316_v16 = vadd.f32 1.0, %v4410_v21 }
 0xc34   :  { %4415 = vlog2.f32 %v3316_v16 }
 0xc39   :  { %v4412_v24 = vpop.eup %4411 }
 0xc3a   :  { %v3318_v26 = vmul.f32 0.6931472, %v4412_v24 }
 0xc3c   :  { %v3323_v27 = vadd.f32 %v3318_v26, %v3299_v25 }
 0xc3d   :  { %v4414_v18 = vpop.eup %4413 }
 0xc3e   :  { %v3326_v29 = vmul.f32 0.9, %v3323_v27  ;;  %v3320_v22 = vmul.f32 0.6931472, %v4414_v18 }
 0xc40   :  { %v3329_v31 = vadd.f32 0.1, %v3326_v29  ;;  %v3324_v34 = vadd.f32 %v3320_v22, %v3300_v19 }
 0xc41   :  { %v4416_v36 = vpop.eup %4415 }
 0xc42   :  { %v3335_v37 = vmul.f32 2.0, %v3329_v31  ;;  %v3327_v38 = vmul.f32 0.9, %v3324_v34  ;;  %v3322_v40 = vmul.f32 0.6931472, %v4416_v36 }
 0xc43   :  { %v3332_v53 = vsub.f32 1.2819356, %v3329_v31 }
 0xc44   :  { %v3338_v41 = vmul.f32 1.442695, %v3335_v37  ;;  %v3330_v42 = vadd.f32 0.1, %v3327_v38  ;;  %v3325_v43 = vadd.f32 %v3322_v40, %v3301_v39 }
 0xc46   :  { %4417 = vpow2.f32 %v3338_v41  ;;  %v3336_v44 = vmul.f32 2.0, %v3330_v42  ;;  %v3328_v46 = vmul.f32 0.9, %v3325_v43  ;;  %v3333_v45 = vsub.f32 1.2819356, %v3330_v42 }
 0xc48   :  { %v3340_v47 = vmul.f32 1.442695, %v3336_v44  ;;  %v3331_v48 = vadd.f32 0.1, %v3328_v46 }
 0xc4a   :  { %4419 = vpow2.f32 %v3340_v47  ;;  %v3337_v0 = vmul.f32 2.0, %v3331_v48  ;;  %v3334_v1 = vsub.f32 1.2819356, %v3331_v48 }
 0xc4c   :  { %v3342_v54 = vmul.f32 1.442695, %v3337_v0 }
 0xc4e   :  { %4421 = vpow2.f32 %v3342_v54 }
 0xc53   :  { %v4418_v50 = vpop.eup %4417 }
 0xc54   :  { %v3347_v51 = vadd.f32 %v4418_v50, %v3344_v49 }
 0xc56   :  { %v3350_v55 = vmul.f32 0.038503036, %v3347_v51 }
 0xc57   :  { %v4420_v35 = vpop.eup %4419 }
 0xc58   :  { %v3348_v57 = vadd.f32 %v4420_v35, %v3345_v7  ;;  %v3353_v59 = vadd.f32 %v3350_v55, %v3332_v53 }
 0xc5a   :  { %v3351_v60 = vmul.f32 0.038503036, %v3348_v57  ;;  %v3706_v58 = vadd.f32 -0.5, %v3353_v59 }
 0xc5b   :  { %v4422_v62 = vpop.eup %4421 }
 0xc5c   :  { %v3354_v30 = vadd.f32 %v3351_v60, %v3333_v45  ;;  %v3349_v63 = vadd.f32 %v4422_v62, %v3346_v61  ;;  %v3359_v10 = vsel %vm3236_vm1, %v3706_v58, 0.0 }
 0xc5e   :  { %v3707_v28 = vadd.f32 -0.5, %v3354_v30  ;;  %v3352_v56 = vmul.f32 0.038503036, %v3349_v63 }
 0xc60   :  { %v3360_v23 = vsel %vm3236_vm1, %v3707_v28, 0.0  ;;  %v3355_v2 = vadd.f32 %v3352_v56, %v3334_v1 }
 0xc61   :  { %v3362_v3 = vadd.f32 %v3360_v23, %v3359_v10 }
 0xc62   :  { %v3708_v5 = vadd.f32 -0.5, %v3355_v2 }
 0xc64   :  { %v3361_v11 = vsel %vm3236_vm1, %v3708_v5, 0.0 }
 0xc65   :  { %v3363_v4 = vadd.f32 %v3362_v3, %v3361_v11 }
 0xc67   :  { %3364 = vadd.xlane.f32.xlu0 %v3363_v4 }
 0xc68   :  { %4936 = shalt.err (!%p4933_p3)
}
 0xc69   :  { %3388 = dma.vmem_to_hbm [thread:$0]  %s3383_s29, 256, %s5242_s30, [#allocation4], %s5050_s25, %s5050_s25, %s5051_s0  }
 0xc6a   :  { %s4945_s24 = scalar_lea.vmem %s3395_s16, 384  ;;  %p4950_p5 = scmp.lt.s32.totalorder %s3395_s16, %s3395_s16 }
 0xc6b   :  { %p4946_p4 = scmp.ne.s32.totalorder %s3395_s16, %s4945_s24  ;;  %p4951_p6 = scmp.lt.s32.totalorder %s4945_s24, %s4945_s24 }
 0xc6d   :  { %p4952_p7 = por %p4951_p6, %p4950_p5 }
 0xc6f   :  { %p4953_p8 = pnand %p4952_p7, %p4946_p4 }
 0xc71   :  { %4956 = shalt.err (!%p4953_p8)
}
 0xc72   :  { %3400 = dma.vmem_to_hbm [thread:$0]  %s3395_s16, 384, %s5247_s13, [#allocation44], %s5050_s25, %s5050_s25, %s5051_s0  }
 0xc73   :  { %s4043_s30 = spop %4042  ;;  %s5073_s18 = smov [#allocation45]  }
 0xc74   :  { %s3291_s22 = smul.f32 0.0625, %s4043_s30 }
 0xcf0   :  { %v3365_v52 = vpop.xlane.xlu0 %3364 }
 0xcf1   :  { %v3366_v6 = vrot.slane %v3365_v52, 4 }
 0xcf3   :  { %v3367_v8 = vadd.f32 %v3366_v6, %v3365_v52 }
 0xcf5   :  { %v3368_v12 = vrot.slane %v3367_v8, 2 }
 0xcf7   :  { %v3369_v13 = vadd.f32 %v3368_v12, %v3367_v8 }
 0xcf9   :  { %v3370_v9 = vrot.slane %v3369_v13, 1 }
 0xcfb   :  { %v3371_v32 = vadd.f32 %v3370_v9, %v3369_v13 }
 0xcfd   :  { %4044 = vpush %v3371_v32 }
 0xd2e   :  { %s4045_s8 = spop %4044 }
 0xd2f   :  { %s3373_s23 = smul.f32 0.041666668, %s4045_s8 }
 0xd31   :  { %s3374_s14 = sadd.f32 %s3373_s23, %s3291_s22 }
 0xd33   :  { %3376 = sst [smem:[#allocation45]] %s3374_s14 }
 0xd34   :  { %3408 = dma.smem_to_hbm %s5073_s18, 16, %s5252_s19, [#allocation5]  }
 0xd35   :  { %4999 = dma.done.wait [#allocation4], 256  }
 0xd36   :  { %5000 = vsyncadd [#allocation4], 4294967040 }
 0xd37   :  { %5001 = dma.done.wait [#allocation44], 384  }
 0xd38   :  { %5002 = vsyncadd [#allocation44], 4294966912 }
 0xd39   :  { %5003 = dma.done.wait [#allocation5], 16  }
 0xd3a   :  { %5004 = vsyncadd [#allocation5], 4294967280 }
 0xd3b   :  { %3418 = sfence }
 0xd3c   :  { %3419 = vsyncpa [#allocation3], 1 }
 0xd3d   :  { %3420 = vsyncpa [#allocation7], 1 }
 0xd3e   :  { %3421 = vsyncpa [#allocation10], 1 }
 0xd3f   :  { %3422 = vsyncpa [#allocation13], 1 }
 0xd40   :  { %3423 = vsyncpa [#allocation16], 1 }
 0xd41   :  { %3424 = vsyncpa [#allocation19], 1 }
 0xd42   :  { %3425 = vsyncpa [#allocation22], 1 }
 0xd43   :  { %3426 = vsyncpa [#allocation25], 1 }
 0xd44   :  { %3427 = vsyncpa [#allocation28], 1 }
 0xd45   :  { %3428 = vsyncpa [#allocation31], 1 }
 0xd46   :  { %3429 = vsyncpa [#allocation34], 1 }
 0xd47   :  { %3430 = vsyncpa [#allocation37], 1 }
 0xd48   :  { %3431 = vsyncpa [#allocation40], 1 }
 0xd49   :  { %3432 = vsyncpa [#allocation4], 1 }
 0xd4a   :  { %3433 = vsyncpa [#allocation44], 1 }
 0xd4b   :  { %3434 = vsyncpa [#allocation5], 1 }

</bundles_post_ra>
